<compile_context>
chip_gen: v5e
topology: v5e:2x2
jax: 0.10.0
libtpu: 0.0.40
codegen_flags: <defaults>
</compile_context>

<pallas_src>
import numpy as np
import jax
import jax.numpy as jnp
from jax.experimental import pallas as pl
from jax.experimental.pallas import tpu as pltpu

# ----- module hyper-parameters (hardcoded defaults of the PyTorch module) ----
CONV_LAYERS = 2
KERNEL = 10
STRIDE = 2
PAD = 1
CHANNELS = 32
INPUT_LEN = 380
NUM_OUTPUTS = 16
EPS = 1e-5

L1 = (INPUT_LEN + 2 * PAD - KERNEL) // STRIDE + 1   # 187  conv-1 output length
L2 = (L1 + 2 * PAD - KERNEL) // STRIDE + 1          # 90   conv-2 output length
NE = (L1 + 1) // 2                                  # 94   even conv-1 output positions
NO = L1 // 2                                        # 93   odd  conv-1 output positions
HALF = KERNEL // 2                                  # 5    taps per parity
NPOS = 96                                           # padded parity-block width
P1W = 2 * NPOS                                      # per-sample width of p1T / h1T = 192
NPAIR = 96                                          # per-sample width of the pairs buffer
KP1 = 16                                            # conv-1 contraction (1*K=10) padded to 16
KC2 = KERNEL * CHANNELS                             # 320  conv-2 contraction
FC_IN = CHANNELS * L2                               # 2880

# The in-kernel even/odd im2col layout below is specialized to stride=2, pad=1.
assert STRIDE == 2 and PAD == 1
assert NE <= NPOS and NO <= NPOS and L2 + HALF - 1 <= NPAIR


# ----------------------------- Pallas kernel ---------------------------------
def _full_spec(shape):
    # whole array as a single block (full-extent block shapes are always legal)
    return pl.BlockSpec(shape, lambda i, _s=shape: (0,) * len(_s))


def _make_fused_kernel(n_batch):
    """conv1+BN1+tanh -> pairs scatter -> p2 im2col -> conv2+BN2+tanh -> flatten -> FC."""
    C = CHANNELS
    inv_cnt1 = 1.0 / float(n_batch * L1)
    inv_cnt2 = 1.0 / float(n_batch * L2)

    def kernel(p1_ref, w1_ref, w2_ref, bn_ref, fc_ref, fb_ref,
               out_ref, pairs_ref, p2_ref, h2_ref, flat_ref):
        # ---------------- conv1: one whole-slab matmul (channel-major) -------
        # p1_ref: (KP1, n*P1W) bf16; columns per sample n:
        #   [0 : NE)            even conv-1 output positions, [NE : NPOS) zero pad
        #   [NPOS : NPOS + NO)  odd  conv-1 output positions, rest zero pad
        y1 = jnp.dot(w1_ref[...], p1_ref[...],
                     preferred_element_type=jnp.float32)          # (C, n*P1W) f32

        # BatchNorm1d (training-mode batch stats, biased variance), one pass.
        # Padded columns are exactly zero (zero patches, conv bias folded away),
        # so they contribute nothing to the sums; divide by the true count.
        s1 = jnp.sum(y1, axis=1, keepdims=True)                   # (C, 1)
        q1 = jnp.sum(y1 * y1, axis=1, keepdims=True)              # (C, 1)
        mean1 = s1 * inv_cnt1
        var1 = q1 * inv_cnt1 - mean1 * mean1
        inv1 = jax.lax.rsqrt(var1 + EPS)
        g1 = bn_ref[pl.ds(0, C), pl.ds(0, 1)]
        be1 = bn_ref[pl.ds(0, C), pl.ds(1, 1)]
        h1b = jnp.tanh(g1 * ((y1 - mean1) * inv1) + be1).astype(jnp.bfloat16)

        # ------------- scatter into the even/odd "pairs" buffer --------------
        # pairsT[0:C,  n*NPAIR + a] = h1pad[n, 2a,   :]   (a=0 is the zero left pad)
        # pairsT[C:2C, n*NPAIR + a] = h1pad[n, 2a+1, :]
        # where h1pad = conv-1 activation with one zero pad on the left (PAD=1).
        for n in range(n_batch):
            src = n * P1W
            dst = n * NPAIR
            pairs_ref[pl.ds(0, C), pl.ds(dst, 1)] = jnp.zeros((C, 1), jnp.bfloat16)
            pairs_ref[pl.ds(0, C), pl.ds(dst + 1, NO)] = \
                h1b[:, src + NPOS: src + NPOS + NO]                 # odd h1 outputs
            pairs_ref[pl.ds(C, C), pl.ds(dst, NE)] = \
                h1b[:, src: src + NE]                               # even h1 outputs

        # ------------- layer-2 im2col: contiguous shifted copies -------------
        # p2T[k*C + c, n*L2 + j] = h1pad[n, 2j + k, c]
        for n in range(n_batch):
            for m in range(HALF):
                p2_ref[pl.ds(2 * C * m, 2 * C), pl.ds(n * L2, L2)] = \
                    pairs_ref[pl.ds(0, 2 * C), pl.ds(n * NPAIR + m, L2)]

        # ---------------- conv2: one whole-slab matmul + BN2 + tanh ----------
        y2 = jnp.dot(w2_ref[...], p2_ref[...],
                     preferred_element_type=jnp.float32)          # (C, n*L2) f32
        s2 = jnp.sum(y2, axis=1, keepdims=True)
        q2 = jnp.sum(y2 * y2, axis=1, keepdims=True)
        mean2 = s2 * inv_cnt2
        var2 = q2 * inv_cnt2 - mean2 * mean2
        inv2 = jax.lax.rsqrt(var2 + EPS)
        g2 = bn_ref[pl.ds(0, C), pl.ds(2, 1)]
        be2 = bn_ref[pl.ds(0, C), pl.ds(3, 1)]
        h2_ref[...] = jnp.tanh(g2 * ((y2 - mean2) * inv2) + be2).astype(jnp.bfloat16)

        # ------------- flatten (PyTorch order c*L2 + j) + fused FC -----------
        for n in range(n_batch):
            for c in range(C):
                flat_ref[pl.ds(n, 1), pl.ds(c * L2, L2)] = \
                    h2_ref[pl.ds(c, 1), pl.ds(n * L2, L2)]
        out_ref[...] = (
            jnp.dot(flat_ref[...], fc_ref[...], preferred_element_type=jnp.float32)
            + fb_ref[...]
        )

    return kernel


def fused_forward_call(p1T, w1p, w2f, bnp, fcT, fb, n_batch):
    return pl.pallas_call(
        _make_fused_kernel(n_batch),
        out_shape=jax.ShapeDtypeStruct((n_batch, NUM_OUTPUTS), jnp.float32),
        grid=(1,),
        in_specs=[
            _full_spec((KP1, n_batch * P1W)),        # p1T  (bf16)
            _full_spec((CHANNELS, KP1)),             # conv-1 weight (bf16)
            _full_spec((CHANNELS, KC2)),             # conv-2 weight (bf16)
            _full_spec((CHANNELS, 4)),               # BN params [g1, be1, g2, be2] (f32)
            _full_spec((FC_IN, NUM_OUTPUTS)),        # FC weight (bf16)
            _full_spec((1, NUM_OUTPUTS)),            # FC bias (f32)
        ],
        out_specs=_full_spec((n_batch, NUM_OUTPUTS)),
        scratch_shapes=[
            pltpu.VMEM((2 * CHANNELS, n_batch * NPAIR), jnp.bfloat16),  # pairs buffer
            pltpu.VMEM((KC2, n_batch * L2), jnp.bfloat16),              # layer-2 patches
            pltpu.VMEM((CHANNELS, n_batch * L2), jnp.bfloat16),         # conv-2 activation
            pltpu.VMEM((n_batch, FC_IN), jnp.bfloat16),                 # flattened FC input
        ],
        compiler_params=pltpu.CompilerParams(dimension_semantics=("arbitrary",)),
    )(p1T, w1p, w2f, bnp, fcT, fb)


# ------------------------------ JAX glue --------------------------------------
def forward(x, params):
    n_batch = x.shape[0]
    (w1, _b1, g1, be1), (w2, _b2, g2, be2) = params["convs"]
    fw, fb = params["fc"]
    # conv biases are dropped: (y + b) - mean(y + b) == y - mean(y) under
    # training-mode BatchNorm, so they cancel exactly.

    # --- parameter re-layouts (all permutations folded at prep time) ---
    # conv1: (C, 1, K) -> (C, K) zero-padded to (C, KP1), bf16
    w1p = jnp.pad(w1.reshape(CHANNELS, KERNEL), ((0, 0), (0, KP1 - KERNEL)))
    w1p = w1p.astype(jnp.bfloat16)
    # conv2: (C_out, C_in, K) -> (C_out, K*C_in) with column index k*C_in + c_in
    w2f = jnp.transpose(w2, (0, 2, 1)).reshape(CHANNELS, KC2).astype(jnp.bfloat16)
    # BN params as (C, 4) columns [gamma1, beta1, gamma2, beta2]
    bnp = jnp.stack([g1, be1, g2, be2], axis=1).astype(jnp.float32)
    # FC: the kernel builds the flat vector in PyTorch's natural order c*L2 + j,
    # so the weight only needs a transpose.
    fcT = fw.T.astype(jnp.bfloat16)                                 # (FC_IN, 16)

    # --- layer-1 im2col on the tiny raw input, transposed & parity-ordered ---
    #   p1T[k, n*P1W + e]        = xpad[n, 4e + k]      e = 0..NE-1 (even positions)
    #   p1T[k, n*P1W + NPOS + o] = xpad[n, 4o + 2 + k]  o = 0..NO-1 (odd positions)
    xp = jnp.pad(x[:, 0, :], ((0, 0), (PAD, PAD)))                       # (N, 382)
    pos = jnp.concatenate([jnp.arange(0, L1, 2), jnp.arange(1, L1, 2)])  # (L1,)
    idx = pos[:, None] * STRIDE + jnp.arange(KERNEL)[None, :]            # (L1, K)
    p1 = xp[:, idx]                                                      # (N, L1, K)
    p1e = jnp.pad(p1[:, :NE, :], ((0, 0), (0, NPOS - NE), (0, KP1 - KERNEL)))
    p1o = jnp.pad(p1[:, NE:, :], ((0, 0), (0, NPOS - NO), (0, KP1 - KERNEL)))
    p1cat = jnp.concatenate([p1e, p1o], axis=1)                          # (N, P1W, KP1)
    p1T = p1cat.reshape(n_batch * P1W, KP1).T.astype(jnp.bfloat16)       # (KP1, N*P1W)

    return fused_forward_call(p1T, w1p, w2f, bnp, fcT,
                              fb.reshape(1, -1).astype(jnp.float32), n_batch)


def reference_forward(x, params):
    # pure-JAX f32 reference (lax conv) for correctness check
    h = x
    for (w, b, g, be) in params["convs"]:
        y = jax.lax.conv_general_dilated(
            h, w, window_strides=(STRIDE,), padding=[(PAD, PAD)],
            dimension_numbers=("NCH", "OIH", "NCH"),
        ) + b[None, :, None]
        mean = jnp.mean(y, axis=(0, 2), keepdims=True)
        var = jnp.mean((y - mean) ** 2, axis=(0, 2), keepdims=True)
        h = jnp.tanh(
            g[None, :, None] * (y - mean) / jnp.sqrt(var + EPS) + be[None, :, None]
        )
    flat = h.reshape(h.shape[0], -1)
    fw, fb = params["fc"]
    return flat @ fw.T + fb[None, :]


def init_params(key):
    convs = []
    c_in = 1
    l = INPUT_LEN
    for _ in range(CONV_LAYERS):
        key, k1, k2 = jax.random.split(key, 3)
        fan_in = c_in * KERNEL
        bound = 1.0 / np.sqrt(fan_in)
        w = jax.random.uniform(k1, (CHANNELS, c_in, KERNEL), jnp.float32, -bound, bound)
        b = jax.random.uniform(k2, (CHANNELS,), jnp.float32, -bound, bound)
        gamma = jnp.ones((CHANNELS,), jnp.float32)   # PyTorch BN init
        beta = jnp.zeros((CHANNELS,), jnp.float32)
        convs.append((w, b, gamma, beta))
        c_in = CHANNELS
        l = (l + 2 * PAD - KERNEL) // STRIDE + 1
    fc_in = l * CHANNELS                             # 90 * 32 = 2880
    key, k1, k2 = jax.random.split(key, 3)
    bound = 1.0 / np.sqrt(fc_in)
    fw = jax.random.uniform(k1, (NUM_OUTPUTS, fc_in), jnp.float32, -bound, bound)
    fb = jax.random.uniform(k2, (NUM_OUTPUTS,), jnp.float32, -bound, bound)
    return {"convs": convs, "fc": (fw, fb)}


if __name__ == "__main__":
    key = jax.random.PRNGKey(0)
    kx, kp = jax.random.split(key)
    x = jax.random.normal(kx, (2, 1, INPUT_LEN), dtype=jnp.float32)  # (N, C=1, L=380)
    params = init_params(kp)

    fwd = jax.jit(forward)
    out = jax.block_until_ready(fwd(x, params))
    assert out.shape == (2, NUM_OUTPUTS), out.shape

    ref = jax.block_until_ready(reference_forward(x, params))
    # Tolerance reflects the bf16-MXU matmul path (f32 accumulate, f32 BN/tanh).
    np.testing.assert_allclose(np.asarray(out), np.asarray(ref), rtol=3e-2, atol=3e-2)

    print("KERNEL_OK")
</pallas_src>

<mosaic_0001>
module attributes {stable_mosaic.version = 11 : i64} {
  func.func @kernel(%arg0: i32, %arg1: memref<16x384xbf16, #tpu.memory_space<vmem>>, %arg2: memref<32x16xbf16, #tpu.memory_space<vmem>>, %arg3: memref<32x320xbf16, #tpu.memory_space<vmem>>, %arg4: memref<32x4xf32, #tpu.memory_space<vmem>>, %arg5: memref<2880x16xbf16, #tpu.memory_space<vmem>>, %arg6: memref<1x16xf32, #tpu.memory_space<vmem>>, %arg7: memref<2x16xf32, #tpu.memory_space<vmem>>, %arg8: memref<64x192xbf16, #tpu.memory_space<vmem>>, %arg9: memref<320x180xbf16, #tpu.memory_space<vmem>>, %arg10: memref<32x180xbf16, #tpu.memory_space<vmem>>, %arg11: memref<2x2880xbf16, #tpu.memory_space<vmem>>) attributes {dimension_semantics = [#tpu.dimension_semantics<arbitrary>], iteration_bounds = array<i64: 1>, scalar_prefetch = 0 : i64, scratch_operands = 4 : i64, tpu.core_type = #tpu.core_type<tc>, window_params = [{pipeline_mode = #tpu.pipeline_mode<synchronous>, transform_indices = @transform_0, window_bounds = array<i64: 16, 384>}, {pipeline_mode = #tpu.pipeline_mode<synchronous>, transform_indices = @transform_1, window_bounds = array<i64: 32, 16>}, {pipeline_mode = #tpu.pipeline_mode<synchronous>, transform_indices = @transform_2, window_bounds = array<i64: 32, 320>}, {pipeline_mode = #tpu.pipeline_mode<synchronous>, transform_indices = @transform_3, window_bounds = array<i64: 32, 4>}, {pipeline_mode = #tpu.pipeline_mode<synchronous>, transform_indices = @transform_4, window_bounds = array<i64: 2880, 16>}, {pipeline_mode = #tpu.pipeline_mode<synchronous>, transform_indices = @transform_5, window_bounds = array<i64: 1, 16>}, {pipeline_mode = #tpu.pipeline_mode<synchronous>, transform_indices = @transform_6, window_bounds = array<i64: 2, 16>}]} {
    %c0 = arith.constant 0 : index
    %c0_0 = arith.constant 0 : index
    %0 = vector.load %arg2[%c0, %c0_0] : memref<32x16xbf16, #tpu.memory_space<vmem>>, vector<32x16xbf16>
    %c0_1 = arith.constant 0 : index
    %c0_2 = arith.constant 0 : index
    %1 = vector.load %arg1[%c0_1, %c0_2] : memref<16x384xbf16, #tpu.memory_space<vmem>>, vector<16x384xbf16>
    %cst = arith.constant dense<0.000000e+00> : vector<32x384xf32>
    %2 = tpu.matmul %0, %1, %cst {dimension_numbers = #tpu.dot_dimension_numbers<[1], [0], [0], [1], [0, 0, 1, 1], [], []>} : vector<32x16xbf16>, vector<16x384xbf16>, vector<32x384xf32> -> vector<32x384xf32>
    %cst_3 = arith.constant dense<0.000000e+00> : vector<32xf32>
    %3 = vector.multi_reduction <add>, %2, %cst_3 [1] : vector<32x384xf32> to vector<32xf32>
    %4 = vector.shape_cast %3 : vector<32xf32> to vector<32x1xf32>
    %5 = arith.mulf %2, %2 : vector<32x384xf32>
    %cst_4 = arith.constant dense<0.000000e+00> : vector<32xf32>
    %6 = vector.multi_reduction <add>, %5, %cst_4 [1] : vector<32x384xf32> to vector<32xf32>
    %7 = vector.shape_cast %6 : vector<32xf32> to vector<32x1xf32>
    %cst_5 = arith.constant 0.00267379684 : f32
    %8 = vector.broadcast %cst_5 : f32 to vector<32x1xf32>
    %9 = arith.mulf %4, %8 : vector<32x1xf32>
    %cst_6 = arith.constant 0.00267379684 : f32
    %10 = vector.broadcast %cst_6 : f32 to vector<32x1xf32>
    %11 = arith.mulf %7, %10 : vector<32x1xf32>
    %12 = arith.mulf %9, %9 : vector<32x1xf32>
    %13 = arith.subf %11, %12 : vector<32x1xf32>
    %cst_7 = arith.constant 9.99999974E-6 : f32
    %14 = vector.broadcast %cst_7 : f32 to vector<32x1xf32>
    %15 = arith.addf %13, %14 : vector<32x1xf32>
    %16 = math.rsqrt %15 : vector<32x1xf32>
    %c0_8 = arith.constant 0 : index
    %c0_9 = arith.constant 0 : index
    %17 = vector.load %arg4[%c0_8, %c0_9] : memref<32x4xf32, #tpu.memory_space<vmem>>, vector<32x1xf32>
    %c0_10 = arith.constant 0 : index
    %c1 = arith.constant 1 : index
    %18 = vector.load %arg4[%c0_10, %c1] : memref<32x4xf32, #tpu.memory_space<vmem>>, vector<32x1xf32>
    %19 = vector.broadcast %9 : vector<32x1xf32> to vector<32x384xf32>
    %20 = arith.subf %2, %19 : vector<32x384xf32>
    %21 = vector.broadcast %16 : vector<32x1xf32> to vector<32x384xf32>
    %22 = arith.mulf %20, %21 : vector<32x384xf32>
    %23 = vector.broadcast %17 : vector<32x1xf32> to vector<32x384xf32>
    %24 = arith.mulf %23, %22 : vector<32x384xf32>
    %25 = vector.broadcast %18 : vector<32x1xf32> to vector<32x384xf32>
    %26 = arith.addf %24, %25 : vector<32x384xf32>
    %27 = math.tanh %26 : vector<32x384xf32>
    %28 = arith.truncf %27 : vector<32x384xf32> to vector<32x384xbf16>
    %cst_11 = arith.constant 0.000000e+00 : bf16
    %29 = vector.broadcast %cst_11 : bf16 to vector<32x1xbf16>
    %c0_12 = arith.constant 0 : index
    %c0_13 = arith.constant 0 : index
    %30 = vector.load %arg8[%c0_12, %c0_13] : memref<64x192xbf16, #tpu.memory_space<vmem>>, vector<32x1xbf16>
    tpu.vector_store %arg8[%c0_12, %c0_13], %29 {strides = array<i32>} : memref<64x192xbf16, #tpu.memory_space<vmem>>, vector<32x1xbf16>,
    %31 = vector.extract_strided_slice %28 {offsets = [0, 96], sizes = [32, 93], strides = [1, 1]} : vector<32x384xbf16> to vector<32x93xbf16>
    %c0_14 = arith.constant 0 : index
    %c1_15 = arith.constant 1 : index
    %32 = vector.load %arg8[%c0_14, %c1_15] : memref<64x192xbf16, #tpu.memory_space<vmem>>, vector<32x93xbf16>
    tpu.vector_store %arg8[%c0_14, %c1_15], %31 {strides = array<i32>} : memref<64x192xbf16, #tpu.memory_space<vmem>>, vector<32x93xbf16>,
    %33 = vector.extract_strided_slice %28 {offsets = [0, 0], sizes = [32, 94], strides = [1, 1]} : vector<32x384xbf16> to vector<32x94xbf16>
    %c32 = arith.constant 32 : index
    %c0_16 = arith.constant 0 : index
    %34 = vector.load %arg8[%c32, %c0_16] : memref<64x192xbf16, #tpu.memory_space<vmem>>, vector<32x94xbf16>
    tpu.vector_store %arg8[%c32, %c0_16], %33 {strides = array<i32>} : memref<64x192xbf16, #tpu.memory_space<vmem>>, vector<32x94xbf16>,
    %cst_17 = arith.constant 0.000000e+00 : bf16
    %35 = vector.broadcast %cst_17 : bf16 to vector<32x1xbf16>
    %c0_18 = arith.constant 0 : index
    %c96 = arith.constant 96 : index
    %36 = vector.load %arg8[%c0_18, %c96] : memref<64x192xbf16, #tpu.memory_space<vmem>>, vector<32x1xbf16>
    tpu.vector_store %arg8[%c0_18, %c96], %35 {strides = array<i32>} : memref<64x192xbf16, #tpu.memory_space<vmem>>, vector<32x1xbf16>,
    %37 = vector.extract_strided_slice %28 {offsets = [0, 288], sizes = [32, 93], strides = [1, 1]} : vector<32x384xbf16> to vector<32x93xbf16>
    %c0_19 = arith.constant 0 : index
    %c97 = arith.constant 97 : index
    %38 = vector.load %arg8[%c0_19, %c97] : memref<64x192xbf16, #tpu.memory_space<vmem>>, vector<32x93xbf16>
    tpu.vector_store %arg8[%c0_19, %c97], %37 {strides = array<i32>} : memref<64x192xbf16, #tpu.memory_space<vmem>>, vector<32x93xbf16>,
    %39 = vector.extract_strided_slice %28 {offsets = [0, 192], sizes = [32, 94], strides = [1, 1]} : vector<32x384xbf16> to vector<32x94xbf16>
    %c32_20 = arith.constant 32 : index
    %c96_21 = arith.constant 96 : index
    %40 = vector.load %arg8[%c32_20, %c96_21] : memref<64x192xbf16, #tpu.memory_space<vmem>>, vector<32x94xbf16>
    tpu.vector_store %arg8[%c32_20, %c96_21], %39 {strides = array<i32>} : memref<64x192xbf16, #tpu.memory_space<vmem>>, vector<32x94xbf16>,
    %c0_22 = arith.constant 0 : index
    %c0_23 = arith.constant 0 : index
    %41 = vector.load %arg8[%c0_22, %c0_23] : memref<64x192xbf16, #tpu.memory_space<vmem>>, vector<64x90xbf16>
    %c0_24 = arith.constant 0 : index
    %c0_25 = arith.constant 0 : index
    %42 = vector.load %arg9[%c0_24, %c0_25] : memref<320x180xbf16, #tpu.memory_space<vmem>>, vector<64x90xbf16>
    tpu.vector_store %arg9[%c0_24, %c0_25], %41 {strides = array<i32>} : memref<320x180xbf16, #tpu.memory_space<vmem>>, vector<64x90xbf16>,
    %c0_26 = arith.constant 0 : index
    %c1_27 = arith.constant 1 : index
    %43 = vector.load %arg8[%c0_26, %c1_27] : memref<64x192xbf16, #tpu.memory_space<vmem>>, vector<64x90xbf16>
    %c64 = arith.constant 64 : index
    %c0_28 = arith.constant 0 : index
    %44 = vector.load %arg9[%c64, %c0_28] : memref<320x180xbf16, #tpu.memory_space<vmem>>, vector<64x90xbf16>
    tpu.vector_store %arg9[%c64, %c0_28], %43 {strides = array<i32>} : memref<320x180xbf16, #tpu.memory_space<vmem>>, vector<64x90xbf16>,
    %c0_29 = arith.constant 0 : index
    %c2 = arith.constant 2 : index
    %45 = vector.load %arg8[%c0_29, %c2] : memref<64x192xbf16, #tpu.memory_space<vmem>>, vector<64x90xbf16>
    %c128 = arith.constant 128 : index
    %c0_30 = arith.constant 0 : index
    %46 = vector.load %arg9[%c128, %c0_30] : memref<320x180xbf16, #tpu.memory_space<vmem>>, vector<64x90xbf16>
    tpu.vector_store %arg9[%c128, %c0_30], %45 {strides = array<i32>} : memref<320x180xbf16, #tpu.memory_space<vmem>>, vector<64x90xbf16>,
    %c0_31 = arith.constant 0 : index
    %c3 = arith.constant 3 : index
    %47 = vector.load %arg8[%c0_31, %c3] : memref<64x192xbf16, #tpu.memory_space<vmem>>, vector<64x90xbf16>
    %c192 = arith.constant 192 : index
    %c0_32 = arith.constant 0 : index
    %48 = vector.load %arg9[%c192, %c0_32] : memref<320x180xbf16, #tpu.memory_space<vmem>>, vector<64x90xbf16>
    tpu.vector_store %arg9[%c192, %c0_32], %47 {strides = array<i32>} : memref<320x180xbf16, #tpu.memory_space<vmem>>, vector<64x90xbf16>,
    %c0_33 = arith.constant 0 : index
    %c4 = arith.constant 4 : index
    %49 = vector.load %arg8[%c0_33, %c4] : memref<64x192xbf16, #tpu.memory_space<vmem>>, vector<64x90xbf16>
    %c256 = arith.constant 256 : index
    %c0_34 = arith.constant 0 : index
    %50 = vector.load %arg9[%c256, %c0_34] : memref<320x180xbf16, #tpu.memory_space<vmem>>, vector<64x90xbf16>
    tpu.vector_store %arg9[%c256, %c0_34], %49 {strides = array<i32>} : memref<320x180xbf16, #tpu.memory_space<vmem>>, vector<64x90xbf16>,
    %c0_35 = arith.constant 0 : index
    %c96_36 = arith.constant 96 : index
    %51 = vector.load %arg8[%c0_35, %c96_36] : memref<64x192xbf16, #tpu.memory_space<vmem>>, vector<64x90xbf16>
    %c0_37 = arith.constant 0 : index
    %c90 = arith.constant 90 : index
    %52 = vector.load %arg9[%c0_37, %c90] : memref<320x180xbf16, #tpu.memory_space<vmem>>, vector<64x90xbf16>
    tpu.vector_store %arg9[%c0_37, %c90], %51 {strides = array<i32>} : memref<320x180xbf16, #tpu.memory_space<vmem>>, vector<64x90xbf16>,
    %c0_38 = arith.constant 0 : index
    %c97_39 = arith.constant 97 : index
    %53 = vector.load %arg8[%c0_38, %c97_39] : memref<64x192xbf16, #tpu.memory_space<vmem>>, vector<64x90xbf16>
    %c64_40 = arith.constant 64 : index
    %c90_41 = arith.constant 90 : index
    %54 = vector.load %arg9[%c64_40, %c90_41] : memref<320x180xbf16, #tpu.memory_space<vmem>>, vector<64x90xbf16>
    tpu.vector_store %arg9[%c64_40, %c90_41], %53 {strides = array<i32>} : memref<320x180xbf16, #tpu.memory_space<vmem>>, vector<64x90xbf16>,
    %c0_42 = arith.constant 0 : index
    %c98 = arith.constant 98 : index
    %55 = vector.load %arg8[%c0_42, %c98] : memref<64x192xbf16, #tpu.memory_space<vmem>>, vector<64x90xbf16>
    %c128_43 = arith.constant 128 : index
    %c90_44 = arith.constant 90 : index
    %56 = vector.load %arg9[%c128_43, %c90_44] : memref<320x180xbf16, #tpu.memory_space<vmem>>, vector<64x90xbf16>
    tpu.vector_store %arg9[%c128_43, %c90_44], %55 {strides = array<i32>} : memref<320x180xbf16, #tpu.memory_space<vmem>>, vector<64x90xbf16>,
    %c0_45 = arith.constant 0 : index
    %c99 = arith.constant 99 : index
    %57 = vector.load %arg8[%c0_45, %c99] : memref<64x192xbf16, #tpu.memory_space<vmem>>, vector<64x90xbf16>
    %c192_46 = arith.constant 192 : index
    %c90_47 = arith.constant 90 : index
    %58 = vector.load %arg9[%c192_46, %c90_47] : memref<320x180xbf16, #tpu.memory_space<vmem>>, vector<64x90xbf16>
    tpu.vector_store %arg9[%c192_46, %c90_47], %57 {strides = array<i32>} : memref<320x180xbf16, #tpu.memory_space<vmem>>, vector<64x90xbf16>,
    %c0_48 = arith.constant 0 : index
    %c100 = arith.constant 100 : index
    %59 = vector.load %arg8[%c0_48, %c100] : memref<64x192xbf16, #tpu.memory_space<vmem>>, vector<64x90xbf16>
    %c256_49 = arith.constant 256 : index
    %c90_50 = arith.constant 90 : index
    %60 = vector.load %arg9[%c256_49, %c90_50] : memref<320x180xbf16, #tpu.memory_space<vmem>>, vector<64x90xbf16>
    tpu.vector_store %arg9[%c256_49, %c90_50], %59 {strides = array<i32>} : memref<320x180xbf16, #tpu.memory_space<vmem>>, vector<64x90xbf16>,
    %c0_51 = arith.constant 0 : index
    %c0_52 = arith.constant 0 : index
    %61 = vector.load %arg3[%c0_51, %c0_52] : memref<32x320xbf16, #tpu.memory_space<vmem>>, vector<32x320xbf16>
    %c0_53 = arith.constant 0 : index
    %c0_54 = arith.constant 0 : index
    %62 = vector.load %arg9[%c0_53, %c0_54] : memref<320x180xbf16, #tpu.memory_space<vmem>>, vector<320x180xbf16>
    %cst_55 = arith.constant dense<0.000000e+00> : vector<32x180xf32>
    %63 = tpu.matmul %61, %62, %cst_55 {dimension_numbers = #tpu.dot_dimension_numbers<[1], [0], [0], [1], [0, 0, 1, 1], [], []>} : vector<32x320xbf16>, vector<320x180xbf16>, vector<32x180xf32> -> vector<32x180xf32>
    %cst_56 = arith.constant dense<0.000000e+00> : vector<32xf32>
    %64 = vector.multi_reduction <add>, %63, %cst_56 [1] : vector<32x180xf32> to vector<32xf32>
    %65 = vector.shape_cast %64 : vector<32xf32> to vector<32x1xf32>
    %66 = arith.mulf %63, %63 : vector<32x180xf32>
    %cst_57 = arith.constant dense<0.000000e+00> : vector<32xf32>
    %67 = vector.multi_reduction <add>, %66, %cst_57 [1] : vector<32x180xf32> to vector<32xf32>
    %68 = vector.shape_cast %67 : vector<32xf32> to vector<32x1xf32>
    %cst_58 = arith.constant 0.00555555569 : f32
    %69 = vector.broadcast %cst_58 : f32 to vector<32x1xf32>
    %70 = arith.mulf %65, %69 : vector<32x1xf32>
    %cst_59 = arith.constant 0.00555555569 : f32
    %71 = vector.broadcast %cst_59 : f32 to vector<32x1xf32>
    %72 = arith.mulf %68, %71 : vector<32x1xf32>
    %73 = arith.mulf %70, %70 : vector<32x1xf32>
    %74 = arith.subf %72, %73 : vector<32x1xf32>
    %cst_60 = arith.constant 9.99999974E-6 : f32
    %75 = vector.broadcast %cst_60 : f32 to vector<32x1xf32>
    %76 = arith.addf %74, %75 : vector<32x1xf32>
    %77 = math.rsqrt %76 : vector<32x1xf32>
    %c0_61 = arith.constant 0 : index
    %c2_62 = arith.constant 2 : index
    %78 = vector.load %arg4[%c0_61, %c2_62] : memref<32x4xf32, #tpu.memory_space<vmem>>, vector<32x1xf32>
    %c0_63 = arith.constant 0 : index
    %c3_64 = arith.constant 3 : index
    %79 = vector.load %arg4[%c0_63, %c3_64] : memref<32x4xf32, #tpu.memory_space<vmem>>, vector<32x1xf32>
    %80 = vector.broadcast %70 : vector<32x1xf32> to vector<32x180xf32>
    %81 = arith.subf %63, %80 : vector<32x180xf32>
    %82 = vector.broadcast %77 : vector<32x1xf32> to vector<32x180xf32>
    %83 = arith.mulf %81, %82 : vector<32x180xf32>
    %84 = vector.broadcast %78 : vector<32x1xf32> to vector<32x180xf32>
    %85 = arith.mulf %84, %83 : vector<32x180xf32>
    %86 = vector.broadcast %79 : vector<32x1xf32> to vector<32x180xf32>
    %87 = arith.addf %85, %86 : vector<32x180xf32>
    %88 = math.tanh %87 : vector<32x180xf32>
    %89 = arith.truncf %88 : vector<32x180xf32> to vector<32x180xbf16>
    %c0_65 = arith.constant 0 : index
    %c0_66 = arith.constant 0 : index
    %90 = vector.load %arg10[%c0_65, %c0_66] : memref<32x180xbf16, #tpu.memory_space<vmem>>, vector<32x180xbf16>
    tpu.vector_store %arg10[%c0_65, %c0_66], %89 {strides = array<i32>} : memref<32x180xbf16, #tpu.memory_space<vmem>>, vector<32x180xbf16>,
    %c0_67 = arith.constant 0 : index
    %c0_68 = arith.constant 0 : index
    %91 = vector.load %arg10[%c0_67, %c0_68] : memref<32x180xbf16, #tpu.memory_space<vmem>>, vector<1x90xbf16>
    %c0_69 = arith.constant 0 : index
    %c0_70 = arith.constant 0 : index
    %92 = vector.load %arg11[%c0_69, %c0_70] : memref<2x2880xbf16, #tpu.memory_space<vmem>>, vector<1x90xbf16>
    tpu.vector_store %arg11[%c0_69, %c0_70], %91 {strides = array<i32>} : memref<2x2880xbf16, #tpu.memory_space<vmem>>, vector<1x90xbf16>,
    %c1_71 = arith.constant 1 : index
    %c0_72 = arith.constant 0 : index
    %93 = vector.load %arg10[%c1_71, %c0_72] : memref<32x180xbf16, #tpu.memory_space<vmem>>, vector<1x90xbf16>
    %c0_73 = arith.constant 0 : index
    %c90_74 = arith.constant 90 : index
    %94 = vector.load %arg11[%c0_73, %c90_74] : memref<2x2880xbf16, #tpu.memory_space<vmem>>, vector<1x90xbf16>
    tpu.vector_store %arg11[%c0_73, %c90_74], %93 {strides = array<i32>} : memref<2x2880xbf16, #tpu.memory_space<vmem>>, vector<1x90xbf16>,
    %c2_75 = arith.constant 2 : index
    %c0_76 = arith.constant 0 : index
    %95 = vector.load %arg10[%c2_75, %c0_76] : memref<32x180xbf16, #tpu.memory_space<vmem>>, vector<1x90xbf16>
    %c0_77 = arith.constant 0 : index
    %c180 = arith.constant 180 : index
    %96 = vector.load %arg11[%c0_77, %c180] : memref<2x2880xbf16, #tpu.memory_space<vmem>>, vector<1x90xbf16>
    tpu.vector_store %arg11[%c0_77, %c180], %95 {strides = array<i32>} : memref<2x2880xbf16, #tpu.memory_space<vmem>>, vector<1x90xbf16>,
    %c3_78 = arith.constant 3 : index
    %c0_79 = arith.constant 0 : index
    %97 = vector.load %arg10[%c3_78, %c0_79] : memref<32x180xbf16, #tpu.memory_space<vmem>>, vector<1x90xbf16>
    %c0_80 = arith.constant 0 : index
    %c270 = arith.constant 270 : index
    %98 = vector.load %arg11[%c0_80, %c270] : memref<2x2880xbf16, #tpu.memory_space<vmem>>, vector<1x90xbf16>
    tpu.vector_store %arg11[%c0_80, %c270], %97 {strides = array<i32>} : memref<2x2880xbf16, #tpu.memory_space<vmem>>, vector<1x90xbf16>,
    %c4_81 = arith.constant 4 : index
    %c0_82 = arith.constant 0 : index
    %99 = vector.load %arg10[%c4_81, %c0_82] : memref<32x180xbf16, #tpu.memory_space<vmem>>, vector<1x90xbf16>
    %c0_83 = arith.constant 0 : index
    %c360 = arith.constant 360 : index
    %100 = vector.load %arg11[%c0_83, %c360] : memref<2x2880xbf16, #tpu.memory_space<vmem>>, vector<1x90xbf16>
    tpu.vector_store %arg11[%c0_83, %c360], %99 {strides = array<i32>} : memref<2x2880xbf16, #tpu.memory_space<vmem>>, vector<1x90xbf16>,
    %c5 = arith.constant 5 : index
    %c0_84 = arith.constant 0 : index
    %101 = vector.load %arg10[%c5, %c0_84] : memref<32x180xbf16, #tpu.memory_space<vmem>>, vector<1x90xbf16>
    %c0_85 = arith.constant 0 : index
    %c450 = arith.constant 450 : index
    %102 = vector.load %arg11[%c0_85, %c450] : memref<2x2880xbf16, #tpu.memory_space<vmem>>, vector<1x90xbf16>
    tpu.vector_store %arg11[%c0_85, %c450], %101 {strides = array<i32>} : memref<2x2880xbf16, #tpu.memory_space<vmem>>, vector<1x90xbf16>,
    %c6 = arith.constant 6 : index
    %c0_86 = arith.constant 0 : index
    %103 = vector.load %arg10[%c6, %c0_86] : memref<32x180xbf16, #tpu.memory_space<vmem>>, vector<1x90xbf16>
    %c0_87 = arith.constant 0 : index
    %c540 = arith.constant 540 : index
    %104 = vector.load %arg11[%c0_87, %c540] : memref<2x2880xbf16, #tpu.memory_space<vmem>>, vector<1x90xbf16>
    tpu.vector_store %arg11[%c0_87, %c540], %103 {strides = array<i32>} : memref<2x2880xbf16, #tpu.memory_space<vmem>>, vector<1x90xbf16>,
    %c7 = arith.constant 7 : index
    %c0_88 = arith.constant 0 : index
    %105 = vector.load %arg10[%c7, %c0_88] : memref<32x180xbf16, #tpu.memory_space<vmem>>, vector<1x90xbf16>
    %c0_89 = arith.constant 0 : index
    %c630 = arith.constant 630 : index
    %106 = vector.load %arg11[%c0_89, %c630] : memref<2x2880xbf16, #tpu.memory_space<vmem>>, vector<1x90xbf16>
    tpu.vector_store %arg11[%c0_89, %c630], %105 {strides = array<i32>} : memref<2x2880xbf16, #tpu.memory_space<vmem>>, vector<1x90xbf16>,
    %c8 = arith.constant 8 : index
    %c0_90 = arith.constant 0 : index
    %107 = vector.load %arg10[%c8, %c0_90] : memref<32x180xbf16, #tpu.memory_space<vmem>>, vector<1x90xbf16>
    %c0_91 = arith.constant 0 : index
    %c720 = arith.constant 720 : index
    %108 = vector.load %arg11[%c0_91, %c720] : memref<2x2880xbf16, #tpu.memory_space<vmem>>, vector<1x90xbf16>
    tpu.vector_store %arg11[%c0_91, %c720], %107 {strides = array<i32>} : memref<2x2880xbf16, #tpu.memory_space<vmem>>, vector<1x90xbf16>,
    %c9 = arith.constant 9 : index
    %c0_92 = arith.constant 0 : index
    %109 = vector.load %arg10[%c9, %c0_92] : memref<32x180xbf16, #tpu.memory_space<vmem>>, vector<1x90xbf16>
    %c0_93 = arith.constant 0 : index
    %c810 = arith.constant 810 : index
    %110 = vector.load %arg11[%c0_93, %c810] : memref<2x2880xbf16, #tpu.memory_space<vmem>>, vector<1x90xbf16>
    tpu.vector_store %arg11[%c0_93, %c810], %109 {strides = array<i32>} : memref<2x2880xbf16, #tpu.memory_space<vmem>>, vector<1x90xbf16>,
    %c10 = arith.constant 10 : index
    %c0_94 = arith.constant 0 : index
    %111 = vector.load %arg10[%c10, %c0_94] : memref<32x180xbf16, #tpu.memory_space<vmem>>, vector<1x90xbf16>
    %c0_95 = arith.constant 0 : index
    %c900 = arith.constant 900 : index
    %112 = vector.load %arg11[%c0_95, %c900] : memref<2x2880xbf16, #tpu.memory_space<vmem>>, vector<1x90xbf16>
    tpu.vector_store %arg11[%c0_95, %c900], %111 {strides = array<i32>} : memref<2x2880xbf16, #tpu.memory_space<vmem>>, vector<1x90xbf16>,
    %c11 = arith.constant 11 : index
    %c0_96 = arith.constant 0 : index
    %113 = vector.load %arg10[%c11, %c0_96] : memref<32x180xbf16, #tpu.memory_space<vmem>>, vector<1x90xbf16>
    %c0_97 = arith.constant 0 : index
    %c990 = arith.constant 990 : index
    %114 = vector.load %arg11[%c0_97, %c990] : memref<2x2880xbf16, #tpu.memory_space<vmem>>, vector<1x90xbf16>
    tpu.vector_store %arg11[%c0_97, %c990], %113 {strides = array<i32>} : memref<2x2880xbf16, #tpu.memory_space<vmem>>, vector<1x90xbf16>,
    %c12 = arith.constant 12 : index
    %c0_98 = arith.constant 0 : index
    %115 = vector.load %arg10[%c12, %c0_98] : memref<32x180xbf16, #tpu.memory_space<vmem>>, vector<1x90xbf16>
    %c0_99 = arith.constant 0 : index
    %c1080 = arith.constant 1080 : index
    %116 = vector.load %arg11[%c0_99, %c1080] : memref<2x2880xbf16, #tpu.memory_space<vmem>>, vector<1x90xbf16>
    tpu.vector_store %arg11[%c0_99, %c1080], %115 {strides = array<i32>} : memref<2x2880xbf16, #tpu.memory_space<vmem>>, vector<1x90xbf16>,
    %c13 = arith.constant 13 : index
    %c0_100 = arith.constant 0 : index
    %117 = vector.load %arg10[%c13, %c0_100] : memref<32x180xbf16, #tpu.memory_space<vmem>>, vector<1x90xbf16>
    %c0_101 = arith.constant 0 : index
    %c1170 = arith.constant 1170 : index
    %118 = vector.load %arg11[%c0_101, %c1170] : memref<2x2880xbf16, #tpu.memory_space<vmem>>, vector<1x90xbf16>
    tpu.vector_store %arg11[%c0_101, %c1170], %117 {strides = array<i32>} : memref<2x2880xbf16, #tpu.memory_space<vmem>>, vector<1x90xbf16>,
    %c14 = arith.constant 14 : index
    %c0_102 = arith.constant 0 : index
    %119 = vector.load %arg10[%c14, %c0_102] : memref<32x180xbf16, #tpu.memory_space<vmem>>, vector<1x90xbf16>
    %c0_103 = arith.constant 0 : index
    %c1260 = arith.constant 1260 : index
    %120 = vector.load %arg11[%c0_103, %c1260] : memref<2x2880xbf16, #tpu.memory_space<vmem>>, vector<1x90xbf16>
    tpu.vector_store %arg11[%c0_103, %c1260], %119 {strides = array<i32>} : memref<2x2880xbf16, #tpu.memory_space<vmem>>, vector<1x90xbf16>,
    %c15 = arith.constant 15 : index
    %c0_104 = arith.constant 0 : index
    %121 = vector.load %arg10[%c15, %c0_104] : memref<32x180xbf16, #tpu.memory_space<vmem>>, vector<1x90xbf16>
    %c0_105 = arith.constant 0 : index
    %c1350 = arith.constant 1350 : index
    %122 = vector.load %arg11[%c0_105, %c1350] : memref<2x2880xbf16, #tpu.memory_space<vmem>>, vector<1x90xbf16>
    tpu.vector_store %arg11[%c0_105, %c1350], %121 {strides = array<i32>} : memref<2x2880xbf16, #tpu.memory_space<vmem>>, vector<1x90xbf16>,
    %c16 = arith.constant 16 : index
    %c0_106 = arith.constant 0 : index
    %123 = vector.load %arg10[%c16, %c0_106] : memref<32x180xbf16, #tpu.memory_space<vmem>>, vector<1x90xbf16>
    %c0_107 = arith.constant 0 : index
    %c1440 = arith.constant 1440 : index
    %124 = vector.load %arg11[%c0_107, %c1440] : memref<2x2880xbf16, #tpu.memory_space<vmem>>, vector<1x90xbf16>
    tpu.vector_store %arg11[%c0_107, %c1440], %123 {strides = array<i32>} : memref<2x2880xbf16, #tpu.memory_space<vmem>>, vector<1x90xbf16>,
    %c17 = arith.constant 17 : index
    %c0_108 = arith.constant 0 : index
    %125 = vector.load %arg10[%c17, %c0_108] : memref<32x180xbf16, #tpu.memory_space<vmem>>, vector<1x90xbf16>
    %c0_109 = arith.constant 0 : index
    %c1530 = arith.constant 1530 : index
    %126 = vector.load %arg11[%c0_109, %c1530] : memref<2x2880xbf16, #tpu.memory_space<vmem>>, vector<1x90xbf16>
    tpu.vector_store %arg11[%c0_109, %c1530], %125 {strides = array<i32>} : memref<2x2880xbf16, #tpu.memory_space<vmem>>, vector<1x90xbf16>,
    %c18 = arith.constant 18 : index
    %c0_110 = arith.constant 0 : index
    %127 = vector.load %arg10[%c18, %c0_110] : memref<32x180xbf16, #tpu.memory_space<vmem>>, vector<1x90xbf16>
    %c0_111 = arith.constant 0 : index
    %c1620 = arith.constant 1620 : index
    %128 = vector.load %arg11[%c0_111, %c1620] : memref<2x2880xbf16, #tpu.memory_space<vmem>>, vector<1x90xbf16>
    tpu.vector_store %arg11[%c0_111, %c1620], %127 {strides = array<i32>} : memref<2x2880xbf16, #tpu.memory_space<vmem>>, vector<1x90xbf16>,
    %c19 = arith.constant 19 : index
    %c0_112 = arith.constant 0 : index
    %129 = vector.load %arg10[%c19, %c0_112] : memref<32x180xbf16, #tpu.memory_space<vmem>>, vector<1x90xbf16>
    %c0_113 = arith.constant 0 : index
    %c1710 = arith.constant 1710 : index
    %130 = vector.load %arg11[%c0_113, %c1710] : memref<2x2880xbf16, #tpu.memory_space<vmem>>, vector<1x90xbf16>
    tpu.vector_store %arg11[%c0_113, %c1710], %129 {strides = array<i32>} : memref<2x2880xbf16, #tpu.memory_space<vmem>>, vector<1x90xbf16>,
    %c20 = arith.constant 20 : index
    %c0_114 = arith.constant 0 : index
    %131 = vector.load %arg10[%c20, %c0_114] : memref<32x180xbf16, #tpu.memory_space<vmem>>, vector<1x90xbf16>
    %c0_115 = arith.constant 0 : index
    %c1800 = arith.constant 1800 : index
    %132 = vector.load %arg11[%c0_115, %c1800] : memref<2x2880xbf16, #tpu.memory_space<vmem>>, vector<1x90xbf16>
    tpu.vector_store %arg11[%c0_115, %c1800], %131 {strides = array<i32>} : memref<2x2880xbf16, #tpu.memory_space<vmem>>, vector<1x90xbf16>,
    %c21 = arith.constant 21 : index
    %c0_116 = arith.constant 0 : index
    %133 = vector.load %arg10[%c21, %c0_116] : memref<32x180xbf16, #tpu.memory_space<vmem>>, vector<1x90xbf16>
    %c0_117 = arith.constant 0 : index
    %c1890 = arith.constant 1890 : index
    %134 = vector.load %arg11[%c0_117, %c1890] : memref<2x2880xbf16, #tpu.memory_space<vmem>>, vector<1x90xbf16>
    tpu.vector_store %arg11[%c0_117, %c1890], %133 {strides = array<i32>} : memref<2x2880xbf16, #tpu.memory_space<vmem>>, vector<1x90xbf16>,
    %c22 = arith.constant 22 : index
    %c0_118 = arith.constant 0 : index
    %135 = vector.load %arg10[%c22, %c0_118] : memref<32x180xbf16, #tpu.memory_space<vmem>>, vector<1x90xbf16>
    %c0_119 = arith.constant 0 : index
    %c1980 = arith.constant 1980 : index
    %136 = vector.load %arg11[%c0_119, %c1980] : memref<2x2880xbf16, #tpu.memory_space<vmem>>, vector<1x90xbf16>
    tpu.vector_store %arg11[%c0_119, %c1980], %135 {strides = array<i32>} : memref<2x2880xbf16, #tpu.memory_space<vmem>>, vector<1x90xbf16>,
    %c23 = arith.constant 23 : index
    %c0_120 = arith.constant 0 : index
    %137 = vector.load %arg10[%c23, %c0_120] : memref<32x180xbf16, #tpu.memory_space<vmem>>, vector<1x90xbf16>
    %c0_121 = arith.constant 0 : index
    %c2070 = arith.constant 2070 : index
    %138 = vector.load %arg11[%c0_121, %c2070] : memref<2x2880xbf16, #tpu.memory_space<vmem>>, vector<1x90xbf16>
    tpu.vector_store %arg11[%c0_121, %c2070], %137 {strides = array<i32>} : memref<2x2880xbf16, #tpu.memory_space<vmem>>, vector<1x90xbf16>,
    %c24 = arith.constant 24 : index
    %c0_122 = arith.constant 0 : index
    %139 = vector.load %arg10[%c24, %c0_122] : memref<32x180xbf16, #tpu.memory_space<vmem>>, vector<1x90xbf16>
    %c0_123 = arith.constant 0 : index
    %c2160 = arith.constant 2160 : index
    %140 = vector.load %arg11[%c0_123, %c2160] : memref<2x2880xbf16, #tpu.memory_space<vmem>>, vector<1x90xbf16>
    tpu.vector_store %arg11[%c0_123, %c2160], %139 {strides = array<i32>} : memref<2x2880xbf16, #tpu.memory_space<vmem>>, vector<1x90xbf16>,
    %c25 = arith.constant 25 : index
    %c0_124 = arith.constant 0 : index
    %141 = vector.load %arg10[%c25, %c0_124] : memref<32x180xbf16, #tpu.memory_space<vmem>>, vector<1x90xbf16>
    %c0_125 = arith.constant 0 : index
    %c2250 = arith.constant 2250 : index
    %142 = vector.load %arg11[%c0_125, %c2250] : memref<2x2880xbf16, #tpu.memory_space<vmem>>, vector<1x90xbf16>
    tpu.vector_store %arg11[%c0_125, %c2250], %141 {strides = array<i32>} : memref<2x2880xbf16, #tpu.memory_space<vmem>>, vector<1x90xbf16>,
    %c26 = arith.constant 26 : index
    %c0_126 = arith.constant 0 : index
    %143 = vector.load %arg10[%c26, %c0_126] : memref<32x180xbf16, #tpu.memory_space<vmem>>, vector<1x90xbf16>
    %c0_127 = arith.constant 0 : index
    %c2340 = arith.constant 2340 : index
    %144 = vector.load %arg11[%c0_127, %c2340] : memref<2x2880xbf16, #tpu.memory_space<vmem>>, vector<1x90xbf16>
    tpu.vector_store %arg11[%c0_127, %c2340], %143 {strides = array<i32>} : memref<2x2880xbf16, #tpu.memory_space<vmem>>, vector<1x90xbf16>,
    %c27 = arith.constant 27 : index
    %c0_128 = arith.constant 0 : index
    %145 = vector.load %arg10[%c27, %c0_128] : memref<32x180xbf16, #tpu.memory_space<vmem>>, vector<1x90xbf16>
    %c0_129 = arith.constant 0 : index
    %c2430 = arith.constant 2430 : index
    %146 = vector.load %arg11[%c0_129, %c2430] : memref<2x2880xbf16, #tpu.memory_space<vmem>>, vector<1x90xbf16>
    tpu.vector_store %arg11[%c0_129, %c2430], %145 {strides = array<i32>} : memref<2x2880xbf16, #tpu.memory_space<vmem>>, vector<1x90xbf16>,
    %c28 = arith.constant 28 : index
    %c0_130 = arith.constant 0 : index
    %147 = vector.load %arg10[%c28, %c0_130] : memref<32x180xbf16, #tpu.memory_space<vmem>>, vector<1x90xbf16>
    %c0_131 = arith.constant 0 : index
    %c2520 = arith.constant 2520 : index
    %148 = vector.load %arg11[%c0_131, %c2520] : memref<2x2880xbf16, #tpu.memory_space<vmem>>, vector<1x90xbf16>
    tpu.vector_store %arg11[%c0_131, %c2520], %147 {strides = array<i32>} : memref<2x2880xbf16, #tpu.memory_space<vmem>>, vector<1x90xbf16>,
    %c29 = arith.constant 29 : index
    %c0_132 = arith.constant 0 : index
    %149 = vector.load %arg10[%c29, %c0_132] : memref<32x180xbf16, #tpu.memory_space<vmem>>, vector<1x90xbf16>
    %c0_133 = arith.constant 0 : index
    %c2610 = arith.constant 2610 : index
    %150 = vector.load %arg11[%c0_133, %c2610] : memref<2x2880xbf16, #tpu.memory_space<vmem>>, vector<1x90xbf16>
    tpu.vector_store %arg11[%c0_133, %c2610], %149 {strides = array<i32>} : memref<2x2880xbf16, #tpu.memory_space<vmem>>, vector<1x90xbf16>,
    %c30 = arith.constant 30 : index
    %c0_134 = arith.constant 0 : index
    %151 = vector.load %arg10[%c30, %c0_134] : memref<32x180xbf16, #tpu.memory_space<vmem>>, vector<1x90xbf16>
    %c0_135 = arith.constant 0 : index
    %c2700 = arith.constant 2700 : index
    %152 = vector.load %arg11[%c0_135, %c2700] : memref<2x2880xbf16, #tpu.memory_space<vmem>>, vector<1x90xbf16>
    tpu.vector_store %arg11[%c0_135, %c2700], %151 {strides = array<i32>} : memref<2x2880xbf16, #tpu.memory_space<vmem>>, vector<1x90xbf16>,
    %c31 = arith.constant 31 : index
    %c0_136 = arith.constant 0 : index
    %153 = vector.load %arg10[%c31, %c0_136] : memref<32x180xbf16, #tpu.memory_space<vmem>>, vector<1x90xbf16>
    %c0_137 = arith.constant 0 : index
    %c2790 = arith.constant 2790 : index
    %154 = vector.load %arg11[%c0_137, %c2790] : memref<2x2880xbf16, #tpu.memory_space<vmem>>, vector<1x90xbf16>
    tpu.vector_store %arg11[%c0_137, %c2790], %153 {strides = array<i32>} : memref<2x2880xbf16, #tpu.memory_space<vmem>>, vector<1x90xbf16>,
    %c0_138 = arith.constant 0 : index
    %c90_139 = arith.constant 90 : index
    %155 = vector.load %arg10[%c0_138, %c90_139] : memref<32x180xbf16, #tpu.memory_space<vmem>>, vector<1x90xbf16>
    %c1_140 = arith.constant 1 : index
    %c0_141 = arith.constant 0 : index
    %156 = vector.load %arg11[%c1_140, %c0_141] : memref<2x2880xbf16, #tpu.memory_space<vmem>>, vector<1x90xbf16>
    tpu.vector_store %arg11[%c1_140, %c0_141], %155 {strides = array<i32>} : memref<2x2880xbf16, #tpu.memory_space<vmem>>, vector<1x90xbf16>,
    %c1_142 = arith.constant 1 : index
    %c90_143 = arith.constant 90 : index
    %157 = vector.load %arg10[%c1_142, %c90_143] : memref<32x180xbf16, #tpu.memory_space<vmem>>, vector<1x90xbf16>
    %c1_144 = arith.constant 1 : index
    %c90_145 = arith.constant 90 : index
    %158 = vector.load %arg11[%c1_144, %c90_145] : memref<2x2880xbf16, #tpu.memory_space<vmem>>, vector<1x90xbf16>
    tpu.vector_store %arg11[%c1_144, %c90_145], %157 {strides = array<i32>} : memref<2x2880xbf16, #tpu.memory_space<vmem>>, vector<1x90xbf16>,
    %c2_146 = arith.constant 2 : index
    %c90_147 = arith.constant 90 : index
    %159 = vector.load %arg10[%c2_146, %c90_147] : memref<32x180xbf16, #tpu.memory_space<vmem>>, vector<1x90xbf16>
    %c1_148 = arith.constant 1 : index
    %c180_149 = arith.constant 180 : index
    %160 = vector.load %arg11[%c1_148, %c180_149] : memref<2x2880xbf16, #tpu.memory_space<vmem>>, vector<1x90xbf16>
    tpu.vector_store %arg11[%c1_148, %c180_149], %159 {strides = array<i32>} : memref<2x2880xbf16, #tpu.memory_space<vmem>>, vector<1x90xbf16>,
    %c3_150 = arith.constant 3 : index
    %c90_151 = arith.constant 90 : index
    %161 = vector.load %arg10[%c3_150, %c90_151] : memref<32x180xbf16, #tpu.memory_space<vmem>>, vector<1x90xbf16>
    %c1_152 = arith.constant 1 : index
    %c270_153 = arith.constant 270 : index
    %162 = vector.load %arg11[%c1_152, %c270_153] : memref<2x2880xbf16, #tpu.memory_space<vmem>>, vector<1x90xbf16>
    tpu.vector_store %arg11[%c1_152, %c270_153], %161 {strides = array<i32>} : memref<2x2880xbf16, #tpu.memory_space<vmem>>, vector<1x90xbf16>,
    %c4_154 = arith.constant 4 : index
    %c90_155 = arith.constant 90 : index
    %163 = vector.load %arg10[%c4_154, %c90_155] : memref<32x180xbf16, #tpu.memory_space<vmem>>, vector<1x90xbf16>
    %c1_156 = arith.constant 1 : index
    %c360_157 = arith.constant 360 : index
    %164 = vector.load %arg11[%c1_156, %c360_157] : memref<2x2880xbf16, #tpu.memory_space<vmem>>, vector<1x90xbf16>
    tpu.vector_store %arg11[%c1_156, %c360_157], %163 {strides = array<i32>} : memref<2x2880xbf16, #tpu.memory_space<vmem>>, vector<1x90xbf16>,
    %c5_158 = arith.constant 5 : index
    %c90_159 = arith.constant 90 : index
    %165 = vector.load %arg10[%c5_158, %c90_159] : memref<32x180xbf16, #tpu.memory_space<vmem>>, vector<1x90xbf16>
    %c1_160 = arith.constant 1 : index
    %c450_161 = arith.constant 450 : index
    %166 = vector.load %arg11[%c1_160, %c450_161] : memref<2x2880xbf16, #tpu.memory_space<vmem>>, vector<1x90xbf16>
    tpu.vector_store %arg11[%c1_160, %c450_161], %165 {strides = array<i32>} : memref<2x2880xbf16, #tpu.memory_space<vmem>>, vector<1x90xbf16>,
    %c6_162 = arith.constant 6 : index
    %c90_163 = arith.constant 90 : index
    %167 = vector.load %arg10[%c6_162, %c90_163] : memref<32x180xbf16, #tpu.memory_space<vmem>>, vector<1x90xbf16>
    %c1_164 = arith.constant 1 : index
    %c540_165 = arith.constant 540 : index
    %168 = vector.load %arg11[%c1_164, %c540_165] : memref<2x2880xbf16, #tpu.memory_space<vmem>>, vector<1x90xbf16>
    tpu.vector_store %arg11[%c1_164, %c540_165], %167 {strides = array<i32>} : memref<2x2880xbf16, #tpu.memory_space<vmem>>, vector<1x90xbf16>,
    %c7_166 = arith.constant 7 : index
    %c90_167 = arith.constant 90 : index
    %169 = vector.load %arg10[%c7_166, %c90_167] : memref<32x180xbf16, #tpu.memory_space<vmem>>, vector<1x90xbf16>
    %c1_168 = arith.constant 1 : index
    %c630_169 = arith.constant 630 : index
    %170 = vector.load %arg11[%c1_168, %c630_169] : memref<2x2880xbf16, #tpu.memory_space<vmem>>, vector<1x90xbf16>
    tpu.vector_store %arg11[%c1_168, %c630_169], %169 {strides = array<i32>} : memref<2x2880xbf16, #tpu.memory_space<vmem>>, vector<1x90xbf16>,
    %c8_170 = arith.constant 8 : index
    %c90_171 = arith.constant 90 : index
    %171 = vector.load %arg10[%c8_170, %c90_171] : memref<32x180xbf16, #tpu.memory_space<vmem>>, vector<1x90xbf16>
    %c1_172 = arith.constant 1 : index
    %c720_173 = arith.constant 720 : index
    %172 = vector.load %arg11[%c1_172, %c720_173] : memref<2x2880xbf16, #tpu.memory_space<vmem>>, vector<1x90xbf16>
    tpu.vector_store %arg11[%c1_172, %c720_173], %171 {strides = array<i32>} : memref<2x2880xbf16, #tpu.memory_space<vmem>>, vector<1x90xbf16>,
    %c9_174 = arith.constant 9 : index
    %c90_175 = arith.constant 90 : index
    %173 = vector.load %arg10[%c9_174, %c90_175] : memref<32x180xbf16, #tpu.memory_space<vmem>>, vector<1x90xbf16>
    %c1_176 = arith.constant 1 : index
    %c810_177 = arith.constant 810 : index
    %174 = vector.load %arg11[%c1_176, %c810_177] : memref<2x2880xbf16, #tpu.memory_space<vmem>>, vector<1x90xbf16>
    tpu.vector_store %arg11[%c1_176, %c810_177], %173 {strides = array<i32>} : memref<2x2880xbf16, #tpu.memory_space<vmem>>, vector<1x90xbf16>,
    %c10_178 = arith.constant 10 : index
    %c90_179 = arith.constant 90 : index
    %175 = vector.load %arg10[%c10_178, %c90_179] : memref<32x180xbf16, #tpu.memory_space<vmem>>, vector<1x90xbf16>
    %c1_180 = arith.constant 1 : index
    %c900_181 = arith.constant 900 : index
    %176 = vector.load %arg11[%c1_180, %c900_181] : memref<2x2880xbf16, #tpu.memory_space<vmem>>, vector<1x90xbf16>
    tpu.vector_store %arg11[%c1_180, %c900_181], %175 {strides = array<i32>} : memref<2x2880xbf16, #tpu.memory_space<vmem>>, vector<1x90xbf16>,
    %c11_182 = arith.constant 11 : index
    %c90_183 = arith.constant 90 : index
    %177 = vector.load %arg10[%c11_182, %c90_183] : memref<32x180xbf16, #tpu.memory_space<vmem>>, vector<1x90xbf16>
    %c1_184 = arith.constant 1 : index
    %c990_185 = arith.constant 990 : index
    %178 = vector.load %arg11[%c1_184, %c990_185] : memref<2x2880xbf16, #tpu.memory_space<vmem>>, vector<1x90xbf16>
    tpu.vector_store %arg11[%c1_184, %c990_185], %177 {strides = array<i32>} : memref<2x2880xbf16, #tpu.memory_space<vmem>>, vector<1x90xbf16>,
    %c12_186 = arith.constant 12 : index
    %c90_187 = arith.constant 90 : index
    %179 = vector.load %arg10[%c12_186, %c90_187] : memref<32x180xbf16, #tpu.memory_space<vmem>>, vector<1x90xbf16>
    %c1_188 = arith.constant 1 : index
    %c1080_189 = arith.constant 1080 : index
    %180 = vector.load %arg11[%c1_188, %c1080_189] : memref<2x2880xbf16, #tpu.memory_space<vmem>>, vector<1x90xbf16>
    tpu.vector_store %arg11[%c1_188, %c1080_189], %179 {strides = array<i32>} : memref<2x2880xbf16, #tpu.memory_space<vmem>>, vector<1x90xbf16>,
    %c13_190 = arith.constant 13 : index
    %c90_191 = arith.constant 90 : index
    %181 = vector.load %arg10[%c13_190, %c90_191] : memref<32x180xbf16, #tpu.memory_space<vmem>>, vector<1x90xbf16>
    %c1_192 = arith.constant 1 : index
    %c1170_193 = arith.constant 1170 : index
    %182 = vector.load %arg11[%c1_192, %c1170_193] : memref<2x2880xbf16, #tpu.memory_space<vmem>>, vector<1x90xbf16>
    tpu.vector_store %arg11[%c1_192, %c1170_193], %181 {strides = array<i32>} : memref<2x2880xbf16, #tpu.memory_space<vmem>>, vector<1x90xbf16>,
    %c14_194 = arith.constant 14 : index
    %c90_195 = arith.constant 90 : index
    %183 = vector.load %arg10[%c14_194, %c90_195] : memref<32x180xbf16, #tpu.memory_space<vmem>>, vector<1x90xbf16>
    %c1_196 = arith.constant 1 : index
    %c1260_197 = arith.constant 1260 : index
    %184 = vector.load %arg11[%c1_196, %c1260_197] : memref<2x2880xbf16, #tpu.memory_space<vmem>>, vector<1x90xbf16>
    tpu.vector_store %arg11[%c1_196, %c1260_197], %183 {strides = array<i32>} : memref<2x2880xbf16, #tpu.memory_space<vmem>>, vector<1x90xbf16>,
    %c15_198 = arith.constant 15 : index
    %c90_199 = arith.constant 90 : index
    %185 = vector.load %arg10[%c15_198, %c90_199] : memref<32x180xbf16, #tpu.memory_space<vmem>>, vector<1x90xbf16>
    %c1_200 = arith.constant 1 : index
    %c1350_201 = arith.constant 1350 : index
    %186 = vector.load %arg11[%c1_200, %c1350_201] : memref<2x2880xbf16, #tpu.memory_space<vmem>>, vector<1x90xbf16>
    tpu.vector_store %arg11[%c1_200, %c1350_201], %185 {strides = array<i32>} : memref<2x2880xbf16, #tpu.memory_space<vmem>>, vector<1x90xbf16>,
    %c16_202 = arith.constant 16 : index
    %c90_203 = arith.constant 90 : index
    %187 = vector.load %arg10[%c16_202, %c90_203] : memref<32x180xbf16, #tpu.memory_space<vmem>>, vector<1x90xbf16>
    %c1_204 = arith.constant 1 : index
    %c1440_205 = arith.constant 1440 : index
    %188 = vector.load %arg11[%c1_204, %c1440_205] : memref<2x2880xbf16, #tpu.memory_space<vmem>>, vector<1x90xbf16>
    tpu.vector_store %arg11[%c1_204, %c1440_205], %187 {strides = array<i32>} : memref<2x2880xbf16, #tpu.memory_space<vmem>>, vector<1x90xbf16>,
    %c17_206 = arith.constant 17 : index
    %c90_207 = arith.constant 90 : index
    %189 = vector.load %arg10[%c17_206, %c90_207] : memref<32x180xbf16, #tpu.memory_space<vmem>>, vector<1x90xbf16>
    %c1_208 = arith.constant 1 : index
    %c1530_209 = arith.constant 1530 : index
    %190 = vector.load %arg11[%c1_208, %c1530_209] : memref<2x2880xbf16, #tpu.memory_space<vmem>>, vector<1x90xbf16>
    tpu.vector_store %arg11[%c1_208, %c1530_209], %189 {strides = array<i32>} : memref<2x2880xbf16, #tpu.memory_space<vmem>>, vector<1x90xbf16>,
    %c18_210 = arith.constant 18 : index
    %c90_211 = arith.constant 90 : index
    %191 = vector.load %arg10[%c18_210, %c90_211] : memref<32x180xbf16, #tpu.memory_space<vmem>>, vector<1x90xbf16>
    %c1_212 = arith.constant 1 : index
    %c1620_213 = arith.constant 1620 : index
    %192 = vector.load %arg11[%c1_212, %c1620_213] : memref<2x2880xbf16, #tpu.memory_space<vmem>>, vector<1x90xbf16>
    tpu.vector_store %arg11[%c1_212, %c1620_213], %191 {strides = array<i32>} : memref<2x2880xbf16, #tpu.memory_space<vmem>>, vector<1x90xbf16>,
    %c19_214 = arith.constant 19 : index
    %c90_215 = arith.constant 90 : index
    %193 = vector.load %arg10[%c19_214, %c90_215] : memref<32x180xbf16, #tpu.memory_space<vmem>>, vector<1x90xbf16>
    %c1_216 = arith.constant 1 : index
    %c1710_217 = arith.constant 1710 : index
    %194 = vector.load %arg11[%c1_216, %c1710_217] : memref<2x2880xbf16, #tpu.memory_space<vmem>>, vector<1x90xbf16>
    tpu.vector_store %arg11[%c1_216, %c1710_217], %193 {strides = array<i32>} : memref<2x2880xbf16, #tpu.memory_space<vmem>>, vector<1x90xbf16>,
    %c20_218 = arith.constant 20 : index
    %c90_219 = arith.constant 90 : index
    %195 = vector.load %arg10[%c20_218, %c90_219] : memref<32x180xbf16, #tpu.memory_space<vmem>>, vector<1x90xbf16>
    %c1_220 = arith.constant 1 : index
    %c1800_221 = arith.constant 1800 : index
    %196 = vector.load %arg11[%c1_220, %c1800_221] : memref<2x2880xbf16, #tpu.memory_space<vmem>>, vector<1x90xbf16>
    tpu.vector_store %arg11[%c1_220, %c1800_221], %195 {strides = array<i32>} : memref<2x2880xbf16, #tpu.memory_space<vmem>>, vector<1x90xbf16>,
    %c21_222 = arith.constant 21 : index
    %c90_223 = arith.constant 90 : index
    %197 = vector.load %arg10[%c21_222, %c90_223] : memref<32x180xbf16, #tpu.memory_space<vmem>>, vector<1x90xbf16>
    %c1_224 = arith.constant 1 : index
    %c1890_225 = arith.constant 1890 : index
    %198 = vector.load %arg11[%c1_224, %c1890_225] : memref<2x2880xbf16, #tpu.memory_space<vmem>>, vector<1x90xbf16>
    tpu.vector_store %arg11[%c1_224, %c1890_225], %197 {strides = array<i32>} : memref<2x2880xbf16, #tpu.memory_space<vmem>>, vector<1x90xbf16>,
    %c22_226 = arith.constant 22 : index
    %c90_227 = arith.constant 90 : index
    %199 = vector.load %arg10[%c22_226, %c90_227] : memref<32x180xbf16, #tpu.memory_space<vmem>>, vector<1x90xbf16>
    %c1_228 = arith.constant 1 : index
    %c1980_229 = arith.constant 1980 : index
    %200 = vector.load %arg11[%c1_228, %c1980_229] : memref<2x2880xbf16, #tpu.memory_space<vmem>>, vector<1x90xbf16>
    tpu.vector_store %arg11[%c1_228, %c1980_229], %199 {strides = array<i32>} : memref<2x2880xbf16, #tpu.memory_space<vmem>>, vector<1x90xbf16>,
    %c23_230 = arith.constant 23 : index
    %c90_231 = arith.constant 90 : index
    %201 = vector.load %arg10[%c23_230, %c90_231] : memref<32x180xbf16, #tpu.memory_space<vmem>>, vector<1x90xbf16>
    %c1_232 = arith.constant 1 : index
    %c2070_233 = arith.constant 2070 : index
    %202 = vector.load %arg11[%c1_232, %c2070_233] : memref<2x2880xbf16, #tpu.memory_space<vmem>>, vector<1x90xbf16>
    tpu.vector_store %arg11[%c1_232, %c2070_233], %201 {strides = array<i32>} : memref<2x2880xbf16, #tpu.memory_space<vmem>>, vector<1x90xbf16>,
    %c24_234 = arith.constant 24 : index
    %c90_235 = arith.constant 90 : index
    %203 = vector.load %arg10[%c24_234, %c90_235] : memref<32x180xbf16, #tpu.memory_space<vmem>>, vector<1x90xbf16>
    %c1_236 = arith.constant 1 : index
    %c2160_237 = arith.constant 2160 : index
    %204 = vector.load %arg11[%c1_236, %c2160_237] : memref<2x2880xbf16, #tpu.memory_space<vmem>>, vector<1x90xbf16>
    tpu.vector_store %arg11[%c1_236, %c2160_237], %203 {strides = array<i32>} : memref<2x2880xbf16, #tpu.memory_space<vmem>>, vector<1x90xbf16>,
    %c25_238 = arith.constant 25 : index
    %c90_239 = arith.constant 90 : index
    %205 = vector.load %arg10[%c25_238, %c90_239] : memref<32x180xbf16, #tpu.memory_space<vmem>>, vector<1x90xbf16>
    %c1_240 = arith.constant 1 : index
    %c2250_241 = arith.constant 2250 : index
    %206 = vector.load %arg11[%c1_240, %c2250_241] : memref<2x2880xbf16, #tpu.memory_space<vmem>>, vector<1x90xbf16>
    tpu.vector_store %arg11[%c1_240, %c2250_241], %205 {strides = array<i32>} : memref<2x2880xbf16, #tpu.memory_space<vmem>>, vector<1x90xbf16>,
    %c26_242 = arith.constant 26 : index
    %c90_243 = arith.constant 90 : index
    %207 = vector.load %arg10[%c26_242, %c90_243] : memref<32x180xbf16, #tpu.memory_space<vmem>>, vector<1x90xbf16>
    %c1_244 = arith.constant 1 : index
    %c2340_245 = arith.constant 2340 : index
    %208 = vector.load %arg11[%c1_244, %c2340_245] : memref<2x2880xbf16, #tpu.memory_space<vmem>>, vector<1x90xbf16>
    tpu.vector_store %arg11[%c1_244, %c2340_245], %207 {strides = array<i32>} : memref<2x2880xbf16, #tpu.memory_space<vmem>>, vector<1x90xbf16>,
    %c27_246 = arith.constant 27 : index
    %c90_247 = arith.constant 90 : index
    %209 = vector.load %arg10[%c27_246, %c90_247] : memref<32x180xbf16, #tpu.memory_space<vmem>>, vector<1x90xbf16>
    %c1_248 = arith.constant 1 : index
    %c2430_249 = arith.constant 2430 : index
    %210 = vector.load %arg11[%c1_248, %c2430_249] : memref<2x2880xbf16, #tpu.memory_space<vmem>>, vector<1x90xbf16>
    tpu.vector_store %arg11[%c1_248, %c2430_249], %209 {strides = array<i32>} : memref<2x2880xbf16, #tpu.memory_space<vmem>>, vector<1x90xbf16>,
    %c28_250 = arith.constant 28 : index
    %c90_251 = arith.constant 90 : index
    %211 = vector.load %arg10[%c28_250, %c90_251] : memref<32x180xbf16, #tpu.memory_space<vmem>>, vector<1x90xbf16>
    %c1_252 = arith.constant 1 : index
    %c2520_253 = arith.constant 2520 : index
    %212 = vector.load %arg11[%c1_252, %c2520_253] : memref<2x2880xbf16, #tpu.memory_space<vmem>>, vector<1x90xbf16>
    tpu.vector_store %arg11[%c1_252, %c2520_253], %211 {strides = array<i32>} : memref<2x2880xbf16, #tpu.memory_space<vmem>>, vector<1x90xbf16>,
    %c29_254 = arith.constant 29 : index
    %c90_255 = arith.constant 90 : index
    %213 = vector.load %arg10[%c29_254, %c90_255] : memref<32x180xbf16, #tpu.memory_space<vmem>>, vector<1x90xbf16>
    %c1_256 = arith.constant 1 : index
    %c2610_257 = arith.constant 2610 : index
    %214 = vector.load %arg11[%c1_256, %c2610_257] : memref<2x2880xbf16, #tpu.memory_space<vmem>>, vector<1x90xbf16>
    tpu.vector_store %arg11[%c1_256, %c2610_257], %213 {strides = array<i32>} : memref<2x2880xbf16, #tpu.memory_space<vmem>>, vector<1x90xbf16>,
    %c30_258 = arith.constant 30 : index
    %c90_259 = arith.constant 90 : index
    %215 = vector.load %arg10[%c30_258, %c90_259] : memref<32x180xbf16, #tpu.memory_space<vmem>>, vector<1x90xbf16>
    %c1_260 = arith.constant 1 : index
    %c2700_261 = arith.constant 2700 : index
    %216 = vector.load %arg11[%c1_260, %c2700_261] : memref<2x2880xbf16, #tpu.memory_space<vmem>>, vector<1x90xbf16>
    tpu.vector_store %arg11[%c1_260, %c2700_261], %215 {strides = array<i32>} : memref<2x2880xbf16, #tpu.memory_space<vmem>>, vector<1x90xbf16>,
    %c31_262 = arith.constant 31 : index
    %c90_263 = arith.constant 90 : index
    %217 = vector.load %arg10[%c31_262, %c90_263] : memref<32x180xbf16, #tpu.memory_space<vmem>>, vector<1x90xbf16>
    %c1_264 = arith.constant 1 : index
    %c2790_265 = arith.constant 2790 : index
    %218 = vector.load %arg11[%c1_264, %c2790_265] : memref<2x2880xbf16, #tpu.memory_space<vmem>>, vector<1x90xbf16>
    tpu.vector_store %arg11[%c1_264, %c2790_265], %217 {strides = array<i32>} : memref<2x2880xbf16, #tpu.memory_space<vmem>>, vector<1x90xbf16>,
    %c0_266 = arith.constant 0 : index
    %c0_267 = arith.constant 0 : index
    %219 = vector.load %arg11[%c0_266, %c0_267] : memref<2x2880xbf16, #tpu.memory_space<vmem>>, vector<2x2880xbf16>
    %c0_268 = arith.constant 0 : index
    %c0_269 = arith.constant 0 : index
    %220 = vector.load %arg5[%c0_268, %c0_269] : memref<2880x16xbf16, #tpu.memory_space<vmem>>, vector<2880x16xbf16>
    %cst_270 = arith.constant dense<0.000000e+00> : vector<2x16xf32>
    %221 = tpu.matmul %219, %220, %cst_270 {dimension_numbers = #tpu.dot_dimension_numbers<[1], [0], [0], [1], [0, 0, 1, 1], [], []>} : vector<2x2880xbf16>, vector<2880x16xbf16>, vector<2x16xf32> -> vector<2x16xf32>
    %c0_271 = arith.constant 0 : index
    %c0_272 = arith.constant 0 : index
    %222 = vector.load %arg6[%c0_271, %c0_272] : memref<1x16xf32, #tpu.memory_space<vmem>>, vector<1x16xf32>
    %223 = vector.broadcast %222 : vector<1x16xf32> to vector<2x16xf32>
    %224 = arith.addf %221, %223 : vector<2x16xf32>
    %c0_273 = arith.constant 0 : index
    %c0_274 = arith.constant 0 : index
    %225 = vector.load %arg7[%c0_273, %c0_274] : memref<2x16xf32, #tpu.memory_space<vmem>>, vector<2x16xf32>
    tpu.vector_store %arg7[%c0_273, %c0_274], %224 {strides = array<i32>} : memref<2x16xf32, #tpu.memory_space<vmem>>, vector<2x16xf32>,
    return
  }
  func.func @transform_0(%arg0: i32) -> (i32, i32) {
    %c0_i32 = arith.constant 0 : i32
    %c0_i32_0 = arith.constant 0 : i32
    %c0_i32_1 = arith.constant 0 : i32
    return %c0_i32, %c0_i32_0 : i32, i32
  }
  func.func @transform_1(%arg0: i32) -> (i32, i32) {
    %c0_i32 = arith.constant 0 : i32
    %c0_i32_0 = arith.constant 0 : i32
    %c0_i32_1 = arith.constant 0 : i32
    return %c0_i32, %c0_i32_0 : i32, i32
  }
  func.func @transform_2(%arg0: i32) -> (i32, i32) {
    %c0_i32 = arith.constant 0 : i32
    %c0_i32_0 = arith.constant 0 : i32
    %c0_i32_1 = arith.constant 0 : i32
    return %c0_i32, %c0_i32_0 : i32, i32
  }
  func.func @transform_3(%arg0: i32) -> (i32, i32) {
    %c0_i32 = arith.constant 0 : i32
    %c0_i32_0 = arith.constant 0 : i32
    %c0_i32_1 = arith.constant 0 : i32
    return %c0_i32, %c0_i32_0 : i32, i32
  }
  func.func @transform_4(%arg0: i32) -> (i32, i32) {
    %c0_i32 = arith.constant 0 : i32
    %c0_i32_0 = arith.constant 0 : i32
    %c0_i32_1 = arith.constant 0 : i32
    return %c0_i32, %c0_i32_0 : i32, i32
  }
  func.func @transform_5(%arg0: i32) -> (i32, i32) {
    %c0_i32 = arith.constant 0 : i32
    %c0_i32_0 = arith.constant 0 : i32
    %c0_i32_1 = arith.constant 0 : i32
    return %c0_i32, %c0_i32_0 : i32, i32
  }
  func.func @transform_6(%arg0: i32) -> (i32, i32) {
    %c0_i32 = arith.constant 0 : i32
    %c0_i32_0 = arith.constant 0 : i32
    %c0_i32_1 = arith.constant 0 : i32
    return %c0_i32, %c0_i32_0 : i32, i32
  }
}

</mosaic_0001>

<bundles_post_ra>
// kernel: forward.1
= control target key start
LH: loop header
LB: loop body
LE: loop exit
PB: predicated region body
PF: predicated region fallthrough
CT: control target
= control target key end

     0   :  { %vm59_vm0 = vcmask 130048   ;;  %v5907_v11 = vmov 0   ;;  %s8195_s0 = inlined_call_operand.vmem [shape: bf16[16,384], index: 0, kind: input, shape index: {}]   ;;  %s8196_s1 = inlined_call_operand.vmem [shape: bf16[32,16], index: 1, kind: input, shape index: {}]   ;;  %s8197_s2 = inlined_call_operand.vmem [shape: bf16[32,320], index: 2, kind: input, shape index: {}]   ;;  %s8198_s3 = inlined_call_operand.vmem [shape: f32[32,4], index: 3, kind: input, shape index: {}]   ;;  %s8199_s4 = inlined_call_operand.vmem [shape: bf16[2880,16], index: 4, kind: input, shape index: {}]   ;;  %s8200_s5 = inlined_call_operand.vmem [shape: f32[1,16], index: 5, kind: input, shape index: {}]   ;;  %s8201_s6 = inlined_call_operand.hbm [shape: f32[2,16], index: 6, kind: output, shape index: {}]  }
   0x1   :  { %v4592_v0 = vld [vmem:[%s8195_s0] sm:$0xf]  ;;  %v5536_v1 = vld [vmem:[%s8195_s0 + $0x8] sm:$0xf0]  ;;  %v5535_v2 = vld [vmem:[%s8195_s0 + $0x4] sm:$0xf]  ;;  %5809 = vset.pattern.permute.xlu2 %v5907_v11 }
   0x2   :  { %v4593_v3 = vor.u32 %v5536_v1, %v4592_v0  ;;  %v4594_v4 = vld [vmem:[%s8195_s0 + $0xc] sm:$0xf0]  ;;  %v4600_v5 = vld [vmem:[%s8195_s0 + $0x8] sm:$0xf]  ;;  %v5537_v6 = vld [vmem:[%s8195_s0 + $0x10] sm:$0xf0] }
   0x3   :  { %v4597_v7 = vor.u32 %v5535_v2, %v4594_v4  ;;  %v4601_v8 = vor.u32 %v5537_v6, %v4600_v5  ;;  %v5533_v9 = vld [vmem:[%s8196_s1] sm:$0xff]  ;;  %v229_v10 = vld [vmem:[%s8198_s3 + $0x10] sm:$0xff] }
   0x4   :  { %73 = vmatpush.bf16.msra.mxu0 %v4593_v3 }
   0x5   :  { %92 = vmatpush.bf16.msra.mxu1 %v4597_v7  ;;  %111 = vmatpush.bf16.msra.mxu2 %v4601_v8 }
   0x6   :  { %11 = vsyncpa [#allocation7], 0  ;;  %267 = vperm.xlu2 %5809, %v229_v10   ;;  %v5908_v12 = vmov 1   ;;  %v230_v13 = vld [vmem:[%s8198_s3 + $0x18] sm:$0xff]  ;;  %5810 = vset.pattern.permute.xlu0 %v5907_v11  ;;  %v228_v14 = vld [vmem:[%s8198_s3 + $0x8] sm:$0xff]  ;;  %vm370_vm10 = vcmask 764928  }
   0x7   :  { %5811 = vset.pattern.permute.xlu1 %v5908_v12  ;;  %4602 = vmatmul.msk.bf16.vlgmr.msra.gmra.mxu0 %vm59_vm0, %v5533_v9  ;;  %v5534_v15 = vld [vmem:[%s8196_s1 + $0x8] sm:$0xff]  ;;  %v227_v16 = vld [vmem:[%s8198_s3] sm:$0xff]  ;;  %s5909_s1 = smov 32   ;;  %s5910_s20 = smov 33   ;;  %vm335_vm14 = vcmask 3072   ;;  %vm356_vm15 = vcmask 269312  }
   0x8   :  { %296 = vperm.xlu1 %5811, %v229_v10   ;;  %4604 = vmatmul.msk.bf16.vlgmr.msra.gmra.mxu1 %vm59_vm0, %v5533_v9  ;;  %s5911_s21 = smov 65   ;;  %337 = vst.msk [vmem:[#allocation2 + $0x8] sm:$0xf] %vm335_vm14, %v5907_v11  ;;  %s5912_s22 = smov 127  }
   0x9   :  { %4606 = vmatmul.msk.bf16.vlgmr.msra.gmra.mxu2 %vm59_vm0, %v5533_v9  ;;  %272 = vperm.xlu0 %5810, %v230_v13   ;;  %336 = vst.msk [vmem:[#allocation2] sm:$0xf] %vm335_vm14, %v5907_v11  ;;  %s5913_s23 = smov 120   ;;  %s5914_s24 = smov 121  }
   0xa   :  { %338 = vst.msk [vmem:[#allocation2 + $0x10] sm:$0xf] %vm335_vm14, %v5907_v11  ;;  %s5915_s25 = smov 119   ;;  %s5916_s26 = smov 125  }
   0xb   :  { %339 = vst.msk [vmem:[#allocation2 + $0x18] sm:$0xf] %vm335_vm14, %v5907_v11  ;;  %s5917_s27 = smov 122   ;;  %s5918_s28 = smov 126  }
   0xc   :  { %s5919_s29 = smov 118   ;;  %s5920_s30 = smov 124  }
   0xd   :  { %s5924_s15 = smov 90   ;;  %s5925_s16 = smov 38  }
   0xe   :  { %5812 = vset.pattern.permute.xlu2 %v5908_v12  ;;  %s5926_s17 = smov 14   ;;  %s5927_s18 = smov 104  }
   0xf   :  { %300 = vperm.xlu2 %5812, %v230_v13   ;;  %s5928_s19 = smov 66   ;;  %s5938_s7 = smov 84  }
  0x10   :  { %5814 = vset.pattern.permute.xlu1 %v5907_v11  ;;  %s5939_s8 = smov 98   ;;  %s5940_s9 = smov 46  }
  0x11   :  { %262 = vperm.xlu1 %5814, %v228_v14   ;;  %s5941_s10 = smov 8   ;;  %s5945_s11 = smov 74  }
  0x12   :  { %s5946_s12 = smov 36   ;;  %s5947_s0 = smov 88  }
  0x13   :  { %s5950_s13 = smov 12  }
  0x17   :  { %4603 = vmatmul.msk.bf16.gmra.mxu0 %vm59_vm0, %v5534_v15  ;;  %5813 = vset.pattern.permute.xlu2 %v5907_v11 }
  0x18   :  { %4605 = vmatmul.msk.bf16.gmra.mxu1 %vm59_vm0, %v5534_v15  ;;  %257 = vperm.xlu2 %5813, %v227_v16  }
  0x19   :  { %4607 = vmatmul.msk.bf16.gmra.mxu2 %vm59_vm0, %v5534_v15  ;;  %5816 = vset.pattern.permute.xlu1 %v5908_v12  ;;  %vm365_vm0 = vcmask 764936  }
  0x1a   :  { %292 = vperm.xlu1 %5816, %v228_v14  }
  0x20   :  { %5815 = vset.pattern.permute.xlu2 %v5908_v12 }
  0x21   :  { %288 = vperm.xlu2 %5815, %v227_v16  }
  0x60   :  { %v6093_v57 = vpop.permute.xlu2 %267 }
  0x69   :  { %v6095_v58 = vpop.permute.xlu2 %300 }
  0x72   :  { %v258_v59 = vpop.permute.xlu2 %257 }
  0x7a   :  { %v6097_v60 = vpop.permute.xlu1 %296 }
  0x7b   :  { %v6099_v61 = vpop.permute.xlu2 %288  ;;  %v6103_v63 = vpop.permute.xlu0 %272 }
  0x83   :  { %v6101_v62 = vpop.permute.xlu1 %262 }
  0x84   :  { %v6033_v17 = vpop.f32.mrf.mxu0 }
  0x85   :  { %v6035_v18 = vpop.f32.mrf.mxu1  ;;  %v139_v19 = vmul.f32 %v6033_v17, %v6033_v17 }
  0x86   :  { %v140_v20 = vmul.f32 %v6035_v18, %v6035_v18  ;;  %v123_v21 = vadd.f32 %v6035_v18, %v6033_v17 }
  0x88   :  { %v151_v22 = vadd.f32 %v140_v20, %v139_v19 }
  0x8c   :  { %v6043_v23 = vpop.f32.mrf.mxu2  ;;  %v6045_v24 = vpop.f32.mrf.mxu0 }
  0x8d   :  { %v124_v25 = vadd.f32 %v123_v21, %v6043_v23  ;;  %v141_v26 = vmul.f32 %v6043_v23, %v6043_v23  ;;  %v6050_v27 = vpop.f32.mrf.mxu1  ;;  %v142_v29 = vmul.f32 %v6045_v24, %v6045_v24  ;;  %v6105_v2 = vpop.permute.xlu1 %292 }
  0x8e   :  { %v143_v30 = vmul.f32 %v6050_v27, %v6050_v27  ;;  %v127_v31 = vadd.f32 %v6050_v27, %v6045_v24 }
  0x8f   :  { %125 = vadd.xlane.f32.xlu2 %v124_v25  ;;  %v152_v28 = vadd.f32 %v151_v22, %v141_v26 }
  0x90   :  { %v155_v35 = vadd.f32 %v143_v30, %v142_v29 }
  0x91   :  { %153 = vadd.xlane.f32.xlu0 %v152_v28 }
  0x94   :  { %v6058_v32 = vpop.f32.mrf.mxu2  ;;  %v6063_v36 = vpop.f32.mrf.mxu0 }
  0x95   :  { %v128_v33 = vadd.f32 %v127_v31, %v6058_v32  ;;  %v144_v34 = vmul.f32 %v6058_v32, %v6058_v32  ;;  %v6065_v37 = vpop.f32.mrf.mxu1  ;;  %v145_v39 = vmul.f32 %v6063_v36, %v6063_v36 }
  0x96   :  { %v146_v40 = vmul.f32 %v6065_v37, %v6065_v37  ;;  %v131_v41 = vadd.f32 %v6065_v37, %v6063_v36 }
  0x97   :  { %129 = vadd.xlane.f32.xlu2 %v128_v33  ;;  %v156_v38 = vadd.f32 %v155_v35, %v144_v34 }
  0x98   :  { %v159_v42 = vadd.f32 %v146_v40, %v145_v39 }
  0x99   :  { %157 = vadd.xlane.f32.xlu1 %v156_v38 }
  0x9c   :  { %v6073_v43 = vpop.f32.mrf.mxu2  ;;  %v6078_v46 = vpop.f32.mrf.mxu0 }
  0x9d   :  { %v132_v44 = vadd.f32 %v131_v41, %v6073_v43  ;;  %v147_v45 = vmul.f32 %v6073_v43, %v6073_v43  ;;  %v6080_v47 = vpop.f32.mrf.mxu1  ;;  %v148_v49 = vmul.f32 %v6078_v46, %v6078_v46 }
  0x9e   :  { %v149_v50 = vmul.f32 %v6080_v47, %v6080_v47  ;;  %v135_v51 = vadd.f32 %v6080_v47, %v6078_v46 }
  0x9f   :  { %133 = vadd.xlane.f32.xlu0 %v132_v44  ;;  %v160_v48 = vadd.f32 %v159_v42, %v147_v45 }
  0xa0   :  { %v163_v52 = vadd.f32 %v149_v50, %v148_v49 }
  0xa1   :  { %161 = vadd.xlane.f32.xlu1 %v160_v48 }
  0xa4   :  { %v6088_v53 = vpop.f32.mrf.mxu2 }
  0xa5   :  { %v136_v54 = vadd.f32 %v135_v51, %v6088_v53  ;;  %v150_v55 = vmul.f32 %v6088_v53, %v6088_v53 }
  0xa7   :  { %137 = vadd.xlane.f32.xlu0 %v136_v54  ;;  %v164_v56 = vadd.f32 %v163_v52, %v150_v55 }
  0xa9   :  { %165 = vadd.xlane.f32.xlu1 %v164_v56 }
 0x102   :  { %v126_v0 = vpop.xlane.xlu2 %125 }
 0x103   :  { %v167_v1 = vmul.f32 0.0026737968, %v126_v0 }
 0x104   :  { %v154_v3 = vpop.xlane.xlu0 %153 }
 0x105   :  { %v171_v4 = vmul.f32 0.0026737968, %v154_v3  ;;  %v175_v5 = vmul.f32 %v167_v1, %v167_v1  ;;  %v231_v41 = vsub.f32 %v6033_v17, %v167_v1  ;;  %v232_v42 = vsub.f32 %v6035_v18, %v167_v1 }
 0x106   :  { %v233_v45 = vsub.f32 %v6043_v23, %v167_v1 }
 0x107   :  { %v179_v6 = vsub.f32 %v171_v4, %v175_v5 }
 0x109   :  { %v183_v7 = vadd.f32 1e-05, %v179_v6 }
 0x10a   :  { %v130_v8 = vpop.xlane.xlu2 %129 }
 0x10b   :  { %v6107_v9 = vmul.f32 0.0026737968, %v130_v8  ;;  %5825 = vrsqrt.f32 %v183_v7  ;;  %vm193_vm2 = vweird.f32 %v183_v7 }
 0x10c   :  { %v158_v10 = vpop.xlane.xlu1 %157 }
 0x10d   :  { %v172_v12 = vmul.f32 0.0026737968, %v158_v10  ;;  %v176_v13 = vmul.f32 %v6107_v9, %v6107_v9  ;;  %v234_v23 = vsub.f32 %v6045_v24, %v6107_v9 }
 0x10f   :  { %v180_v14 = vsub.f32 %v172_v12, %v176_v13  ;;  %v235_v12 = vsub.f32 %v6050_v27, %v6107_v9  ;;  %v236_v13 = vsub.f32 %v6058_v32, %v6107_v9 }
 0x111   :  { %v5826_v15 = vpop.eup %5825  ;;  %v184_v16 = vadd.f32 1e-05, %v180_v14 }
 0x112   :  { %v134_v19 = vpop.xlane.xlu0 %133  ;;  %v188_v20 = vmul.f32 %v5826_v15, %v183_v7  ;;  %vm194_vm1 = vweird.f32 %v5826_v15 }
 0x113   :  { %v6111_v21 = vmul.f32 0.0026737968, %v134_v19  ;;  %5827 = vrsqrt.f32 %v184_v16  ;;  %vm195_vm3 = vmor %vm193_vm2, %vm194_vm1  ;;  %vm203_vm5 = vweird.f32 %v184_v16  ;;  %vm375_vm1 = vcmask 790272  }
 0x114   :  { %v162_v22 = vpop.xlane.xlu1 %161  ;;  %v189_v25 = vmul.f32 %v5826_v15, %v188_v20  ;;  %vm406_vm2 = vcmask 506884  }
 0x115   :  { %v173_v26 = vmul.f32 0.0026737968, %v162_v22  ;;  %v177_v28 = vmul.f32 %v6111_v21, %v6111_v21 }
 0x116   :  { %v190_v29 = vmul.f32 0.5, %v189_v25 }
 0x117   :  { %v181_v30 = vsub.f32 %v173_v26, %v177_v28 }
 0x118   :  { %v191_v31 = vsub.f32 1.5, %v190_v29 }
 0x119   :  { %v5828_v33 = vpop.eup %5827  ;;  %v185_v34 = vadd.f32 1e-05, %v181_v30 }
 0x11a   :  { %v138_v35 = vpop.xlane.xlu0 %137  ;;  %v192_v38 = vmul.f32 %v5826_v15, %v191_v31  ;;  %v198_v39 = vmul.f32 %v5828_v33, %v184_v16  ;;  %vm204_vm4 = vweird.f32 %v5828_v33 }
 0x11b   :  { %v6115_v40 = vmul.f32 0.0026737968, %v138_v35  ;;  %5829 = vrsqrt.f32 %v185_v34  ;;  %vm205_vm6 = vmor %vm203_vm5, %vm204_vm4  ;;  %vm213_vm7 = vweird.f32 %v185_v34  ;;  %vm436_vm4 = vcmask 1043456  }
 0x11c   :  { %v166_v44 = vpop.xlane.xlu1 %165  ;;  %v196_v48 = vsel %vm195_vm3, %v5826_v15, %v192_v38  ;;  %v199_v49 = vmul.f32 %v5828_v33, %v198_v39  ;;  %v239_v38 = vsub.f32 %v6073_v43, %v6111_v21  ;;  %vm450_vm3 = vcmask 1044224  }
 0x11d   :  { %v243_v50 = vmul.f32 %v231_v41, %v196_v48  ;;  %v244_v51 = vmul.f32 %v232_v42, %v196_v48  ;;  %v174_v52 = vmul.f32 0.0026737968, %v166_v44  ;;  %v178_v55 = vmul.f32 %v6115_v40, %v6115_v40 }
 0x11e   :  { %v200_v54 = vmul.f32 0.5, %v199_v49  ;;  %v245_v56 = vmul.f32 %v233_v45, %v196_v48  ;;  %vm8203_vm5 = vcmask 261120  }
 0x11f   :  { %v275_v0 = vmul.f32 %v258_v59, %v243_v50  ;;  %v276_v3 = vmul.f32 %v258_v59, %v244_v51  ;;  %v182_v18 = vsub.f32 %v174_v52, %v178_v55 }
 0x120   :  { %v201_v17 = vsub.f32 1.5, %v200_v54  ;;  %v277_v4 = vmul.f32 %v258_v59, %v245_v56 }
 0x121   :  { %v5830_v5 = vpop.eup %5829  ;;  %v303_v1 = vadd.f32 %v6099_v61, %v275_v0  ;;  %v304_v6 = vadd.f32 %v6099_v61, %v276_v3  ;;  %v186_v10 = vadd.f32 1e-05, %v182_v18  ;;  %v240_v3 = vsub.f32 %v6078_v46, %v6115_v40 }
 0x122   :  { %v202_v7 = vmul.f32 %v5828_v33, %v201_v17  ;;  %v208_v8 = vmul.f32 %v5830_v5, %v185_v34  ;;  %v305_v59 = vadd.f32 %v6099_v61, %v277_v4  ;;  %vm214_vm8 = vweird.f32 %v5830_v5 }
 0x123   :  { %5831 = vtanh.f32 %v303_v1  ;;  %vm215_vm9 = vmor %vm213_vm7, %vm214_vm8  ;;  %v238_v34 = vsub.f32 %v6065_v37, %v6111_v21  ;;  %vm223_vm11 = vweird.f32 %v186_v10  ;;  %v241_v17 = vsub.f32 %v6080_v47, %v6115_v40 }
 0x124   :  { %v206_v14 = vsel %vm205_vm6, %v5828_v33, %v202_v7  ;;  %v209_v24 = vmul.f32 %v5830_v5, %v208_v8  ;;  %5833 = vrsqrt.f32 %v186_v10  ;;  %v237_v33 = vsub.f32 %v6063_v36, %v6111_v21  ;;  %vm6193_vm6 = vmor %vm406_vm2, %vm450_vm3 }
 0x125   :  { %v246_v15 = vmul.f32 %v234_v23, %v206_v14  ;;  %v247_v19 = vmul.f32 %v235_v12, %v206_v14  ;;  %5835 = vtanh.f32 %v304_v6  ;;  %v248_v20 = vmul.f32 %v236_v13, %v206_v14 }
 0x126   :  { %v210_v16 = vmul.f32 0.5, %v209_v24  ;;  %5837 = vtanh.f32 %v305_v59  ;;  %vm405_vm7 = vcmask 1044232   ;;  %vm396_vm8 = vcmask 531456  }
 0x127   :  { %v280_v27 = vmul.f32 %v6101_v62, %v248_v20  ;;  %v278_v22 = vmul.f32 %v6101_v62, %v246_v15  ;;  %v279_v32 = vmul.f32 %v6101_v62, %v247_v19  ;;  %vm8202_vm3 = vcmask 523264  }
 0x128   :  { %v211_v9 = vsub.f32 1.5, %v210_v16 }
 0x129   :  { %v5832_v25 = vpop.eup %5831  ;;  %v308_v61 = vadd.f32 %v6105_v2, %v280_v27  ;;  %v306_v26 = vadd.f32 %v6105_v2, %v278_v22  ;;  %v307_v30 = vadd.f32 %v6105_v2, %v279_v32 }
 0x12a   :  { %v5834_v28 = vpop.eup %5833  ;;  %v212_v29 = vmul.f32 %v5830_v5, %v211_v9 }
 0x12b   :  { %v5836_v31 = vpop.eup %5835  ;;  %v218_v62 = vmul.f32 %v5834_v28, %v186_v10  ;;  %5839 = vtanh.f32 %v308_v61  ;;  %vm224_vm12 = vweird.f32 %v5834_v28 }
 0x12c   :  { %v5838_v35 = vpop.eup %5837  ;;  %v216_v39 = vsel %vm215_vm9, %v5830_v5, %v212_v29  ;;  %v327_v41 = vpack.c.bf16 %v5836_v31, %v5832_v25  ;;  %5841 = vtanh.f32 %v306_v26  ;;  %vm225_vm13 = vmor %vm223_vm11, %vm224_vm12  ;;  %v242_v5 = vsub.f32 %v6088_v53, %v6115_v40 }
 0x12d   :  { %v249_v42 = vmul.f32 %v237_v33, %v216_v39  ;;  %v250_v44 = vmul.f32 %v238_v34, %v216_v39  ;;  %v219_v45 = vmul.f32 %v5834_v28, %v218_v62  ;;  %v328_v2 = vpack.c.bf16 %v5838_v35, %v5838_v35  ;;  %vm6205_vm9 = vmor %vm406_vm2, %vm405_vm7 }
 0x12e   :  { %371 = vst.msk [vmem:[#allocation2 + $0x20] sm:$0xf] %vm370_vm10, %v327_v41  ;;  %412 = vrot.lane.b32.xlu2 %v327_v41, %s5909_s1  ;;  %344 = vrot.lane.b32.xlu0 %v327_v41, %s5910_s20  ;;  %5843 = vtanh.f32 %v307_v30  ;;  %v251_v21 = vmul.f32 %v239_v38, %v216_v39  ;;  %vm722_vm11 = vcmask 1044176   ;;  %vm723_vm12 = vcmask 424964  }
 0x12f   :  { %v220_v36 = vmul.f32 0.5, %v219_v45  ;;  %414 = vrot.lane.b32.xlu1 %v328_v2, %s5909_s1  ;;  %v281_v37 = vmul.f32 %v6093_v57, %v249_v42  ;;  %v282_v43 = vmul.f32 %v6093_v57, %v250_v44  ;;  %vm6331_vm14 = vmor %vm723_vm12, %vm722_vm11  ;;  %vm8205_vm2 = vcmask 965632  }
 0x130   :  { %v283_v56 = vmul.f32 %v6093_v57, %v251_v21 }
 0x131   :  { %v5840_v48 = vpop.eup %5839  ;;  %v221_v49 = vsub.f32 1.5, %v220_v36  ;;  %v309_v50 = vadd.f32 %v6097_v60, %v281_v37  ;;  %v310_v51 = vadd.f32 %v6097_v60, %v282_v43 }
 0x132   :  { %v5842_v52 = vpop.eup %5841  ;;  %v330_v54 = vpack.c.bf16 %v5840_v48, %v5840_v48  ;;  %v311_v46 = vadd.f32 %v6097_v60, %v283_v56 }
 0x133   :  { %v222_v55 = vmul.f32 %v5834_v28, %v221_v49  ;;  %5845 = vtanh.f32 %v309_v50 }
 0x134   :  { %v5844_v0 = vpop.eup %5843  ;;  %5847 = vtanh.f32 %v310_v51 }
 0x135   :  { %v226_v18 = vsel %vm225_vm13, %v5834_v28, %v222_v55  ;;  %v329_v4 = vpack.c.bf16 %v5844_v0, %v5842_v52  ;;  %5849 = vtanh.f32 %v311_v46  ;;  %vm8204_vm13 = vcmask 998400  }
 0x136   :  { %v252_v23 = vmul.f32 %v240_v3, %v226_v18  ;;  %v253_v1 = vmul.f32 %v241_v17, %v226_v18  ;;  %418 = vrot.lane.b32.xlu2 %v330_v54, %s5909_s1  ;;  %v254_v6 = vmul.f32 %v242_v5, %v226_v18 }
 0x137   :  { %384 = vrot.lane.b32.xlu1 %v328_v2, %s5911_s21  ;;  %416 = vrot.lane.b32.xlu0 %v329_v4, %s5909_s1  ;;  %372 = vst.msk [vmem:[#allocation2 + $0x28] sm:$0xf] %vm370_vm10, %v329_v4 }
 0x138   :  { %v284_v47 = vmul.f32 %v6103_v63, %v252_v23  ;;  %v285_v57 = vmul.f32 %v6103_v63, %v253_v1  ;;  %v286_v12 = vmul.f32 %v6103_v63, %v254_v6 }
 0x139   :  { %v5846_v7 = vpop.eup %5845 }
 0x13a   :  { %v5848_v53 = vpop.eup %5847  ;;  %v312_v40 = vadd.f32 %v6095_v58, %v284_v47  ;;  %v313_v8 = vadd.f32 %v6095_v58, %v285_v57  ;;  %v314_v60 = vadd.f32 %v6095_v58, %v286_v12 }
 0x13b   :  { %v331_v10 = vpack.c.bf16 %v5848_v53, %v5846_v7  ;;  %v5850_v13 = vpop.eup %5849 }
 0x13c   :  { %5851 = vtanh.f32 %v312_v40  ;;  %v332_v24 = vpack.c.bf16 %v5850_v13, %v5850_v13 }
 0x13d   :  { %373 = vst.msk [vmem:[#allocation2 + $0x30] sm:$0xf] %vm370_vm10, %v331_v10  ;;  %5853 = vtanh.f32 %v313_v8 }
 0x13e   :  { %346 = vrot.lane.b32.xlu2 %v329_v4, %s5910_s20  ;;  %5855 = vtanh.f32 %v314_v60 }
 0x13f   :  { %348 = vrot.lane.b32.xlu1 %v331_v10, %s5910_s20  ;;  %386 = vrot.lane.b32.xlu0 %v330_v54, %s5911_s21 }
 0x142   :  { %v5852_v59 = vpop.eup %5851 }
 0x143   :  { %v5854_v14 = vpop.eup %5853 }
 0x144   :  { %v333_v15 = vpack.c.bf16 %v5854_v14, %v5852_v59  ;;  %v5856_v63 = vpop.eup %5855 }
 0x145   :  { %v334_v19 = vpack.c.bf16 %v5856_v63, %v5856_v63 }
 0x146   :  { %422 = vrot.lane.b32.xlu2 %v332_v24, %s5909_s1  ;;  %374 = vst.msk [vmem:[#allocation2 + $0x38] sm:$0xf] %vm370_vm10, %v333_v15  ;;  %vm464_vm10 = vcmask 732160  }
 0x147   :  { %420 = vrot.lane.b32.xlu0 %v331_v10, %s5909_s1  ;;  %424 = vrot.lane.b32.xlu1 %v333_v15, %s5909_s1 }
 0x14e   :  { %388 = vrot.lane.b32.xlu2 %v332_v24, %s5911_s21 }
 0x14f   :  { %426 = vrot.lane.b32.xlu0 %v334_v19, %s5909_s1  ;;  %390 = vrot.lane.b32.xlu1 %v334_v19, %s5911_s21  ;;  %s5930_s21 = smov 80  }
 0x157   :  { %350 = vrot.lane.b32.xlu0 %v333_v15, %s5910_s20  ;;  %s5929_s20 = smov 28  }
 0x188   :  { %v413_v58 = vpop.permute.xlu2 %412 }
 0x189   :  { %v428_v61 = vrot.slane %v413_v58, 4 }
 0x190   :  { %v419_v20 = vpop.permute.xlu2 %418 }
 0x191   :  { %v431_v35 = vrot.slane %v419_v20, 4 }
 0x198   :  { %v347_v16 = vpop.permute.xlu2 %346 }
 0x199   :  { %v353_v27 = vrot.slane %v347_v16, 4 }
 0x19b   :  { %v358_v22 = vsel %vm356_vm15, %v347_v16, %v353_v27 }
 0x19c   :  { %367 = vst.msk [vmem:[#allocation2 + $0x8] sm:$0xf] %vm365_vm0, %v358_v22 }
 0x19d   :  { %377 = vst.msk [vmem:[#allocation2 + $0x8] sm:$0xf] %vm375_vm1, %v5907_v11 }
 0x1a0   :  { %v345_v32 = vpop.permute.xlu0 %344  ;;  %v423_v31 = vpop.permute.xlu2 %422 }
 0x1a1   :  { %v415_v9 = vpop.permute.xlu1 %414  ;;  %v352_v25 = vrot.slane %v345_v32, 4  ;;  %v433_v4 = vrot.slane %v423_v31, 4 }
 0x1a2   :  { %v429_v26 = vrot.slane %v415_v9, 4 }
 0x1a3   :  { %v357_v28 = vsel %vm356_vm15, %v345_v32, %v352_v25 }
 0x1a4   :  { %v437_v30 = vsel %vm436_vm4, %v428_v61, %v429_v26  ;;  %366 = vst.msk [vmem:[#allocation2] sm:$0xf] %vm365_vm0, %v357_v28 }
 0x1a5   :  { %v439_v33 = vsel %vm8203_vm5, %v413_v58, %v437_v30  ;;  %376 = vst.msk [vmem:[#allocation2] sm:$0xf] %vm375_vm1, %v5907_v11 }
 0x1a6   :  { %452 = vst.msk [vmem:[#allocation2 + $0x20] sm:$0xff] %vm6193_vm6, %v439_v33 }
 0x1a8   :  { %v389_v43 = vpop.permute.xlu2 %388 }
 0x1a9   :  { %v385_v34 = vpop.permute.xlu1 %384  ;;  %v417_v62 = vpop.permute.xlu0 %416  ;;  %v394_v49 = vrot.slane %v389_v43, 4 }
 0x1aa   :  { %v392_v39 = vrot.slane %v385_v34, 4  ;;  %v430_v41 = vrot.slane %v417_v62, 4 }
 0x1ab   :  { %v399_v56 = vsel %vm396_vm8, %v394_v49, %v389_v43 }
 0x1ac   :  { %v397_v42 = vsel %vm396_vm8, %v392_v39, %v385_v34  ;;  %v440_v44 = vsel %vm436_vm4, %v430_v41, %v431_v35 }
 0x1ad   :  { %408 = vst.msk [vmem:[#allocation2] sm:$0xff] %vm6205_vm9, %v397_v42  ;;  %v441_v45 = vsel %vm8203_vm5, %v417_v62, %v440_v44  ;;  %v477_v2 = vld [vmem:[#allocation2 + $0x20] sm:$0xf] }
 0x1ae   :  { %v6214_v36 = vld [vmem:[#allocation2 + $0x20] sm:$0xff]  ;;  %453 = vst.msk [vmem:[#allocation2 + $0x28] sm:$0xff] %vm6193_vm6, %v441_v45  ;;  %497 = vrot.lane.b32.xlu2 %v477_v2, %s5912_s22 }
 0x1af   :  { %822 = vrot.lane.b32.xlu0 %v6214_v36, %s5913_s23  ;;  %v460_v37 = vld [vmem:[#allocation2 + $0x20] sm:$0xf]  ;;  %757 = vrot.lane.b32.xlu1 %v6214_v36, %s5914_s24 }
 0x1b0   :  { %469 = vst.msk [vmem:[#allocation3 + $0x20] sm:$0xf] %vm464_vm10, %v460_v37  ;;  %v573_v0 = vld [vmem:[#allocation2 + $0x20] sm:$0xf] }
 0x1b1   :  { %v349_v21 = vpop.permute.xlu1 %348  ;;  %v387_v48 = vpop.permute.xlu0 %386  ;;  %v525_v57 = vld [vmem:[#allocation2 + $0x20] sm:$0xf] }
 0x1b2   :  { %v354_v50 = vrot.slane %v349_v21, 4  ;;  %v393_v51 = vrot.slane %v387_v48, 4 }
 0x1b4   :  { %v359_v52 = vsel %vm356_vm15, %v349_v21, %v354_v50  ;;  %v473_v54 = vld [vmem:[#allocation2] sm:$0xf]  ;;  %v398_v55 = vsel %vm396_vm8, %v393_v51, %v387_v48 }
 0x1b5   :  { %368 = vst.msk [vmem:[#allocation2 + $0x10] sm:$0xf] %vm365_vm0, %v359_v52  ;;  %v456_v3 = vld [vmem:[#allocation2] sm:$0xf]  ;;  %v461_v17 = vld [vmem:[#allocation2 + $0x28] sm:$0xf] }
 0x1b6   :  { %378 = vst.msk [vmem:[#allocation2 + $0x10] sm:$0xf] %vm375_vm1, %v5907_v11  ;;  %887 = vrot.lane.b32.xlu2 %v6214_v36, %s5915_s25  ;;  %v6242_v47 = vld [vmem:[#allocation2] sm:$0xff]  ;;  %v6255_v60 = vld [vmem:[#allocation2 + $0x28] sm:$0xff] }
 0x1b7   :  { %489 = vrot.lane.b32.xlu0 %v473_v54, %s5912_s22  ;;  %410 = vst.msk [vmem:[#allocation2 + $0x10] sm:$0xff] %vm6205_vm9, %v399_v56  ;;  %593 = vrot.lane.b32.xlu1 %v573_v0, %s5916_s26  ;;  %v574_v19 = vld [vmem:[#allocation2 + $0x28] sm:$0xf]  ;;  %v569_v20 = vld [vmem:[#allocation2] sm:$0xf] }
 0x1b8   :  { %409 = vst.msk [vmem:[#allocation2 + $0x8] sm:$0xff] %vm6205_vm9, %v398_v55  ;;  %v526_v27 = vld [vmem:[#allocation2 + $0x28] sm:$0xf] }
 0x1b9   :  { %v421_v18 = vpop.permute.xlu0 %420  ;;  %465 = vst.msk [vmem:[#allocation3] sm:$0xf] %vm464_vm10, %v456_v3  ;;  %v425_v1 = vpop.permute.xlu1 %424  ;;  %v478_v9 = vld [vmem:[#allocation2 + $0x28] sm:$0xf] }
 0x1ba   :  { %v432_v5 = vrot.slane %v421_v18, 4  ;;  %470 = vst.msk [vmem:[#allocation3 + $0x28] sm:$0xf] %vm464_vm10, %v461_v17  ;;  %v434_v53 = vrot.slane %v425_v1, 4 }
 0x1bc   :  { %v442_v23 = vsel %vm436_vm4, %v432_v5, %v433_v4 }
 0x1bd   :  { %v443_v46 = vsel %vm8203_vm5, %v421_v18, %v442_v23 }
 0x1be   :  { %454 = vst.msk [vmem:[#allocation2 + $0x30] sm:$0xff] %vm6193_vm6, %v443_v46  ;;  %689 = vrot.lane.b32.xlu2 %v6214_v36, %s5917_s27  ;;  %v458_v6 = vld [vmem:[#allocation2 + $0x10] sm:$0xf] }
 0x1bf   :  { %879 = vrot.lane.b32.xlu0 %v6242_v47, %s5915_s25  ;;  %545 = vrot.lane.b32.xlu1 %v525_v57, %s5918_s28  ;;  %467 = vst.msk [vmem:[#allocation3 + $0x10] sm:$0xf] %vm464_vm10, %v458_v6  ;;  %v457_v8 = vld [vmem:[#allocation2 + $0x8] sm:$0xf]  ;;  %v475_v28 = vld [vmem:[#allocation2 + $0x10] sm:$0xf] }
 0x1c0   :  { %466 = vst.msk [vmem:[#allocation3 + $0x8] sm:$0xf] %vm464_vm10, %v457_v8  ;;  %v474_v22 = vld [vmem:[#allocation2 + $0x8] sm:$0xf]  ;;  %v6306_v30 = vld [vmem:[#allocation2 + $0x10] sm:$0xff] }
 0x1c1   :  { %v427_v7 = vpop.permute.xlu0 %426  ;;  %v391_v13 = vpop.permute.xlu1 %390  ;;  %v6283_v32 = vld [vmem:[#allocation2 + $0x8] sm:$0xff]  ;;  %v571_v62 = vld [vmem:[#allocation2 + $0x10] sm:$0xf] }
 0x1c2   :  { %v435_v40 = vrot.slane %v427_v7, 4  ;;  %v395_v24 = vrot.slane %v391_v13, 4  ;;  %v570_v25 = vld [vmem:[#allocation2 + $0x8] sm:$0xf]  ;;  %v523_v38 = vld [vmem:[#allocation2 + $0x10] sm:$0xf] }
 0x1c3   :  { %v522_v23 = vld [vmem:[#allocation2 + $0x8] sm:$0xf]  ;;  %v521_v7 = vld [vmem:[#allocation2] sm:$0xf] }
 0x1c4   :  { %v444_v10 = vsel %vm436_vm4, %v434_v53, %v435_v40  ;;  %v400_v58 = vsel %vm396_vm8, %v395_v24, %v391_v13 }
 0x1c5   :  { %v445_v12 = vsel %vm8203_vm5, %v425_v1, %v444_v10  ;;  %v462_v59 = vld [vmem:[#allocation2 + $0x30] sm:$0xf] }
 0x1c6   :  { %455 = vst.msk [vmem:[#allocation2 + $0x38] sm:$0xff] %vm6193_vm6, %v445_v12  ;;  %681 = vrot.lane.b32.xlu2 %v6242_v47, %s5917_s27  ;;  %v6290_v61 = vld [vmem:[#allocation2 + $0x30] sm:$0xff]  ;;  %vm8207_vm6 = vcmask 424960  }
 0x1c7   :  { %759 = vrot.lane.b32.xlu0 %v6255_v60, %s5914_s24  ;;  %749 = vrot.lane.b32.xlu1 %v6242_v47, %s5914_s24  ;;  %471 = vst.msk [vmem:[#allocation3 + $0x30] sm:$0xf] %vm464_vm10, %v462_v59  ;;  %v479_v26 = vld [vmem:[#allocation2 + $0x30] sm:$0xf] }
 0x1c8   :  { %v575_v29 = vld [vmem:[#allocation2 + $0x30] sm:$0xf] }
 0x1c9   :  { %v351_v14 = vpop.permute.xlu0 %350  ;;  %v527_v31 = vld [vmem:[#allocation2 + $0x30] sm:$0xf] }
 0x1ca   :  { %v355_v15 = vrot.slane %v351_v14, 4 }
 0x1cc   :  { %v360_v63 = vsel %vm356_vm15, %v351_v14, %v355_v15  ;;  %vm773_vm15 = vcmask 990208  }
 0x1cd   :  { %369 = vst.msk [vmem:[#allocation2 + $0x18] sm:$0xf] %vm365_vm0, %v360_v63  ;;  %v463_v16 = vld [vmem:[#allocation2 + $0x38] sm:$0xf]  ;;  %vm903_vm0 = vcmask 973824  }
 0x1ce   :  { %379 = vst.msk [vmem:[#allocation2 + $0x18] sm:$0xf] %vm375_vm1, %v5907_v11  ;;  %824 = vrot.lane.b32.xlu2 %v6255_v60, %s5913_s23  ;;  %v480_v34 = vld [vmem:[#allocation2 + $0x38] sm:$0xf]  ;;  %vm838_vm1 = vcmask 982016  }
 0x1cf   :  { %595 = vrot.lane.b32.xlu0 %v574_v19, %s5916_s26  ;;  %411 = vst.msk [vmem:[#allocation2 + $0x18] sm:$0xff] %vm6205_vm9, %v400_v58  ;;  %585 = vrot.lane.b32.xlu1 %v569_v20, %s5916_s26  ;;  %v576_v39 = vld [vmem:[#allocation2 + $0x38] sm:$0xf]  ;;  %v623_v20 = vld [vmem:[#allocation2 + $0x30] sm:$0xf] }
 0x1d0   :  { %472 = vst.msk [vmem:[#allocation3 + $0x38] sm:$0xf] %vm464_vm10, %v463_v16  ;;  %v6325_v41 = vld [vmem:[#allocation2 + $0x38] sm:$0xff] }
 0x1d1   :  { %v528_v52 = vld [vmem:[#allocation2 + $0x38] sm:$0xf] }
 0x1d2   :  { %v624_v58 = vld [vmem:[#allocation2 + $0x38] sm:$0xf] }
 0x1d6   :  { %491 = vrot.lane.b32.xlu2 %v474_v22, %s5912_s22  ;;  %v459_v11 = vld [vmem:[#allocation2 + $0x18] sm:$0xf] }
 0x1d7   :  { %547 = vrot.lane.b32.xlu0 %v526_v27, %s5918_s28  ;;  %814 = vrot.lane.b32.xlu1 %v6242_v47, %s5913_s23  ;;  %468 = vst.msk [vmem:[#allocation3 + $0x18] sm:$0xf] %vm464_vm10, %v459_v11  ;;  %v6350_v54 = vld [vmem:[#allocation2 + $0x18] sm:$0xff] }
 0x1d8   :  { %v476_v56 = vld [vmem:[#allocation2 + $0x18] sm:$0xf] }
 0x1d9   :  { %v572_v4 = vld [vmem:[#allocation2 + $0x18] sm:$0xf] }
 0x1da   :  { %v524_v13 = vld [vmem:[#allocation2 + $0x18] sm:$0xf] }
 0x1de   :  { %881 = vrot.lane.b32.xlu2 %v6283_v32, %s5915_s25 }
 0x1df   :  { %751 = vrot.lane.b32.xlu0 %v6283_v32, %s5914_s24  ;;  %499 = vrot.lane.b32.xlu1 %v478_v9, %s5912_s22 }
 0x1e6   :  { %761 = vrot.lane.b32.xlu2 %v6290_v61, %s5914_s24 }
 0x1e7   :  { %587 = vrot.lane.b32.xlu0 %v570_v25, %s5916_s26  ;;  %889 = vrot.lane.b32.xlu1 %v6255_v60, %s5915_s25 }
 0x1ee   :  { %693 = vrot.lane.b32.xlu2 %v6290_v61, %s5917_s27 }
 0x1ef   :  { %501 = vrot.lane.b32.xlu0 %v479_v26, %s5912_s22  ;;  %691 = vrot.lane.b32.xlu1 %v6255_v60, %s5917_s27 }
 0x1f6   :  { %493 = vrot.lane.b32.xlu2 %v475_v28, %s5912_s22 }
 0x1f7   :  { %597 = vrot.lane.b32.xlu0 %v575_v29, %s5916_s26  ;;  %683 = vrot.lane.b32.xlu1 %v6283_v32, %s5917_s27 }
 0x1fe   :  { %685 = vrot.lane.b32.xlu2 %v6306_v30, %s5917_s27 }
 0x1ff   :  { %826 = vrot.lane.b32.xlu0 %v6290_v61, %s5913_s23  ;;  %891 = vrot.lane.b32.xlu1 %v6290_v61, %s5915_s25 }
 0x206   :  { %818 = vrot.lane.b32.xlu2 %v6306_v30, %s5913_s23 }
 0x207   :  { %753 = vrot.lane.b32.xlu0 %v6306_v30, %s5914_s24  ;;  %549 = vrot.lane.b32.xlu1 %v527_v31, %s5918_s28 }
 0x208   :  { %v498_v33 = vpop.permute.xlu2 %497 }
 0x209   :  { %517 = vst.msk [vmem:[#allocation3 + $0x60] sm:$0xf] %vm464_vm10, %v498_v33 }
 0x20e   :  { %503 = vrot.lane.b32.xlu2 %v480_v34, %s5912_s22 }
 0x20f   :  { %883 = vrot.lane.b32.xlu0 %v6306_v30, %s5915_s25  ;;  %589 = vrot.lane.b32.xlu1 %v571_v62, %s5916_s26 }
 0x210   :  { %v888_v35 = vpop.permute.xlu2 %887 }
 0x211   :  { %v899_v55 = vrot.slane %v888_v35, 4 }
 0x213   :  { %v908_v18 = vsel %vm903_vm0, %v888_v35, %v899_v55  ;;  %v617_v55 = vld [vmem:[#allocation2] sm:$0xf] }
 0x216   :  { %599 = vrot.lane.b32.xlu2 %v576_v39, %s5916_s26 }
 0x217   :  { %541 = vrot.lane.b32.xlu0 %v523_v38, %s5918_s28  ;;  %763 = vrot.lane.b32.xlu1 %v6325_v41, %s5914_s24 }
 0x218   :  { %v690_v42 = vpop.permute.xlu2 %689 }
 0x219   :  { %v701_v45 = vrot.slane %v690_v42, 4 }
 0x21b   :  { %v710_v2 = vsel %vm8204_vm13, %v690_v42, %v701_v45 }
 0x21c   :  { %729 = vst.msk [vmem:[#allocation3 + $0x20] sm:$0xff] %vm6331_vm14, %v710_v2 }
 0x21e   :  { %828 = vrot.lane.b32.xlu2 %v6325_v41, %s5913_s23 }
 0x21f   :  { %893 = vrot.lane.b32.xlu0 %v6325_v41, %s5915_s25  ;;  %695 = vrot.lane.b32.xlu1 %v6325_v41, %s5917_s27 }
 0x220   :  { %v682_v37 = vpop.permute.xlu2 %681 }
 0x221   :  { %v823_v43 = vpop.permute.xlu0 %822  ;;  %v758_v21 = vpop.permute.xlu1 %757  ;;  %v697_v48 = vrot.slane %v682_v37, 4 }
 0x222   :  { %v769_v49 = vrot.slane %v758_v21, 4  ;;  %v834_v5 = vrot.slane %v823_v43, 4 }
 0x223   :  { %v706_v50 = vsel %vm8204_vm13, %v682_v37, %v697_v48  ;;  %v619_v37 = vld [vmem:[#allocation2 + $0x10] sm:$0xf] }
 0x224   :  { %v778_v51 = vsel %vm773_vm15, %v758_v21, %v769_v49  ;;  %725 = vst.msk [vmem:[#allocation3] sm:$0xff] %vm6331_vm14, %v706_v50  ;;  %v843_v6 = vsel %vm838_vm1, %v823_v43, %v834_v5  ;;  %v620_v43 = vld [vmem:[#allocation2 + $0x18] sm:$0xf] }
 0x225   :  { %794 = vst.msk [vmem:[#allocation3 + $0x60] sm:$0xff] %vm6331_vm14, %v778_v51 }
 0x226   :  { %755 = vrot.lane.b32.xlu2 %v6350_v54, %s5914_s24  ;;  %s5933_s24 = smov 94  }
 0x227   :  { %551 = vrot.lane.b32.xlu0 %v528_v52, %s5918_s28  ;;  %495 = vrot.lane.b32.xlu1 %v476_v56, %s5912_s22  ;;  %s5931_s22 = smov 42  }
 0x228   :  { %v825_v0 = vpop.permute.xlu2 %824 }
 0x229   :  { %v490_v3 = vpop.permute.xlu0 %489  ;;  %v594_v17 = vpop.permute.xlu1 %593  ;;  %v835_v19 = vrot.slane %v825_v0, 4 }
 0x22a   :  { %513 = vst.msk [vmem:[#allocation3 + $0x40] sm:$0xf] %vm464_vm10, %v490_v3 }
 0x22b   :  { %613 = vst.msk [vmem:[#allocation3 + $0xe0] sm:$0xf] %vm464_vm10, %v594_v17  ;;  %v844_v22 = vsel %vm838_vm1, %v825_v0, %v835_v19 }
 0x22c   :  { %924 = vst.msk [vmem:[#allocation3 + $0xe0] sm:$0xff] %vm6331_vm14, %v908_v18 }
 0x22e   :  { %885 = vrot.lane.b32.xlu2 %v6350_v54, %s5915_s25  ;;  %s5934_s25 = smov 56  }
 0x22f   :  { %591 = vrot.lane.b32.xlu0 %v572_v4, %s5916_s26  ;;  %539 = vrot.lane.b32.xlu1 %v522_v23, %s5918_s28  ;;  %s5935_s26 = smov 18  }
 0x230   :  { %v492_v1 = vpop.permute.xlu2 %491 }
 0x231   :  { %v880_v46 = vpop.permute.xlu0 %879  ;;  %v546_v57 = vpop.permute.xlu1 %545  ;;  %514 = vst.msk [vmem:[#allocation3 + $0x48] sm:$0xf] %vm464_vm10, %v492_v1 }
 0x232   :  { %565 = vst.msk [vmem:[#allocation3 + $0xa0] sm:$0xf] %vm464_vm10, %v546_v57  ;;  %v895_v59 = vrot.slane %v880_v46, 4 }
 0x233   :  { %859 = vst.msk [vmem:[#allocation3 + $0xa0] sm:$0xff] %vm6331_vm14, %v843_v6 }
 0x234   :  { %v904_v63 = vsel %vm903_vm0, %v880_v46, %v895_v59 }
 0x236   :  { %537 = vrot.lane.b32.xlu2 %v521_v7, %s5918_s28 }
 0x237   :  { %816 = vrot.lane.b32.xlu0 %v6283_v32, %s5913_s23  ;;  %687 = vrot.lane.b32.xlu1 %v6350_v54, %s5917_s27 }
 0x238   :  { %v882_v53 = vpop.permute.xlu2 %881 }
 0x239   :  { %v760_v40 = vpop.permute.xlu0 %759  ;;  %v750_v8 = vpop.permute.xlu1 %749 }
 0x23a   :  { %v765_v10 = vrot.slane %v750_v8, 4  ;;  %v770_v26 = vrot.slane %v760_v40, 4 }
 0x23c   :  { %v774_v12 = vsel %vm773_vm15, %v750_v8, %v765_v10  ;;  %v779_v34 = vsel %vm773_vm15, %v760_v40, %v770_v26 }
 0x23d   :  { %790 = vst.msk [vmem:[#allocation3 + $0x40] sm:$0xff] %vm6331_vm14, %v774_v12 }
 0x23e   :  { %543 = vrot.lane.b32.xlu2 %v524_v13, %s5918_s28 }
 0x23f   :  { %956 = vrot.lane.b32.xlu0 %v6290_v61, %s5919_s29  ;;  %820 = vrot.lane.b32.xlu1 %v6350_v54, %s5913_s23  ;;  %v621_v61 = vld [vmem:[#allocation2 + $0x20] sm:$0xf]  ;;  %s5932_s23 = smov 4  }
 0x240   :  { %v6383_v14 = vpop.permute.xlu2 %761 }
 0x241   :  { %v596_v24 = vpop.permute.xlu0 %595  ;;  %v586_v15 = vpop.permute.xlu1 %585 }
 0x242   :  { %614 = vst.msk [vmem:[#allocation3 + $0xe8] sm:$0xf] %vm464_vm10, %v596_v24 }
 0x243   :  { %609 = vst.msk [vmem:[#allocation3 + $0xc0] sm:$0xf] %vm464_vm10, %v586_v15 }
 0x244   :  { %920 = vst.msk [vmem:[#allocation3 + $0xc0] sm:$0xff] %vm6331_vm14, %v904_v63 }
 0x246   :  { %958 = vrot.lane.b32.xlu2 %v6325_v41, %s5919_s29 }
 0x247   :  { %647 = vrot.lane.b32.xlu0 %v624_v58, %s5920_s30  ;;  %645 = vrot.lane.b32.xlu1 %v623_v20, %s5920_s30 }
 0x248   :  { %v694_v16 = vpop.permute.xlu2 %693 }
 0x249   :  { %v548_v27 = vpop.permute.xlu0 %547  ;;  %v6395_v11 = vpop.permute.xlu1 %814  ;;  %v703_v9 = vrot.slane %v694_v16, 4 }
 0x24a   :  { %566 = vst.msk [vmem:[#allocation3 + $0xa8] sm:$0xf] %vm464_vm10, %v548_v27  ;;  %v830_v27 = vrot.slane %v6395_v11, 4 }
 0x24b   :  { %860 = vst.msk [vmem:[#allocation3 + $0xa8] sm:$0xff] %vm6331_vm14, %v844_v22  ;;  %v712_v25 = vsel %vm8204_vm13, %v694_v16, %v703_v9 }
 0x24c   :  { %731 = vst.msk [vmem:[#allocation3 + $0x30] sm:$0xff] %vm6331_vm14, %v712_v25  ;;  %v839_v25 = vsel %vm838_vm1, %v6395_v11, %v830_v27 }
 0x24e   :  { %952 = vrot.lane.b32.xlu2 %v6214_v36, %s5919_s29  ;;  %v896_v36 = vrot.slane %v882_v53, 4 }
 0x24f   :  { %641 = vrot.lane.b32.xlu0 %v621_v61, %s5920_s30  ;;  %954 = vrot.lane.b32.xlu1 %v6255_v60, %s5919_s29  ;;  %v622_v60 = vld [vmem:[#allocation2 + $0x28] sm:$0xf] }
 0x250   :  { %v494_v28 = vpop.permute.xlu2 %493  ;;  %v905_v39 = vsel %vm903_vm0, %v882_v53, %v896_v36 }
 0x251   :  { %v752_v29 = vpop.permute.xlu0 %751  ;;  %v500_v31 = vpop.permute.xlu1 %499  ;;  %515 = vst.msk [vmem:[#allocation3 + $0x50] sm:$0xf] %vm464_vm10, %v494_v28 }
 0x252   :  { %v766_v33 = vrot.slane %v752_v29, 4  ;;  %518 = vst.msk [vmem:[#allocation3 + $0x68] sm:$0xf] %vm464_vm10, %v500_v31 }
 0x253   :  { %795 = vst.msk [vmem:[#allocation3 + $0x68] sm:$0xff] %vm6331_vm14, %v779_v34 }
 0x254   :  { %v775_v62 = vsel %vm773_vm15, %v752_v29, %v766_v33 }
 0x255   :  { %791 = vst.msk [vmem:[#allocation3 + $0x48] sm:$0xff] %vm6331_vm14, %v775_v62 }
 0x256   :  { %643 = vrot.lane.b32.xlu2 %v622_v60, %s5920_s30 }
 0x257   :  { %944 = vrot.lane.b32.xlu0 %v6242_v47, %s5919_s29  ;;  %948 = vrot.lane.b32.xlu1 %v6306_v30, %s5919_s29  ;;  %v771_v30 = vrot.slane %v6383_v14, 4 }
 0x258   :  { %v686_v35 = vpop.permute.xlu2 %685 }
 0x259   :  { %v588_v38 = vpop.permute.xlu0 %587  ;;  %v890_v41 = vpop.permute.xlu1 %889  ;;  %v699_v42 = vrot.slane %v686_v35, 4  ;;  %v780_v49 = vsel %vm773_vm15, %v6383_v14, %v771_v30 }
 0x25a   :  { %610 = vst.msk [vmem:[#allocation3 + $0xc8] sm:$0xf] %vm464_vm10, %v588_v38  ;;  %v900_v45 = vrot.slane %v890_v41, 4  ;;  %v5557_v38 = vld [vmem:[#allocation3 + $0x64] sm:$0xf0] }
 0x25b   :  { %921 = vst.msk [vmem:[#allocation3 + $0xc8] sm:$0xff] %vm6331_vm14, %v905_v39  ;;  %v708_v2 = vsel %vm8204_vm13, %v686_v35, %v699_v42  ;;  %v4684_v39 = vld [vmem:[#allocation3 + $0x68] sm:$0xf0] }
 0x25c   :  { %v909_v47 = vsel %vm903_vm0, %v890_v41, %v900_v45  ;;  %727 = vst.msk [vmem:[#allocation3 + $0x10] sm:$0xff] %vm6331_vm14, %v708_v2  ;;  %v4682_v2 = vld [vmem:[#allocation3 + $0x60] sm:$0xf] }
 0x25d   :  { %925 = vst.msk [vmem:[#allocation3 + $0xe8] sm:$0xff] %vm6331_vm14, %v909_v47  ;;  %v5556_v47 = vld [vmem:[#allocation3 + $0x64] sm:$0xf] }
 0x25e   :  { %637 = vrot.lane.b32.xlu2 %v619_v37, %s5920_s30  ;;  %v4683_v37 = vor.u32 %v5557_v38, %v4682_v2  ;;  %v5565_v2 = vld [vmem:[#allocation3 + $0xa4] sm:$0xf0] }
 0x25f   :  { %950 = vrot.lane.b32.xlu0 %v6350_v54, %s5919_s29  ;;  %639 = vrot.lane.b32.xlu1 %v620_v43, %s5920_s30  ;;  %v618_v54 = vld [vmem:[#allocation2 + $0x8] sm:$0xf]  ;;  %v4687_v43 = vor.u32 %v5556_v47, %v4684_v39 }
 0x260   :  { %v819_v21 = vpop.permute.xlu2 %818 }
 0x261   :  { %v502_v48 = vpop.permute.xlu0 %501  ;;  %v692_v50 = vpop.permute.xlu1 %691  ;;  %v832_v24 = vrot.slane %v819_v21, 4 }
 0x262   :  { %519 = vst.msk [vmem:[#allocation3 + $0x70] sm:$0xf] %vm464_vm10, %v502_v48  ;;  %v702_v51 = vrot.slane %v692_v50, 4 }
 0x263   :  { %796 = vst.msk [vmem:[#allocation3 + $0x70] sm:$0xff] %vm6331_vm14, %v780_v49  ;;  %v841_v19 = vsel %vm838_vm1, %v819_v21, %v832_v24  ;;  %v4658_v24 = vld [vmem:[#allocation3 + $0x30] sm:$0xf] }
 0x264   :  { %v711_v52 = vsel %vm8204_vm13, %v692_v50, %v702_v51 }
 0x265   :  { %730 = vst.msk [vmem:[#allocation3 + $0x28] sm:$0xff] %vm6331_vm14, %v711_v52  ;;  %v5573_v52 = vld [vmem:[#allocation3 + $0xe4] sm:$0xf0] }
 0x266   :  { %946 = vrot.lane.b32.xlu2 %v6283_v32, %s5919_s29 }
 0x267   :  { %635 = vrot.lane.b32.xlu0 %v618_v54, %s5920_s30  ;;  %633 = vrot.lane.b32.xlu1 %v617_v55, %s5920_s30  ;;  %v4746_v55 = vld [vmem:[#allocation3 + $0xe0] sm:$0xf]  ;;  %s5936_s30 = smov 108  }
 0x268   :  { %v504_v56 = vpop.permute.xlu2 %503 }
 0x269   :  { %v598_v0 = vpop.permute.xlu0 %597  ;;  %v684_v3 = vpop.permute.xlu1 %683  ;;  %520 = vst.msk [vmem:[#allocation3 + $0x78] sm:$0xf] %vm464_vm10, %v504_v56 }
 0x26a   :  { %v698_v17 = vrot.slane %v684_v3, 4  ;;  %615 = vst.msk [vmem:[#allocation3 + $0xf0] sm:$0xf] %vm464_vm10, %v598_v0  ;;  %v4690_v31 = vld [vmem:[#allocation3 + $0x70] sm:$0xf] }
 0x26b   :  { %v5558_v33 = vld [vmem:[#allocation3 + $0x74] sm:$0xf] }
 0x26c   :  { %v707_v18 = vsel %vm8204_vm13, %v684_v3, %v698_v17  ;;  %v4747_v3 = vor.u32 %v5573_v52, %v4746_v55 }
 0x26d   :  { %726 = vst.msk [vmem:[#allocation3 + $0x8] sm:$0xff] %vm6331_vm14, %v707_v18 }
 0x270   :  { %v600_v4 = vpop.permute.xlu2 %599 }
 0x271   :  { %v827_v5 = vpop.permute.xlu0 %826  ;;  %v892_v23 = vpop.permute.xlu1 %891  ;;  %616 = vst.msk [vmem:[#allocation3 + $0xf8] sm:$0xf] %vm464_vm10, %v600_v4 }
 0x272   :  { %v901_v32 = vrot.slane %v892_v23, 4  ;;  %v836_v46 = vrot.slane %v827_v5, 4 }
 0x274   :  { %v910_v1 = vsel %vm903_vm0, %v892_v23, %v901_v32  ;;  %v845_v40 = vsel %vm838_vm1, %v827_v5, %v836_v46  ;;  %v4636_v52 = vld [vmem:[#allocation3 + $0x8] sm:$0xf0] }
 0x275   :  { %926 = vst.msk [vmem:[#allocation3 + $0xf0] sm:$0xff] %vm6331_vm14, %v910_v1 }
 0x278   :  { %v6457_v57 = vpop.permute.xlu2 %828 }
 0x279   :  { %v754_v6 = vpop.permute.xlu0 %753  ;;  %v550_v7 = vpop.permute.xlu1 %549  ;;  %v837_v41 = vrot.slane %v6457_v57, 4 }
 0x27a   :  { %v767_v53 = vrot.slane %v754_v6, 4  ;;  %567 = vst.msk [vmem:[#allocation3 + $0xb0] sm:$0xf] %vm464_vm10, %v550_v7  ;;  %v4666_v7 = vld [vmem:[#allocation3 + $0x40] sm:$0xf] }
 0x27b   :  { %861 = vst.msk [vmem:[#allocation3 + $0xb0] sm:$0xff] %vm6331_vm14, %v845_v40  ;;  %v846_v50 = vsel %vm838_vm1, %v6457_v57, %v837_v41  ;;  %v5553_v57 = vld [vmem:[#allocation3 + $0x44] sm:$0xf0] }
 0x27c   :  { %v776_v8 = vsel %vm773_vm15, %v754_v6, %v767_v53  ;;  %v4754_v48 = vld [vmem:[#allocation3 + $0xf0] sm:$0xf]  ;;  %v4668_v6 = vld [vmem:[#allocation3 + $0x48] sm:$0xf0]  ;;  %v5552_v53 = vld [vmem:[#allocation3 + $0x44] sm:$0xf]  ;;  %v4667_v40 = vor.u32 %v5553_v57, %v4666_v7 }
 0x27d   :  { %792 = vst.msk [vmem:[#allocation3 + $0x50] sm:$0xff] %vm6331_vm14, %v776_v8  ;;  %v4671_v8 = vor.u32 %v5552_v53, %v4668_v6  ;;  %v5574_v57 = vld [vmem:[#allocation3 + $0xf4] sm:$0xf] }
 0x280   :  { %v756_v10 = vpop.permute.xlu2 %755 }
 0x281   :  { %v884_v12 = vpop.permute.xlu0 %883  ;;  %v590_v13 = vpop.permute.xlu1 %589  ;;  %v768_v35 = vrot.slane %v756_v10, 4 }
 0x282   :  { %v897_v59 = vrot.slane %v884_v12, 4  ;;  %611 = vst.msk [vmem:[#allocation3 + $0xd0] sm:$0xf] %vm464_vm10, %v590_v13  ;;  %v4722_v41 = vld [vmem:[#allocation3 + $0xb0] sm:$0xf] }
 0x283   :  { %v777_v21 = vsel %vm773_vm15, %v756_v10, %v768_v35 }
 0x284   :  { %v906_v14 = vsel %vm903_vm0, %v884_v12, %v897_v59  ;;  %v4674_v18 = vld [vmem:[#allocation3 + $0x50] sm:$0xf]  ;;  %v5554_v4 = vld [vmem:[#allocation3 + $0x54] sm:$0xf] }
 0x285   :  { %922 = vst.msk [vmem:[#allocation3 + $0xd0] sm:$0xff] %vm6331_vm14, %v906_v14 }
 0x288   :  { %v6470_v15 = vpop.permute.xlu2 %885 }
 0x289   :  { %v542_v63 = vpop.permute.xlu0 %541  ;;  %v764_v58 = vpop.permute.xlu1 %763  ;;  %v898_v54 = vrot.slane %v6470_v15, 4 }
 0x28a   :  { %563 = vst.msk [vmem:[#allocation3 + $0x90] sm:$0xf] %vm464_vm10, %v542_v63  ;;  %v772_v20 = vrot.slane %v764_v58, 4 }
 0x28b   :  { %857 = vst.msk [vmem:[#allocation3 + $0x90] sm:$0xff] %vm6331_vm14, %v841_v19  ;;  %v907_v5 = vsel %vm903_vm0, %v6470_v15, %v898_v54 }
 0x28c   :  { %v781_v16 = vsel %vm773_vm15, %v764_v58, %v772_v20  ;;  %v4738_v19 = vld [vmem:[#allocation3 + $0xd0] sm:$0xf]  ;;  %vm6672_vm15 = vmor %vm723_vm12, %vm436_vm4  ;;  %vm1593_vm4 = vcmask 1040384  }
 0x28d   :  { %797 = vst.msk [vmem:[#allocation3 + $0x78] sm:$0xff] %vm6331_vm14, %v781_v16 }
 0x290   :  { %v538_v22 = vpop.permute.xlu2 %537 }
 0x291   :  { %v894_v9 = vpop.permute.xlu0 %893  ;;  %v696_v61 = vpop.permute.xlu1 %695  ;;  %561 = vst.msk [vmem:[#allocation3 + $0x80] sm:$0xf] %vm464_vm10, %v538_v22  ;;  %v5550_v22 = vld [vmem:[#allocation3 + $0x34] sm:$0xf] }
 0x292   :  { %v902_v26 = vrot.slane %v894_v9, 4  ;;  %v704_v28 = vrot.slane %v696_v61, 4  ;;  %855 = vst.msk [vmem:[#allocation3 + $0x80] sm:$0xff] %vm6331_vm14, %v839_v25 }
 0x294   :  { %v911_v29 = vsel %vm903_vm0, %v894_v9, %v902_v26  ;;  %v713_v34 = vsel %vm8204_vm13, %v696_v61, %v704_v28  ;;  %v5559_v62 = vld [vmem:[#allocation3 + $0x74] sm:$0xf0]  ;;  %v4692_v36 = vld [vmem:[#allocation3 + $0x78] sm:$0xf0]  ;;  %v5549_v61 = vld [vmem:[#allocation3 + $0x24] sm:$0xf0] }
 0x295   :  { %927 = vst.msk [vmem:[#allocation3 + $0xf8] sm:$0xff] %vm6331_vm14, %v911_v29  ;;  %v4691_v11 = vor.u32 %v5559_v62, %v4690_v31  ;;  %v4695_v60 = vor.u32 %v5558_v33, %v4692_v36  ;;  %v5569_v26 = vld [vmem:[#allocation3 + $0xc4] sm:$0xf0]  ;;  %v4652_v28 = vld [vmem:[#allocation3 + $0x28] sm:$0xf0]  ;;  %vm1584_vm0 = vcmask 729088  }
 0x296   :  { %732 = vst.msk [vmem:[#allocation3 + $0x38] sm:$0xff] %vm6331_vm14, %v713_v34  ;;  %v4650_v29 = vld [vmem:[#allocation3 + $0x20] sm:$0xf]  ;;  %v5548_v62 = vld [vmem:[#allocation3 + $0x24] sm:$0xf] }
 0x297   :  { %1278 = vmatpush.bf16.msra.mxu3 %v4691_v11  ;;  %1335 = vmatpush.bf16.msrb.mxu2 %v4695_v60  ;;  %v4730_v31 = vld [vmem:[#allocation3 + $0xc0] sm:$0xf]  ;;  %v4651_v33 = vor.u32 %v5549_v61, %v4650_v29  ;;  %v4655_v11 = vor.u32 %v5548_v62, %v4652_v28 }
 0x298   :  { %v544_v42 = vpop.permute.xlu2 %543  ;;  %v4731_v34 = vor.u32 %v5569_v26, %v4730_v31 }
 0x299   :  { %v552_v45 = vpop.permute.xlu0 %551  ;;  %564 = vst.msk [vmem:[#allocation3 + $0x98] sm:$0xf] %vm464_vm10, %v544_v42  ;;  %v496_v30 = vpop.permute.xlu1 %495 }
 0x29a   :  { %516 = vst.msk [vmem:[#allocation3 + $0x58] sm:$0xf] %vm464_vm10, %v496_v30 }
 0x29b   :  { %793 = vst.msk [vmem:[#allocation3 + $0x58] sm:$0xff] %vm6331_vm14, %v777_v21  ;;  %1279 = vmatpush.bf16.msra.mxu3 %v4683_v37  ;;  %1336 = vmatpush.bf16.msrb.mxu2 %v4687_v43  ;;  %v5546_v37 = vld [vmem:[#allocation3 + $0x14] sm:$0xf] }
 0x29c   :  { %v5575_v49 = vld [vmem:[#allocation3 + $0xf4] sm:$0xf0]  ;;  %568 = vst.msk [vmem:[#allocation3 + $0xb8] sm:$0xf] %vm464_vm10, %v552_v45  ;;  %v4642_v45 = vld [vmem:[#allocation3 + $0x10] sm:$0xf] }
 0x29d   :  { %v4755_v51 = vor.u32 %v5575_v49, %v4754_v48  ;;  %862 = vst.msk [vmem:[#allocation3 + $0xb8] sm:$0xff] %vm6331_vm14, %v846_v50  ;;  %v5551_v13 = vld [vmem:[#allocation3 + $0x34] sm:$0xf0]  ;;  %v4660_v15 = vld [vmem:[#allocation3 + $0x38] sm:$0xf0] }
 0x29e   :  { %v4659_v16 = vor.u32 %v5551_v13, %v4658_v24  ;;  %v4663_v25 = vor.u32 %v5550_v22, %v4660_v15  ;;  %v4714_v49 = vld [vmem:[#allocation3 + $0xa0] sm:$0xf]  ;;  %v4756_v55 = vld [vmem:[#allocation3 + $0xf8] sm:$0xf0]  ;;  %v5572_v24 = vld [vmem:[#allocation3 + $0xe4] sm:$0xf] }
 0x29f   :  { %1297 = vmatpush.bf16.msrb.mxu0 %v4755_v51  ;;  %v5545_v51 = vld [vmem:[#allocation3 + $0x4] sm:$0xf0]  ;;  %v4715_v54 = vor.u32 %v5565_v2, %v4714_v49  ;;  %v4759_v7 = vor.u32 %v5574_v57, %v4756_v55  ;;  %v5566_v2 = vld [vmem:[#allocation3 + $0xb4] sm:$0xf]  ;;  %v5564_v55 = vld [vmem:[#allocation3 + $0xa4] sm:$0xf] }
 0x2a0   :  { %v6503_v56 = vpop.permute.xlu2 %958 }
 0x2a1   :  { %v592_v0 = vpop.permute.xlu0 %591  ;;  %v540_v17 = vpop.permute.xlu1 %539 }
 0x2a2   :  { %612 = vst.msk [vmem:[#allocation3 + $0xd8] sm:$0xf] %vm464_vm10, %v592_v0  ;;  %v5555_v23 = vld [vmem:[#allocation3 + $0x54] sm:$0xf0]  ;;  %v4676_v32 = vld [vmem:[#allocation3 + $0x58] sm:$0xf0] }
 0x2a3   :  { %562 = vst.msk [vmem:[#allocation3 + $0x88] sm:$0xf] %vm464_vm10, %v540_v17  ;;  %1298 = vmatpush.bf16.msrb.mxu0 %v4747_v3  ;;  %v4675_v1 = vor.u32 %v5555_v23, %v4674_v18  ;;  %v4679_v46 = vor.u32 %v5554_v4, %v4676_v32  ;;  %v4610_v0 = vld [vmem:[%s8197_s2] sm:$0xf]  ;;  %v5539_v3 = vld [vmem:[%s8197_s2 + $0x8] sm:$0xf0] }
 0x2a4   :  { %923 = vst.msk [vmem:[#allocation3 + $0xd8] sm:$0xff] %vm6331_vm14, %v907_v5  ;;  %v5567_v35 = vld [vmem:[#allocation3 + $0xb4] sm:$0xf0]  ;;  %v967_v17 = vrot.slane %v6503_v56, 4  ;;  %v4634_v5 = vld [vmem:[#allocation3] sm:$0xf]  ;;  %v4611_v53 = vor.u32 %v5539_v3, %v4610_v0 }
 0x2a5   :  { %1280 = vmatpush.bf16.msra.mxu3 %v4675_v1  ;;  %1337 = vmatpush.bf16.msrb.mxu2 %v4679_v46  ;;  %v4723_v42 = vor.u32 %v5567_v35, %v4722_v41  ;;  %v5544_v23 = vld [vmem:[#allocation3 + $0x4] sm:$0xf]  ;;  %v4635_v1 = vor.u32 %v5545_v51, %v4634_v5  ;;  %v5542_v41 = vld [vmem:[%s8197_s2 + $0x20] sm:$0xf0] }
 0x2a6   :  { %v4639_v46 = vor.u32 %v5544_v23, %v4636_v52 }
 0x2a8   :  { %v6511_v10 = vpop.permute.xlu2 %952 }
 0x2a9   :  { %v817_v12 = vpop.permute.xlu0 %816  ;;  %v688_v59 = vpop.permute.xlu1 %687  ;;  %1281 = vmatpush.bf16.msra.mxu3 %v4667_v40  ;;  %1338 = vmatpush.bf16.msrb.mxu2 %v4671_v8  ;;  %v4748_v40 = vld [vmem:[#allocation3 + $0xe8] sm:$0xf0]  ;;  %v976_v8 = vsel %vm8205_vm2, %v6503_v56, %v967_v17  ;;  %v5538_v56 = vld [vmem:[%s8197_s2 + $0x4] sm:$0xf]  ;;  %v5541_v17 = vld [vmem:[%s8197_s2 + $0x1c] sm:$0xf] }
 0x2aa   :  { %v831_v14 = vrot.slane %v817_v12, 4  ;;  %v700_v63 = vrot.slane %v688_v59, 4  ;;  %v4751_v15 = vor.u32 %v5572_v24, %v4748_v40 }
 0x2ab   :  { %v5571_v58 = vld [vmem:[#allocation3 + $0xd4] sm:$0xf0] }
 0x2ac   :  { %v840_v20 = vsel %vm838_vm1, %v817_v12, %v831_v14  ;;  %v4739_v27 = vor.u32 %v5571_v58, %v4738_v19  ;;  %v709_v9 = vsel %vm8204_vm13, %v688_v59, %v700_v63  ;;  %v4706_v12 = vld [vmem:[#allocation3 + $0x90] sm:$0xf]  ;;  %v964_v59 = vrot.slane %v6511_v10, 4  ;;  %v4740_v19 = vld [vmem:[#allocation3 + $0xd8] sm:$0xf0] }
 0x2ad   :  { %856 = vst.msk [vmem:[#allocation3 + $0x88] sm:$0xff] %vm6331_vm14, %v840_v20  ;;  %1282 = vmatpush.bf16.msra.mxu3 %v4659_v16  ;;  %1339 = vmatpush.bf16.msrb.mxu2 %v4663_v25  ;;  %v4612_v58 = vld [vmem:[%s8197_s2 + $0xc] sm:$0xf0]  ;;  %v4698_v16 = vld [vmem:[#allocation3 + $0x80] sm:$0xf]  ;;  %vm2222_vm13 = vcmask 310272  }
 0x2ae   :  { %728 = vst.msk [vmem:[#allocation3 + $0x18] sm:$0xff] %vm6331_vm14, %v709_v9  ;;  %1299 = vmatpush.bf16.msrb.mxu0 %v4739_v27  ;;  %v973_v27 = vsel %vm8205_vm2, %v6511_v10, %v964_v59  ;;  %v5570_v25 = vld [vmem:[#allocation3 + $0xd4] sm:$0xf]  ;;  %v6552_v31 = vor.u32 %v5538_v56, %v4612_v58 }
 0x2af   :  { %v4743_v26 = vor.u32 %v5570_v25, %v4740_v19  ;;  %v5921_v19 = vmov 3  }
 0x2b0   :  { %v644_v36 = vpop.permute.xlu2 %643  ;;  %5817 = vset.pattern.permute.xlu0 %v5921_v19  ;;  %5820 = vset.pattern.permute.xlu2 %v5921_v19 }
 0x2b1   :  { %v957_v60 = vpop.permute.xlu0 %956  ;;  %662 = vst.msk [vmem:[#allocation3 + $0x128] sm:$0xf] %vm464_vm10, %v644_v36  ;;  %v821_v38 = vpop.permute.xlu1 %820  ;;  %1283 = vmatpush.bf16.msra.mxu3 %v4651_v33  ;;  %1340 = vmatpush.bf16.msrb.mxu2 %v4655_v11  ;;  %v4732_v33 = vld [vmem:[#allocation3 + $0xc8] sm:$0xf0] }
 0x2b2   :  { %1300 = vmatpush.bf16.msrb.mxu0 %v4731_v34  ;;  %v833_v39 = vrot.slane %v821_v38, 4  ;;  %v966_v50 = vrot.slane %v957_v60, 4 }
 0x2b4   :  { %v842_v47 = vsel %vm838_vm1, %v821_v38, %v833_v39  ;;  %v975_v6 = vsel %vm8205_vm2, %v957_v60, %v966_v50  ;;  %v5561_v63 = vld [vmem:[#allocation3 + $0x84] sm:$0xf0]  ;;  %v5568_v60 = vld [vmem:[#allocation3 + $0xc4] sm:$0xf]  ;;  %v4724_v38 = vld [vmem:[#allocation3 + $0xb8] sm:$0xf0] }
 0x2b5   :  { %v5547_v30 = vld [vmem:[#allocation3 + $0x14] sm:$0xf0]  ;;  %v4644_v43 = vld [vmem:[#allocation3 + $0x18] sm:$0xf0]  ;;  %858 = vst.msk [vmem:[#allocation3 + $0x98] sm:$0xff] %vm6331_vm14, %v842_v47  ;;  %v4699_v9 = vor.u32 %v5561_v63, %v4698_v16  ;;  %v4735_v35 = vor.u32 %v5568_v60, %v4732_v33 }
 0x2b6   :  { %1301 = vmatpush.bf16.msrb.mxu0 %v4723_v42  ;;  %v4643_v21 = vor.u32 %v5547_v30, %v4642_v45  ;;  %v4647_v48 = vor.u32 %v5546_v37, %v4644_v43  ;;  %v4622_v39 = vld [vmem:[%s8197_s2 + $0x18] sm:$0xf]  ;;  %v4727_v30 = vor.u32 %v5566_v2, %v4724_v38  ;;  %vm1585_vm1 = vsmask.f32 256 }
 0x2b7   :  { %v4623_v37 = vor.u32 %v5542_v41, %v4622_v39 }
 0x2b8   :  { %1284 = vmatpush.bf16.msra.mxu3 %v4643_v21  ;;  %1341 = vmatpush.bf16.msrb.mxu2 %v4647_v48  ;;  %v638_v18 = vpop.permute.xlu2 %637  ;;  %v4716_v21 = vld [vmem:[#allocation3 + $0xa8] sm:$0xf0] }
 0x2b9   :  { %v648_v4 = vpop.permute.xlu0 %647  ;;  %659 = vst.msk [vmem:[#allocation3 + $0x110] sm:$0xf] %vm464_vm10, %v638_v18  ;;  %v646_v32 = vpop.permute.xlu1 %645  ;;  %v4719_v0 = vor.u32 %v5564_v55, %v4716_v21  ;;  %v4624_v18 = vld [vmem:[%s8197_s2 + $0x24] sm:$0xf0] }
 0x2ba   :  { %1302 = vmatpush.bf16.msrb.mxu0 %v4715_v54  ;;  %663 = vst.msk [vmem:[#allocation3 + $0x130] sm:$0xf] %vm464_vm10, %v646_v32  ;;  %v5562_v32 = vld [vmem:[#allocation3 + $0x94] sm:$0xf] }
 0x2bb   :  { %991 = vst.msk [vmem:[#allocation3 + $0x130] sm:$0xff] %vm6331_vm14, %v975_v6  ;;  %v4700_v6 = vld [vmem:[#allocation3 + $0x88] sm:$0xf0] }
 0x2bc   :  { %1285 = vmatpush.bf16.msra.mxu3 %v4635_v1  ;;  %1342 = vmatpush.bf16.msrb.mxu2 %v4639_v46  ;;  %664 = vst.msk [vmem:[#allocation3 + $0x138] sm:$0xf] %vm464_vm10, %v648_v4  ;;  %v5563_v13 = vld [vmem:[#allocation3 + $0x94] sm:$0xf0]  ;;  %v4708_v3 = vld [vmem:[#allocation3 + $0x98] sm:$0xf0]  ;;  %v4627_v46 = vor.u32 %v5541_v17, %v4624_v18 }
 0x2bd   :  { %992 = vst.msk [vmem:[#allocation3 + $0x138] sm:$0xff] %vm6331_vm14, %v976_v8  ;;  %v4707_v14 = vor.u32 %v5563_v13, %v4706_v12  ;;  %v4711_v1 = vor.u32 %v5562_v32, %v4708_v3 }
 0x2bf   :  { %1286 = vmatmul.bf16.vlgmr.msra.gmra.mxu3 %v4611_v53  ;;  %1343 = vmatmul.bf16.vlgmr.msrb.gmra.mxu2 %v4611_v53  ;;  %v5560_v53 = vld [vmem:[#allocation3 + $0x84] sm:$0xf] }
 0x2c0   :  { %1354 = vmatpush.bf16.msrb.mxu3 %v4759_v7  ;;  %1303 = vmatpush.bf16.msrb.mxu0 %v4707_v14  ;;  %v947_v7 = vpop.permute.xlu2 %946  ;;  %v4703_v8 = vor.u32 %v5560_v53, %v4700_v6  ;;  %v1493_v14 = vld [vmem:[%s8198_s3] sm:$0xff] }
 0x2c1   :  { %v642_v20 = vpop.permute.xlu0 %641  ;;  %v955_v22 = vpop.permute.xlu1 %954  ;;  %v961_v12 = vrot.slane %v947_v7, 4  ;;  %1542 = vperm.xlu0 %5817, %v1493_v14  }
 0x2c2   :  { %661 = vst.msk [vmem:[#allocation3 + $0x120] sm:$0xf] %vm464_vm10, %v642_v20  ;;  %v965_v61 = vrot.slane %v955_v22, 4  ;;  %v4786_v28 = vld [vmem:[#allocation3 + $0x130] sm:$0xf] }
 0x2c3   :  { %989 = vst.msk [vmem:[#allocation3 + $0x120] sm:$0xff] %vm6331_vm14, %v973_v27  ;;  %v5582_v29 = vld [vmem:[#allocation3 + $0x134] sm:$0xf]  ;;  %v970_v56 = vsel %vm8205_vm2, %v947_v7, %v961_v12  ;;  %v1494_v12 = vld [vmem:[%s8198_s3 + $0x8] sm:$0xff] }
 0x2c4   :  { %1355 = vmatpush.bf16.msrb.mxu3 %v4751_v15  ;;  %1304 = vmatpush.bf16.msrb.mxu0 %v4699_v9  ;;  %v974_v34 = vsel %vm8205_vm2, %v955_v22, %v965_v61  ;;  %v5583_v10 = vld [vmem:[#allocation3 + $0x134] sm:$0xf0]  ;;  %v4788_v62 = vld [vmem:[#allocation3 + $0x138] sm:$0xf0]  ;;  %v4618_v22 = vld [vmem:[%s8197_s2 + $0x8] sm:$0xf] }
 0x2c5   :  { %990 = vst.msk [vmem:[#allocation3 + $0x128] sm:$0xff] %vm6331_vm14, %v974_v34  ;;  %v4787_v36 = vor.u32 %v5583_v10, %v4786_v28  ;;  %v4791_v11 = vor.u32 %v5582_v29, %v4788_v62  ;;  %v5540_v61 = vld [vmem:[%s8197_s2 + $0x10] sm:$0xf0]  ;;  %v5543_v34 = vld [vmem:[%s8197_s2 + $0x28] sm:$0xf0]  ;;  %v5922_v62 = vmov 2  }
 0x2c6   :  { %v4619_v33 = vor.u32 %v5540_v61, %v4618_v22  ;;  %5819 = vset.pattern.permute.xlu1 %v5922_v62 }
 0x2c7   :  { %1305 = vmatmul.bf16.vlgmr.msrb.gmra.mxu0 %v6552_v31  ;;  %1320 = vmatpush.bf16.msrb.mxu1 %v4787_v36 }
 0x2c8   :  { %1356 = vmatpush.bf16.msrb.mxu3 %v4743_v26  ;;  %1377 = vmatpush.bf16.msra.mxu0 %v4791_v11 }
 0x2c9   :  { %v945_v42 = vpop.permute.xlu0 %944  ;;  %v949_v45 = vpop.permute.xlu1 %948  ;;  %5818 = vset.pattern.permute.xlu0 %v5922_v62 }
 0x2ca   :  { %v962_v47 = vrot.slane %v949_v45, 4  ;;  %v4778_v43 = vld [vmem:[#allocation3 + $0x120] sm:$0xf]  ;;  %v5580_v50 = vld [vmem:[#allocation3 + $0x124] sm:$0xf]  ;;  %v960_v40 = vrot.slane %v945_v42, 4  ;;  %1515 = vperm.xlu0 %5818, %v1493_v14  }
 0x2cc   :  { %1357 = vmatpush.bf16.msrb.mxu3 %v4735_v35  ;;  %v971_v48 = vsel %vm8205_vm2, %v949_v45, %v962_v47  ;;  %v5581_v49 = vld [vmem:[#allocation3 + $0x124] sm:$0xf0]  ;;  %v4780_v51 = vld [vmem:[#allocation3 + $0x128] sm:$0xf0]  ;;  %v969_v24 = vsel %vm8205_vm2, %v945_v42, %v960_v40 }
 0x2cd   :  { %987 = vst.msk [vmem:[#allocation3 + $0x110] sm:$0xff] %vm6331_vm14, %v971_v48  ;;  %v4779_v52 = vor.u32 %v5581_v49, %v4778_v43  ;;  %v4783_v54 = vor.u32 %v5580_v50, %v4780_v51 }
 0x2cf   :  { %1291 = vmatmul.bf16.gmra.mxu3 %v4623_v37  ;;  %1348 = vmatmul.bf16.gmra.mxu2 %v4623_v37 }
 0x2d0   :  { %1358 = vmatpush.bf16.msrb.mxu3 %v4727_v30  ;;  %1321 = vmatpush.bf16.msrb.mxu1 %v4779_v52 }
 0x2d1   :  { %1378 = vmatpush.bf16.msra.mxu0 %v4783_v54  ;;  %v951_v4 = vpop.permute.xlu0 %950  ;;  %v640_v5 = vpop.permute.xlu1 %639 }
 0x2d2   :  { %v963_v23 = vrot.slane %v951_v4, 4  ;;  %660 = vst.msk [vmem:[#allocation3 + $0x118] sm:$0xf] %vm464_vm10, %v640_v5 }
 0x2d4   :  { %1359 = vmatpush.bf16.msrb.mxu3 %v4719_v0  ;;  %v972_v57 = vsel %vm8205_vm2, %v951_v4, %v963_v23  ;;  %v4770_v15 = vld [vmem:[#allocation3 + $0x110] sm:$0xf]  ;;  %v5578_v63 = vld [vmem:[#allocation3 + $0x114] sm:$0xf] }
 0x2d5   :  { %988 = vst.msk [vmem:[#allocation3 + $0x118] sm:$0xff] %vm6331_vm14, %v972_v57 }
 0x2d7   :  { %1310 = vmatmul.bf16.gmra.mxu0 %v4627_v46 }
 0x2d8   :  { %1360 = vmatpush.bf16.msrb.mxu3 %v4711_v1 }
 0x2d9   :  { %v636_v13 = vpop.permute.xlu0 %635  ;;  %v634_v59 = vpop.permute.xlu1 %633 }
 0x2da   :  { %658 = vst.msk [vmem:[#allocation3 + $0x108] sm:$0xf] %vm464_vm10, %v636_v13  ;;  %v1495_v13 = vld [vmem:[%s8198_s3 + $0x10] sm:$0xff] }
 0x2db   :  { %657 = vst.msk [vmem:[#allocation3 + $0x100] sm:$0xf] %vm464_vm10, %v634_v59 }
 0x2dc   :  { %1361 = vmatpush.bf16.msrb.mxu3 %v4703_v8  ;;  %985 = vst.msk [vmem:[#allocation3 + $0x100] sm:$0xff] %vm6331_vm14, %v969_v24  ;;  %v5579_v58 = vld [vmem:[#allocation3 + $0x114] sm:$0xf0]  ;;  %v4772_v20 = vld [vmem:[#allocation3 + $0x118] sm:$0xf0] }
 0x2dd   :  { %986 = vst.msk [vmem:[#allocation3 + $0x108] sm:$0xff] %vm6331_vm14, %v970_v56  ;;  %v4771_v16 = vor.u32 %v5579_v58, %v4770_v15  ;;  %v4775_v27 = vor.u32 %v5578_v63, %v4772_v20 }
 0x2df   :  { %1322 = vmatpush.bf16.msrb.mxu1 %v4771_v16  ;;  %1362 = vmatmul.bf16.vlgmr.msrb.gmra.mxu3 %v6552_v31  ;;  %v4630_v31 = vld [vmem:[%s8197_s2 + $0x20] sm:$0xf]  ;;  %s5942_s2 = smov 60  }
 0x2e0   :  { %1379 = vmatpush.bf16.msra.mxu0 %v4775_v27  ;;  %v4631_v10 = vor.u32 %v5543_v34, %v4630_v31 }
 0x2e3   :  { %v4762_v9 = vld [vmem:[#allocation3 + $0x100] sm:$0xf]  ;;  %v5576_v25 = vld [vmem:[#allocation3 + $0x104] sm:$0xf] }
 0x2e4   :  { %v5577_v26 = vld [vmem:[#allocation3 + $0x104] sm:$0xf0]  ;;  %v4764_v28 = vld [vmem:[#allocation3 + $0x108] sm:$0xf0] }
 0x2e5   :  { %v4763_v44 = vor.u32 %v5577_v26, %v4762_v9  ;;  %v4767_v29 = vor.u32 %v5576_v25, %v4764_v28 }
 0x2e7   :  { %1323 = vmatpush.bf16.msrb.mxu1 %v4763_v44  ;;  %1380 = vmatpush.bf16.msra.mxu0 %v4767_v29 }
 0x2ea   :  { %4792 = vmatmul.msk.bf16.vlgmr.msrb.gmra.mxu1 %vm8202_vm3, %v4619_v33  ;;  %4794 = vmatmul.msk.bf16.vlgmr.msra.gmra.mxu0 %vm8202_vm3, %v4619_v33 }
 0x2ef   :  { %1367 = vmatmul.bf16.gmra.mxu3 %v4627_v46 }
 0x2fa   :  { %4793 = vmatmul.msk.bf16.gmra.mxu1 %vm8202_vm3, %v4631_v10  ;;  %4795 = vmatmul.msk.bf16.gmra.mxu0 %vm8202_vm3, %v4631_v10  ;;  %vm8209_vm3 = vcmask 107521  }
 0x342   :  { %v1287_v36 = vpop.f32.mrf.mxu3  ;;  %v1344_v30 = vpop.f32.mrf.mxu2 }
 0x344   :  { %v1306_v11 = vpop.f32.mrf.mxu0 }
 0x345   :  { %v1307_v43 = vadd.f32 %v1306_v11, %v1287_v36 }
 0x34a   :  { %v1289_v60 = vpop.f32.mrf.mxu3  ;;  %v1346_v17 = vpop.f32.mrf.mxu2 }
 0x34c   :  { %v1308_v35 = vpop.f32.mrf.mxu0 }
 0x34d   :  { %v1309_v4 = vadd.f32 %v1308_v35, %v1289_v60  ;;  %v1496_v60 = vld [vmem:[%s8198_s3 + $0x18] sm:$0xff]  ;;  %v1543_v35 = vpop.permute.xlu0 %1542  ;;  %s5923_s3 = smov 52  }
 0x352   :  { %v1292_v38 = vpop.f32.mrf.mxu3  ;;  %v1349_v59 = vpop.f32.mrf.mxu2 }
 0x354   :  { %v1311_v39 = vpop.f32.mrf.mxu0 }
 0x355   :  { %v1312_v41 = vadd.f32 %v1311_v39, %v1292_v38  ;;  %v1516_v38 = vpop.permute.xlu0 %1515 }
 0x35a   :  { %v1294_v42 = vpop.f32.mrf.mxu3  ;;  %v1351_v63 = vpop.f32.mrf.mxu2 }
 0x35c   :  { %v1313_v45 = vpop.f32.mrf.mxu0 }
 0x35d   :  { %v1314_v2 = vadd.f32 %v1313_v45, %v1294_v42 }
 0x362   :  { %v1363_v47 = vpop.f32.mrf.mxu3 }
 0x363   :  { %v1364_v37 = vadd.f32 %v1363_v47, %v1344_v30 }
 0x367   :  { %v1325_v21 = vpop.f32.mrf.mxu1  ;;  %v1382_v48 = vpop.f32.mrf.mxu0 }
 0x368   :  { %v6607_v49 = vadd.f32 %v1325_v21, %v1307_v43  ;;  %v6609_v50 = vadd.f32 %v1382_v48, %v1364_v37 }
 0x36a   :  { %v1393_v51 = vsel %vm8207_vm6, %v6609_v50, 0.0  ;;  %v1409_v52 = vmul.f32 %v6607_v49, %v6607_v49  ;;  %v1410_v54 = vmul.f32 %v6609_v50, %v6609_v50  ;;  %v1365_v55 = vpop.f32.mrf.mxu3 }
 0x36b   :  { %v1394_v0 = vadd.f32 %v1393_v51, %v6607_v49  ;;  %v1366_v5 = vadd.f32 %v1365_v55, %v1346_v17 }
 0x36c   :  { %v1417_v3 = vsel %vm8207_vm6, %v1410_v54, 0.0 }
 0x36d   :  { %1395 = vadd.xlane.f32.xlu2 %v1394_v0  ;;  %v1418_v18 = vadd.f32 %v1417_v3, %v1409_v52 }
 0x36f   :  { %v1327_v23 = vpop.f32.mrf.mxu1  ;;  %v1384_v32 = vpop.f32.mrf.mxu0  ;;  %1419 = vadd.xlane.f32.xlu1 %v1418_v18 }
 0x370   :  { %v6619_v1 = vadd.f32 %v1327_v23, %v1309_v4  ;;  %v6621_v46 = vadd.f32 %v1384_v32, %v1366_v5 }
 0x372   :  { %v1397_v57 = vsel %vm8207_vm6, %v6621_v46, 0.0  ;;  %v1411_v6 = vmul.f32 %v6619_v1, %v6619_v1  ;;  %v1412_v7 = vmul.f32 %v6621_v46, %v6621_v46  ;;  %v1368_v14 = vpop.f32.mrf.mxu3 }
 0x373   :  { %v1398_v53 = vadd.f32 %v1397_v57, %v6619_v1  ;;  %v1369_v16 = vadd.f32 %v1368_v14, %v1349_v59 }
 0x374   :  { %v1421_v40 = vsel %vm8207_vm6, %v1412_v7, 0.0 }
 0x375   :  { %1399 = vadd.xlane.f32.xlu0 %v1398_v53  ;;  %v1422_v8 = vadd.f32 %v1421_v40, %v1411_v6 }
 0x377   :  { %1423 = vadd.xlane.f32.xlu2 %v1422_v8  ;;  %v1387_v24 = vpop.f32.mrf.mxu0  ;;  %v1330_v15 = vpop.f32.mrf.mxu1 }
 0x378   :  { %v6641_v9 = vadd.f32 %v1387_v24, %v1369_v16  ;;  %v6647_v61 = vadd.f32 %v1330_v15, %v1312_v41 }
 0x37a   :  { %v1370_v56 = vpop.f32.mrf.mxu3  ;;  %v1401_v26 = vsel %vm8207_vm6, %v6641_v9, 0.0  ;;  %v1414_v29 = vmul.f32 %v6641_v9, %v6641_v9  ;;  %v1413_v34 = vmul.f32 %v6647_v61, %v6647_v61 }
 0x37b   :  { %v1371_v58 = vadd.f32 %v1370_v56, %v1351_v63  ;;  %v1402_v33 = vadd.f32 %v1401_v26, %v6647_v61 }
 0x37c   :  { %v1425_v10 = vsel %vm8207_vm6, %v1414_v29, 0.0 }
 0x37f   :  { %v1389_v20 = vpop.f32.mrf.mxu0  ;;  %v1332_v27 = vpop.f32.mrf.mxu1 }
 0x380   :  { %v6639_v22 = vadd.f32 %v1389_v20, %v1371_v58  ;;  %v6643_v25 = vadd.f32 %v1332_v27, %v1314_v2 }
 0x382   :  { %v1415_v28 = vmul.f32 %v6643_v25, %v6643_v25  ;;  %v1405_v36 = vsel %vm8207_vm6, %v6639_v22, 0.0 }
 0x383   :  { %v1406_v11 = vadd.f32 %v1405_v36, %v6643_v25 }
 0x388   :  { %1520 = vperm.xlu1 %5819, %v1494_v12  }
 0x389   :  { %1525 = vperm.xlu0 %5818, %v1495_v13  }
 0x38f   :  { %1546 = vperm.xlu2 %5820, %v1494_v12  }
 0x390   :  { %5821 = vset.pattern.permute.xlu1 %v5921_v19 }
 0x391   :  { %5823 = vset.pattern.permute.xlu0 %v5921_v19  ;;  %v1416_v19 = vmul.f32 %v6639_v22, %v6639_v22 }
 0x393   :  { %v1429_v44 = vsel %vm8207_vm6, %v1416_v19, 0.0 }
 0x394   :  { %v1430_v31 = vadd.f32 %v1429_v44, %v1415_v28 }
 0x397   :  { %5822 = vset.pattern.permute.xlu2 %v5922_v62  ;;  %v1426_v62 = vadd.f32 %v1425_v10, %v1413_v34 }
 0x3b2   :  { %1403 = vadd.xlane.f32.xlu1 %v1402_v33 }
 0x3b3   :  { %1431 = vadd.xlane.f32.xlu0 %v1430_v31 }
 0x3b8   :  { %1427 = vadd.xlane.f32.xlu2 %v1426_v62  ;;  %v1587_v62 = vld [vmem:[#allocation5] sm:$0x1] }
 0x3c0   :  { %1407 = vadd.xlane.f32.xlu2 %v1406_v11 }
 0x3cb   :  { %1550 = vperm.xlu1 %5821, %v1495_v13  }
 0x3d3   :  { %1554 = vperm.xlu1 %5821, %v1496_v60  }
 0x3d8   :  { %1530 = vperm.xlu2 %5822, %v1496_v60  }
 0x3e0   :  { %v1396_v39 = vpop.xlane.xlu2 %1395 }
 0x3e1   :  { %v1433_v41 = vmul.f32 0.0055555557, %v1396_v39 }
 0x3e2   :  { %v1420_v42 = vpop.xlane.xlu1 %1419 }
 0x3e3   :  { %v1437_v45 = vmul.f32 0.0055555557, %v1420_v42  ;;  %v1441_v2 = vmul.f32 %v1433_v41, %v1433_v41  ;;  %v1497_v32 = vsub.f32 %v6607_v49, %v1433_v41  ;;  %v1498_v57 = vsub.f32 %v6609_v50, %v1433_v41 }
 0x3e5   :  { %v1445_v47 = vsub.f32 %v1437_v45, %v1441_v2 }
 0x3e7   :  { %v1449_v30 = vadd.f32 1e-05, %v1445_v47 }
 0x3e8   :  { %v1400_v37 = vpop.xlane.xlu0 %1399 }
 0x3e9   :  { %5857 = vrsqrt.f32 %v1449_v30  ;;  %v1434_v43 = vmul.f32 0.0055555557, %v1400_v37  ;;  %vm1459_vm8 = vweird.f32 %v1449_v30 }
 0x3ea   :  { %v1424_v21 = vpop.xlane.xlu2 %1423 }
 0x3eb   :  { %v1438_v48 = vmul.f32 0.0055555557, %v1424_v21  ;;  %v1442_v51 = vmul.f32 %v1434_v43, %v1434_v43  ;;  %v1499_v63 = vsub.f32 %v6619_v1, %v1434_v43  ;;  %v1500_v49 = vsub.f32 %v6621_v46, %v1434_v43 }
 0x3ed   :  { %v1446_v52 = vsub.f32 %v1438_v48, %v1442_v51 }
 0x3ef   :  { %v5858_v54 = vpop.eup %5857  ;;  %v1450_v55 = vadd.f32 1e-05, %v1446_v52 }
 0x3f0   :  { %v1454_v0 = vmul.f32 %v5858_v54, %v1449_v30  ;;  %vm1460_vm7 = vweird.f32 %v5858_v54 }
 0x3f1   :  { %5859 = vrsqrt.f32 %v1450_v55  ;;  %vm1461_vm9 = vmor %vm1459_vm8, %vm1460_vm7  ;;  %vm1469_vm11 = vweird.f32 %v1450_v55 }
 0x3f2   :  { %v1455_v3 = vmul.f32 %v5858_v54, %v1454_v0  ;;  %v1547_v19 = vpop.permute.xlu2 %1546  ;;  %vm1586_vm7 = vmand %vm1584_vm0, %vm1585_vm1 }
 0x3f4   :  { %v1456_v17 = vmul.f32 0.5, %v1455_v3 }
 0x3f6   :  { %v1457_v18 = vsub.f32 1.5, %v1456_v17 }
 0x3f7   :  { %v5860_v4 = vpop.eup %5859 }
 0x3f8   :  { %v1458_v5 = vmul.f32 %v5858_v54, %v1457_v18  ;;  %v1464_v23 = vmul.f32 %v5860_v4, %v1450_v55  ;;  %vm1470_vm10 = vweird.f32 %v5860_v4 }
 0x3f9   :  { %vm1471_vm14 = vmor %vm1469_vm11, %vm1470_vm10 }
 0x3fa   :  { %v1462_v6 = vsel %vm1461_vm9, %v5858_v54, %v1458_v5  ;;  %v1465_v7 = vmul.f32 %v5860_v4, %v1464_v23  ;;  %v1521_v50 = vpop.permute.xlu1 %1520 }
 0x3fb   :  { %v1505_v53 = vmul.f32 %v1497_v32, %v1462_v6  ;;  %v1506_v40 = vmul.f32 %v1498_v57, %v1462_v6  ;;  %v1526_v55 = vpop.permute.xlu0 %1525 }
 0x3fc   :  { %v1466_v8 = vmul.f32 0.5, %v1465_v7 }
 0x3fd   :  { %v1533_v12 = vmul.f32 %v1516_v38, %v1505_v53  ;;  %v1534_v13 = vmul.f32 %v1516_v38, %v1506_v40 }
 0x3fe   :  { %v1467_v59 = vsub.f32 1.5, %v1466_v8 }
 0x3ff   :  { %v1557_v14 = vadd.f32 %v1543_v35, %v1533_v12  ;;  %v1558_v24 = vadd.f32 %v1543_v35, %v1534_v13 }
 0x400   :  { %v1468_v15 = vmul.f32 %v5860_v4, %v1467_v59 }
 0x401   :  { %5861 = vtanh.f32 %v1557_v14 }
 0x402   :  { %5863 = vtanh.f32 %v1558_v24  ;;  %v1472_v56 = vsel %vm1471_vm14, %v5860_v4, %v1468_v15 }
 0x403   :  { %v1507_v58 = vmul.f32 %v1499_v63, %v1472_v56  ;;  %v1508_v20 = vmul.f32 %v1500_v49, %v1472_v56 }
 0x405   :  { %v1535_v16 = vmul.f32 %v1521_v50, %v1507_v58  ;;  %v1536_v27 = vmul.f32 %v1521_v50, %v1508_v20 }
 0x407   :  { %v5862_v26 = vpop.eup %5861  ;;  %v1559_v28 = vadd.f32 %v1547_v19, %v1535_v16  ;;  %v1560_v44 = vadd.f32 %v1547_v19, %v1536_v27 }
 0x408   :  { %v5864_v29 = vpop.eup %5863 }
 0x409   :  { %v1573_v1 = vpack.c.bf16 %v5864_v29, %v5862_v26  ;;  %5865 = vtanh.f32 %v1559_v28 }
 0x40a   :  { %5867 = vtanh.f32 %v1560_v44 }
 0x40b   :  { %1579 = vst.msk [vmem:[#allocation4] sm:$0xff] %vm6672_vm15, %v1573_v1 }
 0x40f   :  { %v5866_v46 = vpop.eup %5865 }
 0x410   :  { %v5868_v31 = vpop.eup %5867 }
 0x411   :  { %v1574_v10 = vpack.c.bf16 %v5868_v31, %v5866_v46 }
 0x412   :  { %v1616_v34 = vld [vmem:[#allocation4] sm:$0x2]  ;;  %v1590_v36 = vld [vmem:[#allocation4] sm:$0x1]  ;;  %v1653_v37 = vld [vmem:[#allocation4] sm:$0x4] }
 0x413   :  { %1618 = vst [vmem:[#allocation1] sm:$0xff] %v1616_v34  ;;  %v1592_v11 = vrot.slane %v1590_v36, 3  ;;  %v1583_v60 = vld [vmem:[#allocation4] sm:$0x1]  ;;  %v1636_v42 = vld [vmem:[#allocation4] sm:$0x2] }
 0x414   :  { %1580 = vst.msk [vmem:[#allocation4 + $0x8] sm:$0xff] %vm6672_vm15, %v1574_v10  ;;  %v2211_v35 = vld [vmem:[#allocation4] sm:$0x11]  ;;  %v1588_v38 = vsel %vm1586_vm7, %v1583_v60, %v1587_v62  ;;  %v1673_v54 = vld [vmem:[#allocation4] sm:$0x4]  ;;  %vm1609_vm7 = vcmask 418817  }
 0x415   :  { %v1596_v39 = vsel %vm1593_vm4, %v1590_v36, %v1592_v11  ;;  %1589 = vst [vmem:[#allocation5] sm:$0x1] %v1588_v38  ;;  %v2213_v2 = vrot.slane %v2211_v35, 3  ;;  %v1696_v23 = vld [vmem:[#allocation4] sm:$0x8] }
 0x416   :  { %v1597_v45 = vshrl.u32 %v1596_v39, 16  ;;  %v1710_v14 = vld [vmem:[#allocation4] sm:$0x8] }
 0x417   :  { %v2216_v47 = vsel %vm1593_vm4, %v2211_v35, %v2213_v2 }
 0x418   :  { %1601 = vrot.lane.b32.xlu1 %v1597_v45, %s5924_s15  ;;  %v2217_v43 = vshll.u32 %v2216_v47, 16 }
 0x41a   :  { %v1620_v41 = vld [vmem:[#allocation1 + $0x1] ss:$4 sm:$0xff] }
 0x41b   :  { %1638 = vst [vmem:[#allocation1] sm:$0xff] %v1636_v42  ;;  %1622 = vrot.lane.b32.xlu2 %v1620_v41, %s5923_s3  ;;  %v1777_v20 = vld [vmem:[#allocation4 + $0x8] sm:$0x2] }
 0x420   :  { %2219 = vrot.lane.b32.xlu1 %v2217_v43, %s5925_s16 }
 0x422   :  { %v1640_v30 = vld [vmem:[#allocation1 + $0x1] ss:$4 sm:$0xff] }
 0x423   :  { %1655 = vst [vmem:[#allocation1] sm:$0xff] %v1653_v37  ;;  %v1641_v21 = vshrl.u32 %v1640_v30, 16 }
 0x425   :  { %1645 = vrot.lane.b32.xlu2 %v1641_v21, %s5926_s17  ;;  %v1404_v48 = vpop.xlane.xlu1 %1403  ;;  %v1814_v21 = vld [vmem:[#allocation4 + $0x8] sm:$0x4] }
 0x426   :  { %v1435_v51 = vmul.f32 0.0055555557, %v1404_v48  ;;  %v1432_v32 = vpop.xlane.xlu0 %1431 }
 0x427   :  { %v1440_v53 = vmul.f32 0.0055555557, %v1432_v32 }
 0x428   :  { %v1443_v3 = vmul.f32 %v1435_v51, %v1435_v51  ;;  %v1501_v16 = vsub.f32 %v6647_v61, %v1435_v51  ;;  %v1502_v27 = vsub.f32 %v6641_v9, %v1435_v51  ;;  %v1791_v61 = vld [vmem:[#allocation4 + $0x8] sm:$0x2] }
 0x42a   :  { %v1657_v52 = vld [vmem:[#allocation1 + $0x2] ss:$4 sm:$0xff] }
 0x42b   :  { %1675 = vst [vmem:[#allocation1] sm:$0xff] %v1673_v54  ;;  %v1428_v0 = vpop.xlane.xlu2 %1427  ;;  %1659 = vrot.lane.b32.xlu1 %v1657_v52, %s5927_s18  ;;  %v1834_v54 = vld [vmem:[#allocation4 + $0x8] sm:$0x4] }
 0x42c   :  { %v1439_v17 = vmul.f32 0.0055555557, %v1428_v0 }
 0x42e   :  { %v1447_v18 = vsub.f32 %v1439_v17, %v1443_v3  ;;  %v1851_v17 = vld [vmem:[#allocation4 + $0x8] sm:$0x8] }
 0x430   :  { %v1451_v4 = vadd.f32 1e-05, %v1447_v18 }
 0x432   :  { %v1677_v5 = vld [vmem:[#allocation1 + $0x2] ss:$4 sm:$0xff]  ;;  %5869 = vrsqrt.f32 %v1451_v4  ;;  %vm1479_vm8 = vweird.f32 %v1451_v4 }
 0x433   :  { %1698 = vst [vmem:[#allocation1] sm:$0xff] %v1696_v23  ;;  %v1408_v57 = vpop.xlane.xlu2 %1407  ;;  %v1678_v6 = vshrl.u32 %v1677_v5, 16 }
 0x434   :  { %v1436_v7 = vmul.f32 0.0055555557, %v1408_v57 }
 0x435   :  { %1682 = vrot.lane.b32.xlu2 %v1678_v6, %s5928_s19 }
 0x436   :  { %v1444_v40 = vmul.f32 %v1436_v7, %v1436_v7  ;;  %v1503_v60 = vsub.f32 %v6643_v25, %v1436_v7  ;;  %v1504_v35 = vsub.f32 %v6639_v22, %v1436_v7 }
 0x438   :  { %v5870_v8 = vpop.eup %5869  ;;  %v1448_v12 = vsub.f32 %v1440_v53, %v1444_v40 }
 0x439   :  { %v1474_v13 = vmul.f32 %v5870_v8, %v1451_v4  ;;  %vm1480_vm12 = vweird.f32 %v5870_v8  ;;  %v1871_v4 = vld [vmem:[#allocation4 + $0x8] sm:$0x8] }
 0x43a   :  { %v1700_v59 = vld [vmem:[#allocation1 + $0x3] ss:$4 sm:$0xff]  ;;  %v1452_v24 = vadd.f32 1e-05, %v1448_v12  ;;  %vm1481_vm9 = vmor %vm1479_vm8, %vm1480_vm12  ;;  %vm1610_vm12 = vsmask.f32 1280 }
 0x43b   :  { %1712 = vst [vmem:[#allocation1] sm:$0xff] %v1710_v14  ;;  %v1475_v15 = vmul.f32 %v5870_v8, %v1474_v13  ;;  %v1531_v38 = vpop.permute.xlu2 %1530  ;;  %v1613_v13 = vld [vmem:[#allocation5] sm:$0x3] }
 0x43c   :  { %5871 = vrsqrt.f32 %v1452_v24  ;;  %vm1489_vm11 = vweird.f32 %v1452_v24 }
 0x43d   :  { %v1476_v63 = vmul.f32 0.5, %v1475_v15  ;;  %1702 = vrot.lane.b32.xlu2 %v1700_v59, %s5929_s20  ;;  %v1551_v29 = vpop.permute.xlu1 %1550 }
 0x43f   :  { %v1477_v49 = vsub.f32 1.5, %v1476_v63 }
 0x441   :  { %v1478_v50 = vmul.f32 %v5870_v8, %v1477_v49 }
 0x442   :  { %v5872_v56 = vpop.eup %5871  ;;  %v6690_v58 = vld [vmem:[#allocation1 + $0x3] ss:$4 sm:$0xff] }
 0x443   :  { %1779 = vst [vmem:[#allocation1] sm:$0xff] %v1777_v20  ;;  %v1484_v19 = vmul.f32 %v5872_v56, %v1452_v24  ;;  %v1482_v26 = vsel %vm1481_vm9, %v5870_v8, %v1478_v50  ;;  %vm1490_vm10 = vweird.f32 %v5872_v56  ;;  %vm1611_vm9 = vmand %vm1609_vm7, %vm1610_vm12 }
 0x444   :  { %v1509_v28 = vmul.f32 %v1501_v16, %v1482_v26  ;;  %v1510_v44 = vmul.f32 %v1502_v27, %v1482_v26  ;;  %vm1491_vm14 = vmor %vm1489_vm11, %vm1490_vm10  ;;  %vm8206_vm10 = vcmask 736256  }
 0x445   :  { %v1485_v1 = vmul.f32 %v5872_v56, %v1484_v19  ;;  %v1555_v45 = vpop.permute.xlu1 %1554 }
 0x446   :  { %v1537_v46 = vmul.f32 %v1526_v55, %v1509_v28  ;;  %v1538_v31 = vmul.f32 %v1526_v55, %v1510_v44 }
 0x447   :  { %v1486_v34 = vmul.f32 0.5, %v1485_v1 }
 0x448   :  { %v1561_v10 = vadd.f32 %v1551_v29, %v1537_v46  ;;  %v1562_v62 = vadd.f32 %v1551_v29, %v1538_v31  ;;  %v2230_v46 = vld [vmem:[#allocation4] sm:$0x11]  ;;  %v2313_v31 = vld [vmem:[#allocation4] sm:$0x88] }
 0x449   :  { %v1487_v36 = vsub.f32 1.5, %v1486_v34  ;;  %v2232_v34 = vrot.slane %v2230_v46, 3 }
 0x44a   :  { %v6694_v11 = vld [vmem:[#allocation1 + $0x1] ss:$4 sm:$0xff]  ;;  %5873 = vtanh.f32 %v1561_v10 }
 0x44b   :  { %1793 = vst [vmem:[#allocation1] sm:$0xff] %v1791_v61  ;;  %5875 = vtanh.f32 %v1562_v62  ;;  %v1488_v9 = vmul.f32 %v5872_v56, %v1487_v36 }
 0x44d   :  { %v1492_v39 = vsel %vm1491_vm14, %v5872_v56, %v1488_v9  ;;  %vm1628_vm14 = vcmask 1040800   ;;  %v2235_v9 = vsel %vm1593_vm4, %v2230_v46, %v2232_v34 }
 0x44e   :  { %v1511_v41 = vmul.f32 %v1503_v60, %v1492_v39  ;;  %v1512_v42 = vmul.f32 %v1504_v35, %v1492_v39  ;;  %vm6727_vm5 = vmand %vm1628_vm14, %vm1585_vm1 }
 0x450   :  { %v5874_v2 = vpop.eup %5873  ;;  %v1539_v47 = vmul.f32 %v1531_v38, %v1511_v41  ;;  %v1540_v30 = vmul.f32 %v1531_v38, %v1512_v42 }
 0x451   :  { %v5876_v37 = vpop.eup %5875 }
 0x452   :  { %v6698_v43 = vld [vmem:[#allocation1 + $0x1] ss:$4 sm:$0xff]  ;;  %v1575_v48 = vpack.c.bf16 %v5876_v37, %v5874_v2  ;;  %v1563_v51 = vadd.f32 %v1555_v45, %v1539_v47  ;;  %v1564_v52 = vadd.f32 %v1555_v45, %v1540_v30 }
 0x453   :  { %1816 = vst [vmem:[#allocation1] sm:$0xff] %v1814_v21 }
 0x454   :  { %1581 = vst.msk [vmem:[#allocation4 + $0x10] sm:$0xff] %vm6672_vm15, %v1575_v48  ;;  %5877 = vtanh.f32 %v1563_v51 }
 0x455   :  { %5879 = vtanh.f32 %v1564_v52 }
 0x45a   :  { %v5878_v22 = vpop.eup %5877  ;;  %v6702_v25 = vld [vmem:[#allocation1 + $0x2] ss:$4 sm:$0xff] }
 0x45b   :  { %v5880_v55 = vpop.eup %5879  ;;  %1836 = vst [vmem:[#allocation1] sm:$0xff] %v1834_v54  ;;  %v1932_v23 = vld [vmem:[#allocation4 + $0x10] sm:$0x2]  ;;  %v1975_v33 = vld [vmem:[#allocation4 + $0x10] sm:$0x4] }
 0x45c   :  { %v1576_v0 = vpack.c.bf16 %v5880_v55, %v5878_v22  ;;  %v1952_v57 = vld [vmem:[#allocation4 + $0x10] sm:$0x2]  ;;  %v1989_v53 = vld [vmem:[#allocation4 + $0x10] sm:$0x4]  ;;  %v2012_v14 = vld [vmem:[#allocation4 + $0x10] sm:$0x8] }
 0x45d   :  { %v2032_v19 = vld [vmem:[#allocation4 + $0x10] sm:$0x8] }
 0x45e   :  { %1582 = vst.msk [vmem:[#allocation4 + $0x18] sm:$0xff] %vm6672_vm15, %v1576_v0  ;;  %vm1607_vm15 = vcmask 1041104  }
 0x45f   :  { %vm1608_vm8 = vmand %vm1607_vm15, %vm1585_vm1 }
 0x460   :  { %vm1612_vm11 = vmor %vm1611_vm9, %vm1608_vm8  ;;  %vm2225_vm9 = vsmask.f32 7938 }
 0x461   :  { %vm6733_vm8 = vmand %vm8209_vm3, %vm1610_vm12  ;;  %vm8211_vm3 = vcmask 222209  }
 0x462   :  { %v6706_v3 = vld [vmem:[#allocation1 + $0x2] ss:$4 sm:$0xff]  ;;  %vm2226_vm2 = vmand %vm1584_vm0, %vm2225_vm9 }
 0x463   :  { %1853 = vst [vmem:[#allocation1] sm:$0xff] %v1851_v17 }
 0x465   :  { %v2094_v62 = vld [vmem:[#allocation4 + $0x18] sm:$0x2]  ;;  %v2131_v51 = vld [vmem:[#allocation4 + $0x18] sm:$0x4] }
 0x466   :  { %v2108_v45 = vld [vmem:[#allocation4 + $0x18] sm:$0x2] }
 0x46a   :  { %v6708_v18 = vld [vmem:[#allocation1 + $0x3] ss:$4 sm:$0xff] }
 0x46b   :  { %1873 = vst [vmem:[#allocation1] sm:$0xff] %v1871_v4 }
 0x472   :  { %v6710_v5 = vld [vmem:[#allocation1 + $0x3] ss:$4 sm:$0xff] }
 0x473   :  { %1934 = vst [vmem:[#allocation1] sm:$0xff] %v1932_v23  ;;  %v2151_v23 = vld [vmem:[#allocation4 + $0x18] sm:$0x4] }
 0x475   :  { %v1623_v15 = vpop.permute.xlu2 %1622 }
 0x476   :  { %v1624_v56 = vrot.slane %v1623_v15, 7 }
 0x478   :  { %v1626_v26 = vsel %vm8207_vm6, %v1624_v56, %v1623_v15  ;;  %v2262_v15 = vld [vmem:[#allocation4] sm:$0x22] }
 0x47a   :  { %v6712_v32 = vld [vmem:[#allocation1 + $0x1] ss:$4 sm:$0xff] }
 0x47b   :  { %1954 = vst [vmem:[#allocation1] sm:$0xff] %v1952_v57 }
 0x47f   :  { %v1646_v36 = vpop.permute.xlu2 %1645 }
 0x482   :  { %v6714_v6 = vld [vmem:[#allocation1 + $0x1] ss:$4 sm:$0xff] }
 0x483   :  { %1977 = vst [vmem:[#allocation1] sm:$0xff] %v1975_v33 }
 0x48a   :  { %v6716_v7 = vld [vmem:[#allocation1 + $0x2] ss:$4 sm:$0xff]  ;;  %v1602_v40 = vpop.permute.xlu1 %1601 }
 0x48b   :  { %1991 = vst [vmem:[#allocation1] sm:$0xff] %v1989_v53  ;;  %v1603_v8 = vrot.slane %v1602_v40, 7 }
 0x48d   :  { %v1605_v12 = vsel %vm8206_vm10, %v1603_v8, %v1602_v40  ;;  %vm8216_vm10 = vsmask.f32 7942  ;;  %v2174_v8 = vld [vmem:[#allocation4 + $0x18] sm:$0x8] }
 0x48e   :  { %v1614_v24 = vsel %vm1612_vm11, %v1605_v12, %v1613_v13  ;;  %vm1632_vm11 = vmor %vm6733_vm8, %vm6727_vm5  ;;  %v2188_v13 = vld [vmem:[#allocation4 + $0x18] sm:$0x8] }
 0x48f   :  { %1615 = vst [vmem:[#allocation5] sm:$0x3] %v1614_v24  ;;  %vm6748_vm5 = vmand %vm1607_vm15, %vm2225_vm9  ;;  %vm1665_vm15 = vcmask 1041216   ;;  %v1683_v21 = vpop.permute.xlu2 %1682 }
 0x490   :  { %vm2239_vm0 = vmand %vm1609_vm7, %vm8216_vm10  ;;  %v1684_v52 = vrot.slane %v1683_v21, 7 }
 0x491   :  { %vm2240_vm8 = vmor %vm2239_vm0, %vm6748_vm5  ;;  %vm8210_vm5 = vcmask 850944  }
 0x492   :  { %v6723_v59 = vld [vmem:[#allocation1 + $0x2] ss:$4 sm:$0xff]  ;;  %v2220_v50 = vpop.permute.xlu1 %2219  ;;  %vm1666_vm7 = vmand %vm1665_vm15, %vm1585_vm1 }
 0x493   :  { %2014 = vst [vmem:[#allocation1] sm:$0xff] %v2012_v14  ;;  %v2221_v20 = vrot.slane %v2220_v50, 1  ;;  %v2244_v14 = vld [vmem:[#allocation4] sm:$0x22] }
 0x495   :  { %v2223_v16 = vsel %vm2222_vm13, %v2220_v50, %v2221_v20  ;;  %vm8208_vm13 = vcmask 843888   ;;  %v2277_v50 = vld [vmem:[#allocation4] sm:$0x44]  ;;  %v1715_v20 = vshrl.u32 %v6690_v58, 16 }
 0x496   :  { %v1633_v28 = vld [vmem:[#allocation5 + $0x1] sm:$0x3]  ;;  %v2227_v44 = vld [vmem:[#allocation5] sm:$0x1] }
 0x497   :  { %v1634_v29 = vsel %vm1632_vm11, %v1626_v26, %v1633_v28  ;;  %v2228_v1 = vsel %vm2226_vm2, %v2223_v16, %v2227_v44  ;;  %vm1649_vm2 = vmand %vm8208_vm13, %vm1585_vm1  ;;  %vm1667_vm11 = vcmask 533505   ;;  %vm1688_vm13 = vcmask 1040912   ;;  %v1703_v57 = vpop.permute.xlu2 %1702  ;;  %v1753_v16 = vld [vmem:[#allocation4 + $0x8] sm:$0x1] }
 0x498   :  { %1635 = vst [vmem:[#allocation5 + $0x1] sm:$0x3] %v1634_v29  ;;  %vm1668_vm6 = vmand %vm1667_vm11, %vm1610_vm12  ;;  %v1732_v44 = vld [vmem:[#allocation4 + $0x8] sm:$0x1]  ;;  %v1755_v29 = vrot.slane %v1753_v16, 3 }
 0x499   :  { %2229 = vst [vmem:[#allocation5] sm:$0x1] %v2228_v1  ;;  %vm1669_vm0 = vmor %vm1668_vm6, %vm1666_vm7  ;;  %vm8212_vm7 = vcmask 539648   ;;  %v1734_v1 = vrot.slane %v1732_v44, 3 }
 0x49a   :  { %v6743_v27 = vld [vmem:[#allocation1 + $0x3] ss:$4 sm:$0xff]  ;;  %v1686_v55 = vsel %vm8212_vm7, %v1684_v52, %v1683_v21  ;;  %v1758_v46 = vsel %vm1593_vm4, %v1753_v16, %v1755_v29  ;;  %v1839_v21 = vshrl.u32 %v6706_v3, 16  ;;  %v1894_v3 = vld [vmem:[#allocation4 + $0x10] sm:$0x1]  ;;  %vm8266_vm7 = vcmask 736256  }
 0x49b   :  { %2034 = vst [vmem:[#allocation1] sm:$0xff] %v2032_v19  ;;  %v2296_v19 = vld [vmem:[#allocation4] sm:$0x44]  ;;  %v1737_v34 = vsel %vm1593_vm4, %v1732_v44, %v1734_v1  ;;  %v1759_v58 = vshrl.u32 %v1758_v46, 16  ;;  %v2504_v44 = vld [vmem:[#allocation4 + $0x10] sm:$0x11] }
 0x49c   :  { %v2506_v29 = vrot.slane %v2504_v44, 3  ;;  %v2540_v1 = vld [vmem:[#allocation4 + $0x10] sm:$0x22] }
 0x49d   :  { %v1660_v39 = vpop.permute.xlu1 %1659 }
 0x49e   :  { %v1661_v41 = vrot.slane %v1660_v39, 7  ;;  %v2509_v46 = vsel %vm1593_vm4, %v2504_v44, %v2506_v29 }
 0x49f   :  { %v1650_v61 = vld [vmem:[#allocation5 + $0x2] sm:$0x1] }
 0x4a0   :  { %v2241_v60 = vld [vmem:[#allocation5] sm:$0x3]  ;;  %v1651_v35 = vsel %vm1649_vm2, %v1646_v36, %v1650_v61  ;;  %v1663_v2 = vsel %vm8210_vm5, %v1661_v41, %v1660_v39  ;;  %vm6770_vm2 = vmand %vm1688_vm13, %vm1585_vm1  ;;  %v2329_v36 = vld [vmem:[#allocation4] sm:$0x88]  ;;  %v1796_v41 = vshrl.u32 %v6698_v43, 16 }
 0x4a1   :  { %v2242_v38 = vsel %vm2240_vm8, %v2235_v9, %v2241_v60  ;;  %1652 = vst [vmem:[#allocation5 + $0x2] sm:$0x1] %v1651_v35  ;;  %vm1691_vm8 = vmand %vm8211_vm3, %vm1610_vm12  ;;  %v2347_v60 = vld [vmem:[#allocation4 + $0x8] sm:$0x11]  ;;  %v2384_v35 = vld [vmem:[#allocation4 + $0x8] sm:$0x22] }
 0x4a2   :  { %v6754_v10 = vld [vmem:[#allocation1 + $0x3] ss:$4 sm:$0xff]  ;;  %2243 = vst [vmem:[#allocation5] sm:$0x3] %v2242_v38  ;;  %vm1692_vm6 = vmor %vm1691_vm8, %vm6770_vm2  ;;  %v2349_v39 = vrot.slane %v2347_v60, 3  ;;  %vm8265_vm8 = vcmask 107521  }
 0x4a3   :  { %2096 = vst [vmem:[#allocation1] sm:$0xff] %v2094_v62  ;;  %vm6788_vm5 = vmand %vm1667_vm11, %vm8216_vm10 }
 0x4a4   :  { %vm2256_vm2 = vmand %vm1628_vm14, %vm2225_vm9  ;;  %vm8215_vm14 = vcmask 1041328  }
 0x4a8   :  { %v1670_v47 = vld [vmem:[#allocation5 + $0x2] sm:$0x3] }
 0x4a9   :  { %v1671_v30 = vsel %vm1669_vm0, %v1663_v2, %v1670_v47  ;;  %vm6782_vm0 = vmand %vm1665_vm15, %vm2225_vm9  ;;  %vm8213_vm15 = vcmask 958688   ;;  %v2352_v2 = vsel %vm1593_vm4, %v2347_v60, %v2349_v39 }
 0x4aa   :  { %v6765_v42 = vld [vmem:[#allocation1 + $0x1] ss:$4 sm:$0xff]  ;;  %1672 = vst [vmem:[#allocation5 + $0x2] sm:$0x3] %v1671_v30  ;;  %vm2292_vm3 = vmor %vm6788_vm5, %vm6782_vm0  ;;  %v2353_v47 = vshll.u32 %v2352_v2, 16 }
 0x4ab   :  { %2110 = vst [vmem:[#allocation1] sm:$0xff] %v2108_v45  ;;  %vm1706_vm11 = vmand %vm8213_vm15, %vm1585_vm1  ;;  %v2366_v45 = vld [vmem:[#allocation4 + $0x8] sm:$0x11]  ;;  %v2400_v30 = vld [vmem:[#allocation4 + $0x8] sm:$0x22] }
 0x4ac   :  { %vm6926_vm5 = vmand %vm1688_vm13, %vm2225_vm9  ;;  %vm8280_vm0 = vsmask.f32 7942 }
 0x4b1   :  { %v1693_v0 = vld [vmem:[#allocation5 + $0x3] sm:$0x3]  ;;  %v2259_v2 = vld [vmem:[#allocation5 + $0x1] sm:$0x3] }
 0x4b2   :  { %v6776_v48 = vld [vmem:[#allocation1 + $0x1] ss:$4 sm:$0xff]  ;;  %v1694_v17 = vsel %vm1692_vm6, %v1686_v55, %v1693_v0  ;;  %v1876_v55 = vshrl.u32 %v6710_v5, 16  ;;  %v1896_v0 = vrot.slane %v1894_v3, 3  ;;  %vm2257_vm6 = vmand %vm8265_vm8, %vm8216_vm10  ;;  %vm8267_vm8 = vcmask 843888  }
 0x4b3   :  { %2133 = vst [vmem:[#allocation1] sm:$0xff] %v2131_v51  ;;  %v2418_v51 = vld [vmem:[#allocation4 + $0x8] sm:$0x44] }
 0x4b4   :  { %1695 = vst [vmem:[#allocation5 + $0x3] sm:$0x3] %v1694_v17  ;;  %v1909_v17 = vld [vmem:[#allocation4 + $0x10] sm:$0x1] }
 0x4b5   :  { %v1911_v5 = vrot.slane %v1909_v17, 3 }
 0x4ba   :  { %v6797_v4 = vld [vmem:[#allocation1 + $0x2] ss:$4 sm:$0xff] }
 0x4bb   :  { %2153 = vst [vmem:[#allocation1] sm:$0xff] %v2151_v23  ;;  %v1707_v33 = vld [vmem:[#allocation5 + $0x4] sm:$0x1]  ;;  %v2436_v23 = vld [vmem:[#allocation4 + $0x8] sm:$0x44] }
 0x4bc   :  { %v1708_v53 = vsel %vm1706_vm11, %v1703_v57, %v1707_v33  ;;  %vm2258_vm11 = vmor %vm2257_vm6, %vm2256_vm2  ;;  %vm8214_vm2 = vcmask 648193  }
 0x4bd   :  { %1709 = vst [vmem:[#allocation5 + $0x4] sm:$0x1] %v1708_v53  ;;  %v1899_v53 = vsel %vm1593_vm4, %v1894_v3, %v1896_v0  ;;  %vm2273_vm6 = vmand %vm8267_vm8, %vm2225_vm9 }
 0x4be   :  { %vm6885_vm15 = vmand %vm8214_vm2, %vm1610_vm12  ;;  %vm1747_vm2 = vcmask 336897  }
 0x4c2   :  { %v6801_v40 = vld [vmem:[#allocation1 + $0x2] ss:$4 sm:$0xff] }
 0x4c3   :  { %2176 = vst [vmem:[#allocation1] sm:$0xff] %v2174_v8  ;;  %v2487_v8 = vld [vmem:[#allocation4 + $0x10] sm:$0x11] }
 0x4ca   :  { %v6803_v12 = vld [vmem:[#allocation1 + $0x3] ss:$4 sm:$0xff] }
 0x4cb   :  { %2190 = vst [vmem:[#allocation1] sm:$0xff] %v2188_v13  ;;  %v2451_v13 = vld [vmem:[#allocation4 + $0x8] sm:$0x88] }
 0x4d2   :  { %v6805_v24 = vld [vmem:[#allocation1 + $0x3] ss:$4 sm:$0xff] }
 0x4d3   :  { %2246 = vst [vmem:[#allocation1] sm:$0xff] %v2244_v14 }
 0x4da   :  { %v2248_v63 = vld [vmem:[#allocation1 + $0x1] ss:$4 sm:$0xff] }
 0x4db   :  { %v2249_v49 = vshll.u32 %v2248_v63, 16  ;;  %2264 = vst [vmem:[#allocation1] sm:$0xff] %v2262_v15  ;;  %v2489_v63 = vrot.slane %v2487_v8, 3 }
 0x4dd   :  { %2251 = vrot.lane.b32.xlu0 %v2249_v49, %s5924_s15  ;;  %v2492_v49 = vsel %vm1593_vm4, %v2487_v8, %v2489_v63 }
 0x4e2   :  { %v2266_v56 = vld [vmem:[#allocation1 + $0x1] ss:$4 sm:$0xff] }
 0x4e3   :  { %2268 = vrot.lane.b32.xlu1 %v2266_v56, %s5923_s3  ;;  %2279 = vst [vmem:[#allocation1] sm:$0xff] %v2277_v50  ;;  %v2470_v50 = vld [vmem:[#allocation4 + $0x8] sm:$0x88] }
 0x4ea   :  { %v2281_v26 = vld [vmem:[#allocation1 + $0x2] ss:$4 sm:$0xff] }
 0x4eb   :  { %1719 = vrot.lane.b32.xlu1 %v1715_v20, %s5919_s29  ;;  %v2282_v28 = vshll.u32 %v2281_v26, 16  ;;  %2298 = vst [vmem:[#allocation1] sm:$0xff] %v2296_v19  ;;  %v2493_v20 = vshll.u32 %v2492_v49, 16  ;;  %v2522_v19 = vld [vmem:[#allocation4 + $0x10] sm:$0x22] }
 0x4ed   :  { %2284 = vrot.lane.b32.xlu2 %v2282_v28, %s5926_s17  ;;  %v1994_v28 = vshrl.u32 %v6723_v59, 16  ;;  %v2557_v59 = vld [vmem:[#allocation4 + $0x10] sm:$0x44] }
 0x4f2   :  { %v2300_v62 = vld [vmem:[#allocation1 + $0x2] ss:$4 sm:$0xff] }
 0x4f3   :  { %1739 = vrot.lane.b32.xlu1 %v1737_v34, %s5930_s21  ;;  %2302 = vrot.lane.b32.xlu0 %v2300_v62, %s5927_s18  ;;  %2315 = vst [vmem:[#allocation1] sm:$0xff] %v2313_v31  ;;  %v2049_v62 = vld [vmem:[#allocation4 + $0x18] sm:$0x1]  ;;  %s4573_s18 = sshll.u32 %s8201_s6, 4  ;;  %s4574_s18 = int_to_ptr.hbm [resolvable:$true] %s4573_s18 }
 0x4f5   :  { %1763 = vrot.lane.b32.xlu2 %v1759_v58, %s5931_s22  ;;  %v2051_v58 = vrot.slane %v2049_v62, 3 }
 0x4fa   :  { %v2317_v61 = vld [vmem:[#allocation1 + $0x3] ss:$4 sm:$0xff] }
 0x4fb   :  { %v2318_v9 = vshll.u32 %v2317_v61, 16  ;;  %2331 = vst [vmem:[#allocation1] sm:$0xff] %v2329_v36  ;;  %v2070_v36 = vld [vmem:[#allocation4 + $0x18] sm:$0x1]  ;;  %v2573_v61 = vld [vmem:[#allocation4 + $0x10] sm:$0x44] }
 0x4fd   :  { %2320 = vrot.lane.b32.xlu1 %v2318_v9, %s5928_s19  ;;  %1783 = vrot.lane.b32.xlu2 %v6694_v11, %s5932_s23  ;;  %v2368_v11 = vrot.slane %v2366_v45, 3  ;;  %v2054_v9 = vsel %vm1593_vm4, %v2049_v62, %v2051_v58 }
 0x4ff   :  { %v2371_v43 = vsel %vm1593_vm4, %v2366_v45, %v2368_v11  ;;  %v2591_v45 = vld [vmem:[#allocation4 + $0x10] sm:$0x88] }
 0x502   :  { %v2333_v38 = vld [vmem:[#allocation1 + $0x3] ss:$4 sm:$0xff] }
 0x503   :  { %2335 = vrot.lane.b32.xlu0 %v2333_v38, %s5929_s20  ;;  %2386 = vst [vmem:[#allocation1] sm:$0xff] %v2384_v35  ;;  %v2037_v35 = vshrl.u32 %v6754_v10, 16  ;;  %v2072_v38 = vrot.slane %v2070_v36, 3  ;;  %s5948_s20 = smov 50  }
 0x505   :  { %1800 = vrot.lane.b32.xlu1 %v1796_v41, %s5933_s24  ;;  %1820 = vrot.lane.b32.xlu2 %v6702_v25, %s5934_s25  ;;  %v2075_v41 = vsel %vm1593_vm4, %v2070_v36, %v2072_v38  ;;  %v5586_v36 = vld [vmem:[%s8199_s4 + $0x10] sm:$0xff] }
 0x50a   :  { %v2388_v37 = vld [vmem:[#allocation1 + $0x1] ss:$4 sm:$0xff] }
 0x50b   :  { %2355 = vrot.lane.b32.xlu0 %v2353_v47, %s5919_s29  ;;  %2402 = vst [vmem:[#allocation1] sm:$0xff] %v2400_v30  ;;  %v2389_v25 = vshll.u32 %v2388_v37, 16  ;;  %s5937_s29 = smov 70   ;;  %v2076_v30 = vshrl.u32 %v2075_v41, 16  ;;  %v5607_v41 = vld [vmem:[%s8199_s4 + $0xb8] sm:$0xff] }
 0x50c   :  { %4291 = vmatpush.bf16.msra.mxu3 %v5607_v41 }
 0x50d   :  { %2373 = vrot.lane.b32.xlu1 %v2371_v43, %s5930_s21  ;;  %1843 = vrot.lane.b32.xlu2 %v1839_v21, %s5935_s26  ;;  %v2609_v43 = vld [vmem:[#allocation4 + $0x10] sm:$0x88] }
 0x512   :  { %v2404_v52 = vld [vmem:[#allocation1 + $0x1] ss:$4 sm:$0xff] }
 0x513   :  { %2391 = vrot.lane.b32.xlu0 %v2389_v25, %s5931_s22  ;;  %2420 = vst [vmem:[#allocation1] sm:$0xff] %v2418_v51  ;;  %v5590_v25 = vld [vmem:[%s8199_s4 + $0x30] sm:$0xff] }
 0x515   :  { %1857 = vrot.lane.b32.xlu1 %v6708_v18, %s5936_s30  ;;  %1880 = vrot.lane.b32.xlu2 %v1876_v55, %s5937_s29  ;;  %v1914_v18 = vsel %vm1593_vm4, %v1909_v17, %v1911_v5 }
 0x516   :  { %v1915_v15 = vshrl.u32 %v1914_v18, 16  ;;  %v1729_v18 = vld [vmem:[#allocation5 + $0x4] sm:$0x3] }
 0x51a   :  { %v2422_v57 = vld [vmem:[#allocation1 + $0x2] ss:$4 sm:$0xff] }
 0x51b   :  { %2406 = vrot.lane.b32.xlu0 %v2404_v52, %s5932_s23  ;;  %v2423_v33 = vshll.u32 %v2422_v57, 16  ;;  %2438 = vst [vmem:[#allocation1] sm:$0xff] %v2436_v23 }
 0x51d   :  { %2425 = vrot.lane.b32.xlu1 %v2423_v33, %s5933_s24  ;;  %1901 = vrot.lane.b32.xlu2 %v1899_v53, %s5909_s1  ;;  %v2624_v53 = vld [vmem:[#allocation4 + $0x18] sm:$0x11] }
 0x51e   :  { %v2626_v63 = vrot.slane %v2624_v53, 3 }
 0x520   :  { %v2629_v22 = vsel %vm1593_vm4, %v2624_v53, %v2626_v63  ;;  %v5597_v53 = vld [vmem:[%s8199_s4 + $0x68] sm:$0xff] }
 0x522   :  { %v2440_v14 = vld [vmem:[#allocation1 + $0x2] ss:$4 sm:$0xff] }
 0x523   :  { %2442 = vrot.lane.b32.xlu0 %v2440_v14, %s5934_s25  ;;  %2453 = vst [vmem:[#allocation1] sm:$0xff] %v2451_v13  ;;  %v2662_v13 = vld [vmem:[#allocation4 + $0x18] sm:$0x22]  ;;  %s5949_s25 = smov 102  }
 0x525   :  { %1919 = vrot.lane.b32.xlu1 %v1915_v15, %s5917_s27  ;;  %1938 = vrot.lane.b32.xlu2 %v6712_v32, %s5938_s7  ;;  %v1957_v32 = vshrl.u32 %v6714_v6, 16 }
 0x52a   :  { %v2455_v56 = vld [vmem:[#allocation1 + $0x3] ss:$4 sm:$0xff] }
 0x52b   :  { %v2456_v16 = vshll.u32 %v2455_v56, 16  ;;  %2472 = vst [vmem:[#allocation1] sm:$0xff] %v2470_v50  ;;  %v2113_v50 = vshrl.u32 %v6776_v48, 16 }
 0x52d   :  { %2495 = vrot.lane.b32.xlu2 %v2493_v20, %s5937_s29  ;;  %2458 = vrot.lane.b32.xlu0 %v2456_v16, %s5935_s26 }
 0x532   :  { %v2474_v26 = vld [vmem:[#allocation1 + $0x3] ss:$4 sm:$0xff] }
 0x533   :  { %2476 = vrot.lane.b32.xlu1 %v2474_v26, %s5936_s30  ;;  %2524 = vst [vmem:[#allocation1] sm:$0xff] %v2522_v19  ;;  %v2644_v26 = vld [vmem:[#allocation4 + $0x18] sm:$0x11] }
 0x534   :  { %v2646_v44 = vrot.slane %v2644_v26, 3 }
 0x535   :  { %1998 = vrot.lane.b32.xlu2 %v1994_v28, %s5939_s8  ;;  %1961 = vrot.lane.b32.xlu0 %v1957_v32, %s5940_s9  ;;  %v5587_v32 = vld [vmem:[%s8199_s4 + $0x18] sm:$0xff] }
 0x53a   :  { %v2526_v31 = vld [vmem:[#allocation1 + $0x1] ss:$4 sm:$0xff] }
 0x53b   :  { %2511 = vrot.lane.b32.xlu1 %v2509_v46, %s5909_s1  ;;  %2542 = vst [vmem:[#allocation1] sm:$0xff] %v2540_v1  ;;  %v2527_v6 = vshll.u32 %v2526_v31, 16  ;;  %s5943_s1 = smov 112   ;;  %v2630_v46 = vshll.u32 %v2629_v22, 16  ;;  %v5612_v22 = vld [vmem:[%s8199_s4 + $0xe0] sm:$0xff]  ;;  %v5611_v31 = vld [vmem:[%s8199_s4 + $0xd8] sm:$0xff] }
 0x53d   :  { %1981 = vrot.lane.b32.xlu0 %v6716_v7, %s5941_s10 }
 0x542   :  { %v2544_v34 = vld [vmem:[#allocation1 + $0x1] ss:$4 sm:$0xff] }
 0x543   :  { %2529 = vrot.lane.b32.xlu1 %v2527_v6, %s5917_s27  ;;  %2546 = vrot.lane.b32.xlu2 %v2544_v34, %s5938_s7  ;;  %2559 = vst [vmem:[#allocation1] sm:$0xff] %v2557_v59  ;;  %s5944_s27 = smov 22   ;;  %v2678_v34 = vld [vmem:[#allocation4 + $0x18] sm:$0x22] }
 0x545   :  { %2018 = vrot.lane.b32.xlu0 %v6743_v27, %s5942_s2 }
 0x547   :  { %v2285_v23 = vpop.permute.xlu2 %2284 }
 0x548   :  { %v2286_v5 = vrot.slane %v2285_v23, 7 }
 0x54a   :  { %v2561_v60 = vld [vmem:[#allocation1 + $0x2] ss:$4 sm:$0xff] }
 0x54b   :  { %2056 = vrot.lane.b32.xlu2 %v2054_v9, %s5943_s1  ;;  %v2562_v7 = vshll.u32 %v2561_v60, 16  ;;  %2575 = vst [vmem:[#allocation1] sm:$0xff] %v2573_v61  ;;  %v2649_v61 = vsel %vm1593_vm4, %v2644_v26, %v2646_v44  ;;  %vm8289_vm4 = vcmask 958688   ;;  %v5604_v26 = vld [vmem:[%s8199_s4 + $0xa0] sm:$0xff]  ;;  %v5595_v44 = vld [vmem:[%s8199_s4 + $0x58] sm:$0xff] }
 0x54d   :  { %2564 = vrot.lane.b32.xlu1 %v2562_v7, %s5940_s9  ;;  %2041 = vrot.lane.b32.xlu0 %v2037_v35, %s5944_s27 }
 0x54f   :  { %v2252_v27 = vpop.permute.xlu0 %2251  ;;  %v1764_v62 = vpop.permute.xlu2 %1763 }
 0x550   :  { %v2253_v39 = vrot.slane %v2252_v27, 1  ;;  %v1765_v7 = vrot.slane %v1764_v62, 7 }
 0x552   :  { %v2254_v10 = vsel %vm8266_vm7, %v2252_v27, %v2253_v39  ;;  %v2577_v11 = vld [vmem:[#allocation1 + $0x2] ss:$4 sm:$0xff]  ;;  %vm6878_vm7 = vmand %vm8215_vm14, %vm1585_vm1  ;;  %vm2287_vm14 = vcmask 113664  }
 0x553   :  { %v2260_v47 = vsel %vm2258_vm11, %v2254_v10, %v2259_v2  ;;  %2593 = vst [vmem:[#allocation1] sm:$0xff] %v2591_v45  ;;  %vm8270_vm11 = vcmask 424960   ;;  %vm1728_vm8 = vmor %vm6885_vm15, %vm6878_vm7  ;;  %v2288_v56 = vsel %vm2287_vm14, %v2286_v5, %v2285_v23  ;;  %vm8219_vm7 = vcmask 654336   ;;  %v5591_v27 = vld [vmem:[%s8199_s4 + $0x38] sm:$0xff] }
 0x554   :  { %2261 = vst [vmem:[#allocation5 + $0x1] sm:$0x3] %v2260_v47  ;;  %vm6906_vm15 = vmand %vm1747_vm2, %vm1610_vm12  ;;  %v5599_v39 = vld [vmem:[%s8199_s4 + $0x78] sm:$0xff]  ;;  %v2156_v45 = vshrl.u32 %v6801_v40, 16  ;;  %4265 = vmatpush.bf16.msra.mxu1 %v5591_v27  ;;  %v5610_v27 = vld [vmem:[%s8199_s4 + $0xd0] sm:$0xff] }
 0x555   :  { %v2269_v37 = vpop.permute.xlu1 %2268  ;;  %2579 = vrot.lane.b32.xlu1 %v2577_v11, %s5941_s10  ;;  %2080 = vrot.lane.b32.xlu0 %v2076_v30, %s5945_s11  ;;  %v5615_v2 = vld [vmem:[%s8199_s4 + $0xf8] sm:$0xff]  ;;  %v2696_v30 = vld [vmem:[#allocation4 + $0x18] sm:$0x44] }
 0x556   :  { %v2270_v21 = vrot.slane %v2269_v37, 1  ;;  %4278 = vmatpush.bf16.msra.mxu2 %v5599_v39  ;;  %4304 = vmatpush.bf16.msrb.mxu0 %v5615_v2  ;;  %v5585_v2 = vld [vmem:[%s8199_s4 + $0x8] sm:$0xff]  ;;  %v5631_v5 = vld [vmem:[%s8199_s4 + $0x178] sm:$0xff] }
 0x558   :  { %v2271_v52 = vsel %vm8270_vm11, %v2269_v37, %v2270_v21  ;;  %vm1745_vm11 = vcmask 1041024   ;;  %v2193_v21 = vshrl.u32 %v6805_v24, 16  ;;  %v5606_v24 = vld [vmem:[%s8199_s4 + $0xb0] sm:$0xff]  ;;  %4266 = vmatpush.bf16.msra.mxu1 %v5590_v25  ;;  %v5584_v25 = vld [vmem:[%s8199_s4] sm:$0xff] }
 0x559   :  { %vm6899_vm10 = vmand %vm1745_vm11, %vm1585_vm1  ;;  %4292 = vmatpush.bf16.msra.mxu3 %v5606_v24  ;;  %v2747_v24 = vld [vmem:[#allocation4 + $0x18] sm:$0x88] }
 0x55a   :  { %v2595_v51 = vld [vmem:[#allocation1 + $0x3] ss:$4 sm:$0xff]  ;;  %vm1749_vm14 = vmor %vm6906_vm15, %vm6899_vm10  ;;  %vm1771_vm10 = vcmask 25601  }
 0x55b   :  { %v2274_v55 = vld [vmem:[#allocation5 + $0x2] sm:$0x1]  ;;  %v2596_v0 = vshll.u32 %v2595_v51, 16  ;;  %2611 = vst [vmem:[#allocation1] sm:$0xff] %v2609_v43  ;;  %v5598_v51 = vld [vmem:[%s8199_s4 + $0x70] sm:$0xff] }
 0x55c   :  { %v2275_v17 = vsel %vm2273_vm6, %v2271_v52, %v2274_v55  ;;  %vm8273_vm6 = vcmask 965632   ;;  %v5614_v52 = vld [vmem:[%s8199_s4 + $0xf0] sm:$0xff]  ;;  %4279 = vmatpush.bf16.msra.mxu2 %v5598_v51  ;;  %v5592_v51 = vld [vmem:[%s8199_s4 + $0x40] sm:$0xff] }
 0x55d   :  { %2276 = vst [vmem:[#allocation5 + $0x2] sm:$0x1] %v2275_v17  ;;  %v1720_v57 = vpop.permute.xlu1 %1719  ;;  %2100 = vrot.lane.b32.xlu0 %v6765_v42, %s5946_s12  ;;  %2598 = vrot.lane.b32.xlu2 %v2596_v0, %s5939_s8 }
 0x55e   :  { %v1721_v33 = vrot.slane %v1720_v57, 7  ;;  %4305 = vmatpush.bf16.msrb.mxu0 %v5614_v52 }
 0x560   :  { %v1722_v8 = vsel %vm8273_vm6, %v1721_v33, %v1720_v57  ;;  %v5589_v33 = vld [vmem:[%s8199_s4 + $0x28] sm:$0xff]  ;;  %4280 = vmatpush.bf16.msra.mxu2 %v5597_v53  ;;  %v5608_v57 = vld [vmem:[%s8199_s4 + $0xc0] sm:$0xff] }
 0x561   :  { %v1730_v14 = vsel %vm1728_vm8, %v1722_v8, %v1729_v18  ;;  %vm8281_vm8 = vcmask 222209   ;;  %v5605_v18 = vld [vmem:[%s8199_s4 + $0xa8] sm:$0xff]  ;;  %4267 = vmatpush.bf16.msra.mxu1 %v5589_v33  ;;  %v5623_v33 = vld [vmem:[%s8199_s4 + $0x138] sm:$0xff] }
 0x562   :  { %1731 = vst [vmem:[#allocation5 + $0x4] sm:$0x3] %v1730_v14  ;;  %v2613_v42 = vld [vmem:[#allocation1 + $0x3] ss:$4 sm:$0xff]  ;;  %vm6933_vm6 = vmand %vm8281_vm8, %vm8280_vm0  ;;  %4293 = vmatpush.bf16.msra.mxu3 %v5605_v18 }
 0x563   :  { %2615 = vrot.lane.b32.xlu1 %v2613_v42, %s5942_s2  ;;  %2664 = vst [vmem:[#allocation1] sm:$0xff] %v2662_v13  ;;  %vm2309_vm13 = vmor %vm6933_vm6, %vm6926_vm5  ;;  %vm8217_vm5 = vcmask 343040   ;;  %v5613_v8 = vld [vmem:[%s8199_s4 + $0xe8] sm:$0xff]  ;;  %v1784_v13 = vpop.permute.xlu2 %1783  ;;  %v5639_v18 = vld [vmem:[%s8199_s4 + $0x1b8] sm:$0xff] }
 0x564   :  { %v2293_v20 = vld [vmem:[#allocation5 + $0x2] sm:$0x3]  ;;  %vm6950_vm0 = vmand %vm1771_vm10, %vm1610_vm12  ;;  %v1767_v10 = vsel %vm8217_vm5, %v1765_v7, %v1764_v62  ;;  %4306 = vmatpush.bf16.msrb.mxu0 %v5613_v8  ;;  %v5647_v8 = vld [vmem:[%s8199_s4 + $0x1f8] sm:$0xff] }
 0x565   :  { %v2294_v16 = vsel %vm2292_vm3, %v2288_v56, %v2293_v20  ;;  %v1740_v19 = vpop.permute.xlu1 %1739  ;;  %2137 = vrot.lane.b32.xlu0 %v6797_v4, %s5947_s0  ;;  %2117 = vrot.lane.b32.xlu2 %v2113_v50, %s5918_s28  ;;  %v2303_v54 = vpop.permute.xlu0 %2302  ;;  %vm1769_vm3 = vcmask 1040720   ;;  %vm6980_vm6 = vmand %vm8289_vm4, %vm2225_vm9  ;;  %vm8297_vm4 = vcmask 648193   ;;  %v5588_v50 = vld [vmem:[%s8199_s4 + $0x20] sm:$0xff] }
 0x566   :  { %2295 = vst [vmem:[#allocation5 + $0x2] sm:$0x3] %v2294_v16  ;;  %v1741_v48 = vrot.slane %v1740_v19, 7  ;;  %v2304_v1 = vrot.slane %v2303_v54, 1  ;;  %vm6939_vm15 = vmand %vm1769_vm3, %vm1585_vm1  ;;  %v2714_v56 = vld [vmem:[#allocation4 + $0x18] sm:$0x44]  ;;  %4268 = vmatpush.bf16.msra.mxu1 %v5588_v50  ;;  %4294 = vmatpush.bf16.msra.mxu3 %v5604_v26 }
 0x567   :  { %vm1773_vm8 = vmor %vm6950_vm0, %vm6939_vm15  ;;  %vm8292_vm15 = vcmask 539648   ;;  %vm8293_vm0 = vcmask 1041328   ;;  %v5638_v50 = vld [vmem:[%s8199_s4 + $0x1b0] sm:$0xff] }
 0x568   :  { %v1743_v4 = vsel %vm8219_vm7, %v1741_v48, %v1740_v19  ;;  %v5596_v19 = vld [vmem:[%s8199_s4 + $0x60] sm:$0xff]  ;;  %4307 = vmatpush.bf16.msrb.mxu0 %v5612_v22 }
 0x569   :  { %v1750_v29 = vld [vmem:[#allocation5 + $0x5] sm:$0x3]  ;;  %4281 = vmatpush.bf16.msra.mxu2 %v5596_v19 }
 0x56a   :  { %v1751_v6 = vsel %vm1749_vm14, %v1743_v4, %v1750_v29  ;;  %v2666_v59 = vld [vmem:[#allocation1 + $0x1] ss:$4 sm:$0xff]  ;;  %vm8288_vm14 = vcmask 850944   ;;  %4269 = vmatpush.bf16.msra.mxu1 %v5587_v32 }
 0x56b   :  { %1752 = vst [vmem:[#allocation5 + $0x5] sm:$0x3] %v1751_v6  ;;  %2632 = vrot.lane.b32.xlu1 %v2630_v46, %s5944_s27  ;;  %v2667_v58 = vshll.u32 %v2666_v59, 16  ;;  %v2305_v60 = vsel %vm8288_vm14, %v2303_v54, %v2304_v1  ;;  %vm7002_vm14 = vmand %vm8293_vm0, %vm2225_vm9  ;;  %vm8220_vm0 = vcmask 451585   ;;  %v5603_v46 = vld [vmem:[%s8199_s4 + $0x98] sm:$0xff]  ;;  %v1821_v7 = vpop.permute.xlu2 %1820  ;;  %v5645_v32 = vld [vmem:[%s8199_s4 + $0x1e8] sm:$0xff] }
 0x56c   :  { %2680 = vst [vmem:[#allocation1] sm:$0xff] %v2678_v34  ;;  %vm7049_vm7 = vmand %vm8220_vm0, %vm1610_vm12  ;;  %v2731_v59 = vld [vmem:[#allocation4 + $0x18] sm:$0x88]  ;;  %vm1828_vm0 = vcmask 140289   ;;  %4295 = vmatpush.bf16.msra.mxu3 %v5603_v46  ;;  %4308 = vmatpush.bf16.msrb.mxu0 %v5611_v31 }
 0x56d   :  { %v2310_v9 = vld [vmem:[#allocation5 + $0x3] sm:$0x3]  ;;  %2669 = vrot.lane.b32.xlu0 %v2667_v58, %s5945_s11  ;;  %2651 = vrot.lane.b32.xlu2 %v2649_v61, %s5943_s1  ;;  %v5620_v6 = vld [vmem:[%s8199_s4 + $0x120] sm:$0xff] }
 0x56e   :  { %v2311_v35 = vsel %vm2309_vm13, %v2305_v60, %v2310_v9  ;;  %vm8218_vm13 = vcmask 761888   ;;  %4282 = vmatpush.bf16.msra.mxu2 %v5595_v44  ;;  %v5594_v60 = vld [vmem:[%s8199_s4 + $0x50] sm:$0xff]  ;;  %4270 = vmatpush.bf16.msra.mxu1 %v5586_v36  ;;  %v5644_v36 = vld [vmem:[%s8199_s4 + $0x1e0] sm:$0xff] }
 0x56f   :  { %2312 = vst [vmem:[#allocation5 + $0x3] sm:$0x3] %v2311_v35  ;;  %v2321_v38 = vpop.permute.xlu1 %2320  ;;  %v5627_v35 = vld [vmem:[%s8199_s4 + $0x158] sm:$0xff] }
 0x570   :  { %v2322_v47 = vrot.slane %v2321_v38, 1  ;;  %4309 = vmatpush.bf16.msrb.mxu0 %v5610_v27 }
 0x572   :  { %v1774_v11 = vld [vmem:[#allocation5 + $0x6] sm:$0x3]  ;;  %v2323_v55 = vsel %vm8292_vm15, %v2321_v38, %v2322_v47  ;;  %vm1806_vm15 = vcmask 1041136   ;;  %v5602_v38 = vld [vmem:[%s8199_s4 + $0x90] sm:$0xff]  ;;  %4283 = vmatpush.bf16.msra.mxu2 %v5594_v60  ;;  %4271 = vmatpush.bf16.msra.mxu1 %v5585_v2 }
 0x573   :  { %v1775_v37 = vsel %vm1773_vm8, %v1767_v10, %v1774_v11  ;;  %2160 = vrot.lane.b32.xlu1 %v2156_v45, %s5948_s20  ;;  %v2682_v43 = vld [vmem:[#allocation1 + $0x1] ss:$4 sm:$0xff]  ;;  %vm8296_vm8 = vsmask.f32 7942  ;;  %4296 = vmatpush.bf16.msra.mxu3 %v5602_v38  ;;  %v1822_v11 = vrot.slane %v1821_v7, 7 }
 0x574   :  { %1776 = vst [vmem:[#allocation5 + $0x6] sm:$0x3] %v1775_v37  ;;  %vm7008_vm5 = vmand %vm8297_vm4, %vm8296_vm8  ;;  %vm2338_vm4 = vcmask 228352   ;;  %v5593_v10 = vld [vmem:[%s8199_s4 + $0x48] sm:$0xff] }
 0x575   :  { %2197 = vrot.lane.b32.xlu0 %v2193_v21, %s5949_s25  ;;  %2684 = vrot.lane.b32.xlu2 %v2682_v43, %s5946_s12  ;;  %2698 = vst [vmem:[#allocation1] sm:$0xff] %v2696_v30  ;;  %v2336_v23 = vpop.permute.xlu0 %2335  ;;  %vm2343_vm8 = vmor %vm7008_vm5, %vm7002_vm14  ;;  %vm8308_vm14 = vsmask.f32 7942  ;;  %v5601_v37 = vld [vmem:[%s8199_s4 + $0x88] sm:$0xff]  ;;  %v5618_v30 = vld [vmem:[%s8199_s4 + $0x110] sm:$0xff] }
 0x576   :  { %v2326_v3 = vld [vmem:[#allocation5 + $0x4] sm:$0x1]  ;;  %v2337_v42 = vrot.slane %v2336_v23, 7  ;;  %vm7081_vm5 = vmand %vm1745_vm11, %vm2225_vm9  ;;  %vm1826_vm11 = vcmask 1040832   ;;  %4284 = vmatpush.bf16.msra.mxu2 %v5593_v10  ;;  %4272 = vmatpush.bf16.msra.mxu1 %v5584_v25  ;;  %v5642_v25 = vld [vmem:[%s8199_s4 + $0x1d0] sm:$0xff] }
 0x577   :  { %v2327_v0 = vsel %vm6980_vm6, %v2323_v55, %v2326_v3  ;;  %vm7020_vm6 = vmand %vm8218_vm13, %vm1585_vm1  ;;  %v1801_v20 = vpop.permute.xlu1 %1800  ;;  %v5609_v21 = vld [vmem:[%s8199_s4 + $0xc8] sm:$0xff]  ;;  %4297 = vmatpush.bf16.msra.mxu3 %v5601_v37  ;;  %v5626_v37 = vld [vmem:[%s8199_s4 + $0x150] sm:$0xff] }
 0x578   :  { %2328 = vst [vmem:[#allocation5 + $0x4] sm:$0x1] %v2327_v0  ;;  %vm7038_vm13 = vmand %vm1806_vm15, %vm1585_vm1  ;;  %v2339_v54 = vsel %vm2338_vm4, %v2337_v42, %v2336_v23  ;;  %v1802_v4 = vrot.slane %v1801_v20, 7  ;;  %vm8221_vm4 = vcmask 769024   ;;  %4310 = vmatpush.bf16.msrb.mxu0 %v5609_v21  ;;  %v5600_v0 = vld [vmem:[%s8199_s4 + $0x80] sm:$0xff] }
 0x57a   :  { %v1804_v34 = vsel %vm8221_vm4, %v1802_v4, %v1801_v20  ;;  %vm8318_vm4 = vsmask.f32 7942  ;;  %4285 = vmatpush.bf16.msra.mxu2 %v5592_v51  ;;  %4317 = vmatpush.bf16.msrb.mxu1 %v5623_v33  ;;  %v5637_v4 = vld [vmem:[%s8199_s4 + $0x1a8] sm:$0xff] }
 0x57b   :  { %v1788_v14 = vld [vmem:[#allocation5 + $0x7] sm:$0x1]  ;;  %2180 = vrot.lane.b32.xlu1 %v6803_v12, %s5950_s13  ;;  %4298 = vmatpush.bf16.msra.mxu3 %v5600_v0 }
 0x57c   :  { %v1789_v63 = vsel %vm7020_vm6, %v1784_v13, %v1788_v14  ;;  %v2700_v49 = vld [vmem:[#allocation1 + $0x2] ss:$4 sm:$0xff]  ;;  %vm1810_vm6 = vmor %vm7049_vm7, %vm7038_vm13  ;;  %vm8315_vm13 = vcmask 965632   ;;  %4311 = vmatpush.bf16.msrb.mxu0 %v5608_v57 }
 0x57d   :  { %1790 = vst [vmem:[#allocation5 + $0x7] sm:$0x1] %v1789_v63  ;;  %v2701_v16 = vshll.u32 %v2700_v49, 16  ;;  %v2356_v1 = vpop.permute.xlu0 %2355  ;;  %vm7128_vm7 = vmand %vm1828_vm0, %vm1610_vm12  ;;  %v5622_v63 = vld [vmem:[%s8199_s4 + $0x130] sm:$0xff]  ;;  %v5625_v0 = vld [vmem:[%s8199_s4 + $0x148] sm:$0xff] }
 0x57e   :  { %2716 = vst [vmem:[#allocation1] sm:$0xff] %v2714_v56  ;;  %v2357_v58 = vrot.slane %v2356_v1, 1  ;;  %4330 = vmatpush.bf16.msrb.mxu2 %v5631_v5  ;;  %v5630_v49 = vld [vmem:[%s8199_s4 + $0x170] sm:$0xff]  ;;  %4318 = vmatpush.bf16.msrb.mxu1 %v5622_v63  ;;  %v5641_v57 = vld [vmem:[%s8199_s4 + $0x1c8] sm:$0xff] }
 0x57f   :  { %v2344_v48 = vld [vmem:[#allocation5 + $0x4] sm:$0x3]  ;;  %2703 = vrot.lane.b32.xlu2 %v2701_v16, %s5918_s28  ;;  %v2374_v40 = vpop.permute.xlu1 %2373  ;;  %4343 = vmatpush.bf16.msrb.mxu3 %v5639_v18  ;;  %v5646_v56 = vld [vmem:[%s8199_s4 + $0x1f0] sm:$0xff]  ;;  %v1844_v16 = vpop.permute.xlu2 %1843 }
 0x580   :  { %v2345_v28 = vsel %vm2343_vm8, %v2339_v54, %v2344_v48  ;;  %vm7093_vm8 = vmand %vm1747_vm2, %vm8308_vm14  ;;  %v2358_v45 = vsel %vm8315_vm13, %v2356_v1, %v2357_v58  ;;  %vm8224_vm13 = vcmask 457728   ;;  %v2375_v55 = vrot.slane %v2374_v40, 1  ;;  %4356 = vmatpush.bf16.msra.mxu0 %v5647_v8  ;;  %v5621_v48 = vld [vmem:[%s8199_s4 + $0x128] sm:$0xff]  ;;  %v5636_v58 = vld [vmem:[%s8199_s4 + $0x1a0] sm:$0xff] }
 0x581   :  { %2346 = vst [vmem:[#allocation5 + $0x4] sm:$0x3] %v2345_v28  ;;  %vm2362_vm2 = vmor %vm7093_vm8, %vm7081_vm5  ;;  %v1824_v52 = vsel %vm8224_vm13, %v1822_v11, %v1821_v7  ;;  %vm1846_vm8 = vcmask 876688   ;;  %v5629_v54 = vld [vmem:[%s8199_s4 + $0x168] sm:$0xff]  ;;  %v5619_v7 = vld [vmem:[%s8199_s4 + $0x118] sm:$0xff] }
 0x582   :  { %vm7116_vm14 = vmand %vm1826_vm11, %vm1585_vm1  ;;  %4331 = vmatpush.bf16.msrb.mxu2 %v5630_v49  ;;  %4319 = vmatpush.bf16.msrb.mxu1 %v5621_v48  ;;  %v5616_v8 = vld [vmem:[%s8199_s4 + $0x100] sm:$0xff]  ;;  %v5662_v48 = vld [vmem:[%s8199_s4 + $0x270] sm:$0xff] }
 0x583   :  { %vm7158_vm5 = vmand %vm1771_vm10, %vm8318_vm4  ;;  %vm8321_vm4 = vcmask 654336   ;;  %4344 = vmatpush.bf16.msrb.mxu3 %v5638_v50 }
 0x584   :  { %v1811_v62 = vld [vmem:[#allocation5 + $0x7] sm:$0x3]  ;;  %v2376_v13 = vsel %vm8321_vm4, %v2374_v40, %v2375_v55  ;;  %4357 = vmatpush.bf16.msra.mxu0 %v5646_v56  ;;  %vm8331_vm4 = vcmask 343040  }
 0x585   :  { %v1812_v61 = vsel %vm1810_vm6, %v1804_v34, %v1811_v62  ;;  %v2718_v9 = vld [vmem:[#allocation1 + $0x2] ss:$4 sm:$0xff]  ;;  %vm7146_vm6 = vmand %vm1769_vm3, %vm2225_vm9  ;;  %v2392_v15 = vpop.permute.xlu0 %2391 }
 0x586   :  { %1813 = vst [vmem:[#allocation5 + $0x7] sm:$0x3] %v1812_v61  ;;  %2720 = vrot.lane.b32.xlu1 %v2718_v9, %s5947_s0  ;;  %vm1830_vm3 = vmor %vm7128_vm7, %vm7116_vm14  ;;  %vm8324_vm14 = vcmask 761888   ;;  %v2393_v19 = vrot.slane %v2392_v15, 1  ;;  %4332 = vmatpush.bf16.msrb.mxu2 %v5629_v54  ;;  %v5634_v40 = vld [vmem:[%s8199_s4 + $0x190] sm:$0xff] }
 0x587   :  { %2733 = vst [vmem:[#allocation1] sm:$0xff] %v2731_v59  ;;  %vm2380_vm10 = vmor %vm7158_vm5, %vm7146_vm6  ;;  %vm8223_vm6 = vcmask 1041248   ;;  %vm8222_vm5 = vcmask 566273   ;;  %v1858_v29 = vpop.permute.xlu1 %1857  ;;  %v5628_v59 = vld [vmem:[%s8199_s4 + $0x160] sm:$0xff]  ;;  %4345 = vmatpush.bf16.msrb.mxu3 %v5637_v4  ;;  %4320 = vmatpush.bf16.msrb.mxu1 %v5620_v6  ;;  %v1881_v11 = vpop.permute.xlu2 %1880 }
 0x588   :  { %v2363_v41 = vld [vmem:[#allocation5 + $0x5] sm:$0x3]  ;;  %vm7222_vm7 = vmand %vm8324_vm14, %vm2225_vm9  ;;  %v2394_v31 = vsel %vm8331_vm4, %v2392_v15, %v2393_v19  ;;  %v1859_v62 = vrot.slane %v1858_v29, 7  ;;  %4358 = vmatpush.bf16.msra.mxu0 %v5645_v32  ;;  %v1882_v51 = vrot.slane %v1881_v11, 7 }
 0x589   :  { %v2364_v47 = vsel %vm2362_vm2, %v2358_v45, %v2363_v41  ;;  %vm7216_vm2 = vmand %vm1846_vm8, %vm1585_vm1  ;;  %v5635_v41 = vld [vmem:[%s8199_s4 + $0x198] sm:$0xff] }
 0x58a   :  { %2365 = vst [vmem:[#allocation5 + $0x5] sm:$0x3] %v2364_v47  ;;  %vm7274_vm4 = vmand %vm1806_vm15, %vm2225_vm9  ;;  %4333 = vmatpush.bf16.msrb.mxu2 %v5628_v59  ;;  %vm1888_vm15 = vcmask 254977   ;;  %v5643_v45 = vld [vmem:[%s8199_s4 + $0x1d8] sm:$0xff]  ;;  %v5661_v59 = vld [vmem:[%s8199_s4 + $0x268] sm:$0xff] }
 0x58b   :  { %4346 = vmatpush.bf16.msrb.mxu3 %v5636_v58  ;;  %4321 = vmatpush.bf16.msrb.mxu1 %v5619_v7  ;;  %v5652_v7 = vld [vmem:[%s8199_s4 + $0x220] sm:$0xff] }
 0x58c   :  { %4359 = vmatpush.bf16.msra.mxu0 %v5644_v36 }
 0x58d   :  { %v1831_v3 = vld [vmem:[#allocation5 + $0x8] sm:$0x3]  ;;  %v2407_v61 = vpop.permute.xlu0 %2406 }
 0x58e   :  { %v1832_v17 = vsel %vm1830_vm3, %v1824_v52, %v1831_v3  ;;  %v2735_v23 = vld [vmem:[#allocation1 + $0x3] ss:$4 sm:$0xff]  ;;  %vm7242_vm3 = vmand %vm8223_vm6, %vm1585_vm1  ;;  %vm8335_vm6 = vcmask 451585   ;;  %v2408_v39 = vrot.slane %v2407_v61, 7  ;;  %4334 = vmatpush.bf16.msrb.mxu2 %v5627_v35 }
 0x58f   :  { %1833 = vst [vmem:[#allocation5 + $0x8] sm:$0x3] %v1832_v17  ;;  %v2736_v53 = vshll.u32 %v2735_v23, 16  ;;  %4347 = vmatpush.bf16.msrb.mxu3 %v5635_v41  ;;  %v2426_v52 = vpop.permute.xlu1 %2425  ;;  %4322 = vmatpush.bf16.msrb.mxu1 %v5618_v30  ;;  %v5617_v3 = vld [vmem:[%s8199_s4 + $0x108] sm:$0xff]  ;;  %v1902_v12 = vpop.permute.xlu2 %1901 }
 0x590   :  { %2749 = vst [vmem:[#allocation1] sm:$0xff] %v2747_v24  ;;  %4360 = vmatpush.bf16.msra.mxu0 %v5643_v45  ;;  %v5633_v23 = vld [vmem:[%s8199_s4 + $0x188] sm:$0xff]  ;;  %v2427_v5 = vrot.slane %v2426_v52, 1 }
 0x591   :  { %v2381_v14 = vld [vmem:[#allocation5 + $0x6] sm:$0x3]  ;;  %2738 = vrot.lane.b32.xlu0 %v2736_v53, %s5948_s20 }
 0x592   :  { %v2382_v42 = vsel %vm2380_vm10, %v2376_v13, %v2381_v14  ;;  %vm7249_vm10 = vmand %vm8222_vm5, %vm1610_vm12  ;;  %vm8334_vm5 = vsmask.f32 7942  ;;  %4335 = vmatpush.bf16.msrb.mxu2 %v5626_v37  ;;  %v5624_v13 = vld [vmem:[%s8199_s4 + $0x140] sm:$0xff] }
 0x593   :  { %2383 = vst [vmem:[#allocation5 + $0x6] sm:$0x3] %v2382_v42  ;;  %vm1867_vm14 = vmor %vm7249_vm10, %vm7242_vm3  ;;  %4348 = vmatpush.bf16.msrb.mxu3 %v5634_v40  ;;  %4323 = vmatpush.bf16.msrb.mxu1 %v5617_v3  ;;  %v5632_v14 = vld [vmem:[%s8199_s4 + $0x180] sm:$0xff] }
 0x594   :  { %vm7280_vm13 = vmand %vm8335_vm6, %vm8334_vm5  ;;  %vm2409_vm5 = vcmask 31744   ;;  %4361 = vmatpush.bf16.msra.mxu0 %v5642_v25  ;;  %v5640_v42 = vld [vmem:[%s8199_s4 + $0x1c0] sm:$0xff]  ;;  %v5675_v25 = vld [vmem:[%s8199_s4 + $0x2d8] sm:$0xff] }
 0x595   :  { %v2410_v43 = vsel %vm2409_vm5, %v2408_v39, %v2407_v61  ;;  %vm7336_vm10 = vmand %vm1826_vm11, %vm2225_vm9  ;;  %vm1904_vm11 = vcmask 991488   ;;  %v2443_v56 = vpop.permute.xlu0 %2442  ;;  %vm8227_vm5 = vcmask 680961  }
 0x596   :  { %v1848_v26 = vld [vmem:[#allocation5 + $0x9] sm:$0x1]  ;;  %4336 = vmatpush.bf16.msrb.mxu2 %v5625_v0 }
 0x597   :  { %v1849_v22 = vsel %vm7216_vm2, %v1844_v16, %v1848_v26  ;;  %v2751_v28 = vld [vmem:[#allocation1 + $0x3] ss:$4 sm:$0xff]  ;;  %vm8225_vm2 = vcmask 883712   ;;  %4349 = vmatpush.bf16.msrb.mxu3 %v5633_v23  ;;  %4324 = vmatpush.bf16.msrb.mxu1 %v5616_v8  ;;  %v2444_v16 = vrot.slane %v2443_v56, 1  ;;  %v1920_v54 = vpop.permute.xlu1 %1919  ;;  %v1939_v60 = vpop.permute.xlu2 %1938 }
 0x598   :  { %1850 = vst [vmem:[#allocation5 + $0x9] sm:$0x1] %v1849_v22  ;;  %2753 = vrot.lane.b32.xlu2 %v2751_v28, %s5950_s13  ;;  %v1861_v38 = vsel %vm8225_vm2, %v1859_v62, %v1858_v29  ;;  %vm2414_vm2 = vmor %vm7280_vm13, %vm7274_vm4  ;;  %vm8229_vm13 = vcmask 572416   ;;  %4362 = vmatpush.bf16.msra.mxu0 %v5641_v57  ;;  %v5654_v26 = vld [vmem:[%s8199_s4 + $0x230] sm:$0xff] }
 0x599   :  { %v1884_v33 = vsel %vm8229_vm13, %v1882_v51, %v1881_v11  ;;  %vm1905_vm4 = vmand %vm1904_vm11, %vm1585_vm1  ;;  %vm8362_vm13 = vcmask 998400   ;;  %v5670_v22 = vld [vmem:[%s8199_s4 + $0x2b0] sm:$0xff] }
 0x59a   :  { %v2397_v46 = vld [vmem:[#allocation5 + $0x7] sm:$0x1]  ;;  %4337 = vmatpush.bf16.msrb.mxu2 %v5624_v13 }
 0x59b   :  { %v2398_v34 = vsel %vm7222_vm7, %v2394_v31, %v2397_v46  ;;  %vm8226_vm7 = vcmask 1040944   ;;  %4350 = vmatpush.bf16.msrb.mxu3 %v5632_v14  ;;  %v1921_v46 = vrot.slane %v1920_v54, 7  ;;  %v5665_v14 = vld [vmem:[%s8199_s4 + $0x288] sm:$0xff] }
 0x59c   :  { %2399 = vst [vmem:[#allocation5 + $0x7] sm:$0x1] %v2398_v34  ;;  %vm7299_vm6 = vmand %vm8226_vm7, %vm1585_vm1  ;;  %4363 = vmatpush.bf16.msra.mxu0 %v5640_v42  ;;  %v5655_v42 = vld [vmem:[%s8199_s4 + $0x238] sm:$0xff]  ;;  %v5669_v34 = vld [vmem:[%s8199_s4 + $0x2a8] sm:$0xff] }
 0x59d   :  { %vm7314_vm7 = vmand %vm1888_vm15, %vm1610_vm12  ;;  %v1922_v62 = vsel %vm8362_vm13, %v1921_v46, %v1920_v54  ;;  %v5703_v54 = vld [vmem:[%s8199_s4 + $0x3b8] sm:$0xff]  ;;  %v5686_v46 = vld [vmem:[%s8199_s4 + $0x330] sm:$0xff] }
 0x59e   :  { %vm1890_vm3 = vmor %vm7314_vm7, %vm7299_vm6  ;;  %vm8347_vm7 = vcmask 769024   ;;  %vm8228_vm6 = vcmask 1041360  }
 0x59f   :  { %v1868_v27 = vld [vmem:[#allocation5 + $0x9] sm:$0x3]  ;;  %v2428_v63 = vsel %vm8347_vm7, %v2426_v52, %v2427_v5  ;;  %v2459_v6 = vpop.permute.xlu0 %2458  ;;  %vm8355_vm7 = vcmask 1041248   ;;  %v2496_v0 = vpop.permute.xlu2 %2495 }
 0x5a0   :  { %v1869_v10 = vsel %vm1867_vm14, %v1861_v38, %v1868_v27  ;;  %v2460_v36 = vrot.slane %v2459_v6, 7  ;;  %v1940_v27 = vrot.slane %v1939_v60, 7  ;;  %v2497_v17 = vrot.slane %v2496_v0, 1 }
 0x5a1   :  { %1870 = vst [vmem:[#allocation5 + $0x9] sm:$0x3] %v1869_v10 }
 0x5a3   :  { %v2415_v21 = vld [vmem:[#allocation5 + $0x7] sm:$0x3] }
 0x5a4   :  { %v2416_v24 = vsel %vm2414_vm2, %v2410_v43, %v2415_v21  ;;  %vm8344_vm2 = vsmask.f32 7942 }
 0x5a5   :  { %2417 = vst [vmem:[#allocation5 + $0x7] sm:$0x3] %v2416_v24  ;;  %vm7348_vm14 = vmand %vm1828_vm0, %vm8344_vm2  ;;  %v2477_v41 = vpop.permute.xlu1 %2476 }
 0x5a6   :  { %vm2432_vm0 = vmor %vm7348_vm14, %vm7336_vm10  ;;  %v2478_v47 = vrot.slane %v2477_v41, 1 }
 0x5a7   :  { %vm7391_vm10 = vmand %vm8228_vm6, %vm1585_vm1  ;;  %vm8230_vm6 = vcmask 369665   ;;  %v1962_v43 = vpop.permute.xlu0 %1961 }
 0x5a8   :  { %v1891_v53 = vld [vmem:[#allocation5 + $0xa] sm:$0x3]  ;;  %vm7397_vm2 = vmand %vm8227_vm5, %vm1610_vm12  ;;  %v1963_v3 = vrot.slane %v1962_v43, 7 }
 0x5a9   :  { %v1892_v18 = vsel %vm1890_vm3, %v1884_v33, %v1891_v53  ;;  %vm7385_vm3 = vmand %vm1846_vm8, %vm2225_vm9  ;;  %vm8354_vm8 = vcmask 457728  }
 0x5aa   :  { %1893 = vst [vmem:[#allocation5 + $0xa] sm:$0x3] %v1892_v18  ;;  %v2445_v44 = vsel %vm8354_vm8, %v2443_v56, %v2444_v16  ;;  %vm1928_vm14 = vmor %vm7397_vm2, %vm7391_vm10  ;;  %vm8358_vm8 = vsmask.f32 7942  ;;  %vm2461_vm2 = vcmask 146432  }
 0x5ab   :  { %vm7433_vm13 = vmand %vm8230_vm6, %vm1610_vm12  ;;  %v2462_v38 = vsel %vm2461_vm2, %v2460_v36, %v2459_v6  ;;  %vm1967_vm2 = vcmask 1040752   ;;  %v5653_v6 = vld [vmem:[%s8199_s4 + $0x228] sm:$0xff] }
 0x5ac   :  { %v2765_v15 = vld [vmem:[#allocation5] sm:$0xff]  ;;  %v2433_v49 = vld [vmem:[#allocation5 + $0x8] sm:$0x3] }
 0x5ad   :  { %v2434_v50 = vsel %vm2432_vm0, %v2428_v63, %v2433_v49  ;;  %3133 = vst [vmem:[#allocation1] ss:$9 sm:$0xff] %v2765_v15  ;;  %vm1944_vm0 = vcmask 1041056   ;;  %v2512_v8 = vpop.permute.xlu1 %2511  ;;  %v5663_v15 = vld [vmem:[%s8199_s4 + $0x278] sm:$0xff]  ;;  %v5648_v63 = vld [vmem:[%s8199_s4 + $0x200] sm:$0xff] }
 0x5ae   :  { %2435 = vst [vmem:[#allocation5 + $0x8] sm:$0x3] %v2434_v50  ;;  %vm7423_vm10 = vmand %vm1944_vm0, %vm1585_vm1  ;;  %v5671_v49 = vld [vmem:[%s8199_s4 + $0x2b8] sm:$0xff]  ;;  %v2513_v56 = vrot.slane %v2512_v8, 7 }
 0x5af   :  { %v5679_v50 = vld [vmem:[%s8199_s4 + $0x2f8] sm:$0xff] }
 0x5b1   :  { %v1906_v20 = vld [vmem:[#allocation5 + $0xb] sm:$0x1] }
 0x5b2   :  { %v1907_v19 = vsel %vm1905_vm4, %v1902_v12, %v1906_v20  ;;  %vm7410_vm4 = vmand %vm8355_vm7, %vm2225_vm9  ;;  %v1982_v20 = vpop.permute.xlu0 %1981 }
 0x5b3   :  { %1908 = vst [vmem:[#allocation5 + $0xb] sm:$0x1] %v1907_v19  ;;  %v1999_v19 = vpop.permute.xlu2 %1998 }
 0x5b4   :  { %v3134_v28 = vld [vmem:[#allocation1] sm:$0xff]  ;;  %v3135_v4 = vld [vmem:[#allocation1 + $0x9] sm:$0xff]  ;;  %v3136_v29 = vld [vmem:[#allocation1 + $0x12] sm:$0xff] }
 0x5b5   :  { %v2448_v32 = vld [vmem:[#allocation5 + $0x9] sm:$0x1]  ;;  %4273 = vmatmul.bf16.vlgmr.msra.gmra.mxu1 %v3134_v28  ;;  %4286 = vmatmul.bf16.vlgmr.msra.gmra.mxu2 %v3135_v4  ;;  %v3137_v31 = vld [vmem:[#allocation1 + $0x1b] sm:$0xff]  ;;  %v3138_v37 = vld [vmem:[#allocation1 + $0x24] sm:$0xff] }
 0x5b6   :  { %v2449_v1 = vsel %vm7385_vm3, %v2445_v44, %v2448_v32  ;;  %4299 = vmatmul.bf16.vlgmr.msra.gmra.mxu3 %v3136_v29  ;;  %4312 = vmatmul.bf16.vlgmr.msrb.gmra.mxu0 %v3137_v31  ;;  %vm8359_vm3 = vcmask 566273   ;;  %v3139_v21 = vld [vmem:[#allocation1 + $0x2d] sm:$0xff]  ;;  %v3140_v40 = vld [vmem:[#allocation1 + $0x36] sm:$0xff]  ;;  %v3141_v51 = vld [vmem:[#allocation1 + $0x3f] sm:$0xff]  ;;  %v2000_v29 = vrot.slane %v1999_v19, 7  ;;  %v2530_v31 = vpop.permute.xlu1 %2529 }
 0x5b7   :  { %2450 = vst [vmem:[#allocation5 + $0x9] sm:$0x1] %v2449_v1  ;;  %vm7416_vm5 = vmand %vm8359_vm3, %vm8358_vm8  ;;  %vm8231_vm8 = vcmask 687104   ;;  %vm8370_vm3 = vsmask.f32 7942  ;;  %4369 = vmatpush.bf16.msra.mxu1 %v5655_v42  ;;  %4382 = vmatpush.bf16.msra.mxu2 %v5663_v15  ;;  %v5678_v28 = vld [vmem:[%s8199_s4 + $0x2f0] sm:$0xff] }
 0x5b8   :  { %vm2466_vm7 = vmor %vm7416_vm5, %vm7410_vm4  ;;  %vm8367_vm5 = vcmask 1040944   ;;  %v1942_v10 = vsel %vm8231_vm8, %v1940_v27, %v1939_v60  ;;  %4395 = vmatpush.bf16.msra.mxu3 %v5671_v49  ;;  %4408 = vmatpush.bf16.msrb.mxu0 %v5679_v50  ;;  %v5673_v42 = vld [vmem:[%s8199_s4 + $0x2c8] sm:$0xff]  ;;  %v5656_v49 = vld [vmem:[%s8199_s4 + $0x240] sm:$0xff] }
 0x5b9   :  { %vm7443_vm4 = vmand %vm8367_vm5, %vm2225_vm9  ;;  %v5664_v50 = vld [vmem:[%s8199_s4 + $0x280] sm:$0xff] }
 0x5ba   :  { %v1929_v58 = vld [vmem:[#allocation5 + $0xb] sm:$0x3]  ;;  %vm7449_vm6 = vmand %vm1888_vm15, %vm8370_vm3  ;;  %vm8376_vm3 = vcmask 572416   ;;  %v2019_v27 = vpop.permute.xlu0 %2018 }
 0x5bb   :  { %v1930_v9 = vsel %vm1928_vm14, %v1922_v62, %v1929_v58  ;;  %vm1948_vm14 = vmor %vm7433_vm13, %vm7423_vm10  ;;  %vm1969_vm10 = vcmask 58369   ;;  %vm8375_vm13 = vcmask 883712   ;;  %v2498_v53 = vsel %vm8376_vm3, %v2496_v0, %v2497_v17  ;;  %4370 = vmatpush.bf16.msra.mxu1 %v5654_v26  ;;  %4383 = vmatpush.bf16.msra.mxu2 %v5662_v48  ;;  %v5677_v62 = vld [vmem:[%s8199_s4 + $0x2e8] sm:$0xff]  ;;  %v5658_v17 = vld [vmem:[%s8199_s4 + $0x250] sm:$0xff] }
 0x5bc   :  { %1931 = vst [vmem:[#allocation5 + $0xb] sm:$0x3] %v1930_v9  ;;  %vm7460_vm15 = vmand %vm1967_vm2, %vm1585_vm1  ;;  %v2479_v24 = vsel %vm8375_vm13, %v2477_v41, %v2478_v47  ;;  %vm8377_vm13 = vcmask 1041360   ;;  %vm8232_vm3 = vcmask 484353   ;;  %4396 = vmatpush.bf16.msra.mxu3 %v5670_v22  ;;  %4409 = vmatpush.bf16.msrb.mxu0 %v5678_v28  ;;  %v2531_v9 = vrot.slane %v2530_v31, 1  ;;  %v5695_v48 = vld [vmem:[%s8199_s4 + $0x378] sm:$0xff] }
 0x5bd   :  { %vm7475_vm8 = vmand %vm8377_vm13, %vm2225_vm9  ;;  %v2020_v47 = vrot.slane %v2019_v27, 7  ;;  %v5711_v22 = vld [vmem:[%s8199_s4 + $0x3f8] sm:$0xff]  ;;  %v5709_v41 = vld [vmem:[%s8199_s4 + $0x3e8] sm:$0xff] }
 0x5be   :  { %v2467_v35 = vld [vmem:[#allocation5 + $0x9] sm:$0x3] }
 0x5bf   :  { %v2468_v39 = vsel %vm2466_vm7, %v2462_v38, %v2467_v35  ;;  %vm2483_vm7 = vmor %vm7449_vm6, %vm7443_vm4  ;;  %vm1964_vm6 = vcmask 375808   ;;  %4371 = vmatpush.bf16.msra.mxu1 %v5653_v6  ;;  %4384 = vmatpush.bf16.msra.mxu2 %v5661_v59  ;;  %v5660_v35 = vld [vmem:[%s8199_s4 + $0x260] sm:$0xff]  ;;  %v2565_v13 = vpop.permute.xlu1 %2564  ;;  %v5694_v59 = vld [vmem:[%s8199_s4 + $0x370] sm:$0xff] }
 0x5c0   :  { %2469 = vst [vmem:[#allocation5 + $0x9] sm:$0x3] %v2468_v39  ;;  %v1965_v57 = vsel %vm1964_vm6, %v1963_v3, %v1962_v43  ;;  %vm2500_vm4 = vmand %vm1904_vm11, %vm2225_vm9  ;;  %vm8382_vm11 = vsmask.f32 7942  ;;  %4397 = vmatpush.bf16.msra.mxu3 %v5669_v34  ;;  %4410 = vmatpush.bf16.msrb.mxu0 %v5677_v62  ;;  %v5668_v38 = vld [vmem:[%s8199_s4 + $0x2a0] sm:$0xff]  ;;  %v5650_v3 = vld [vmem:[%s8199_s4 + $0x210] sm:$0xff] }
 0x5c1   :  { %v5676_v39 = vld [vmem:[%s8199_s4 + $0x2e0] sm:$0xff]  ;;  %v5702_v34 = vld [vmem:[%s8199_s4 + $0x3b0] sm:$0xff] }
 0x5c3   :  { %v1949_v11 = vld [vmem:[#allocation5 + $0xc] sm:$0x3]  ;;  %4372 = vmatpush.bf16.msra.mxu1 %v5652_v7  ;;  %4385 = vmatpush.bf16.msra.mxu2 %v5660_v35 }
 0x5c4   :  { %v1950_v30 = vsel %vm1948_vm14, %v1942_v10, %v1949_v11  ;;  %vm1970_vm14 = vmand %vm1969_vm10, %vm1610_vm12  ;;  %4398 = vmatpush.bf16.msra.mxu3 %v5668_v38  ;;  %4411 = vmatpush.bf16.msrb.mxu0 %v5676_v39  ;;  %v5684_v10 = vld [vmem:[%s8199_s4 + $0x320] sm:$0xff] }
 0x5c5   :  { %1951 = vst [vmem:[#allocation5 + $0xc] sm:$0x3] %v1950_v30  ;;  %4325 = vmatmul.bf16.vlgmr.msrb.gmra.mxu1 %v3138_v37  ;;  %4338 = vmatmul.bf16.vlgmr.msrb.gmra.mxu2 %v3139_v21  ;;  %vm1971_vm5 = vmor %vm1970_vm14, %vm7460_vm15  ;;  %vm8383_vm14 = vcmask 680961   ;;  %v5651_v30 = vld [vmem:[%s8199_s4 + $0x218] sm:$0xff]  ;;  %v2547_v21 = vpop.permute.xlu2 %2546 }
 0x5c6   :  { %4351 = vmatmul.bf16.vlgmr.msrb.gmra.mxu3 %v3140_v40  ;;  %4364 = vmatmul.bf16.vlgmr.msra.gmra.mxu0 %v3141_v51  ;;  %v5659_v37 = vld [vmem:[%s8199_s4 + $0x258] sm:$0xff]  ;;  %v5708_v51 = vld [vmem:[%s8199_s4 + $0x3e0] sm:$0xff] }
 0x5c7   :  { %v2484_v52 = vld [vmem:[#allocation5 + $0xa] sm:$0x3]  ;;  %v5667_v40 = vld [vmem:[%s8199_s4 + $0x298] sm:$0xff]  ;;  %4373 = vmatpush.bf16.msra.mxu1 %v5651_v30  ;;  %4386 = vmatpush.bf16.msra.mxu2 %v5659_v37  ;;  %v2580_v58 = vpop.permute.xlu1 %2579 }
 0x5c8   :  { %v2485_v55 = vsel %vm2483_vm7, %v2479_v24, %v2484_v52  ;;  %vm1984_vm7 = vcmask 794688   ;;  %4399 = vmatpush.bf16.msra.mxu3 %v5667_v40  ;;  %4412 = vmatpush.bf16.msrb.mxu0 %v5675_v25  ;;  %v2548_v24 = vrot.slane %v2547_v21, 1  ;;  %v2581_v35 = vrot.slane %v2580_v58, 7 }
 0x5c9   :  { %2486 = vst [vmem:[#allocation5 + $0xa] sm:$0x3] %v2485_v55  ;;  %vm7481_vm15 = vmand %vm1984_vm7, %vm1585_vm1 }
 0x5cb   :  { %4374 = vmatpush.bf16.msra.mxu1 %v5650_v3  ;;  %4387 = vmatpush.bf16.msra.mxu2 %v5658_v17  ;;  %v5691_v3 = vld [vmem:[%s8199_s4 + $0x358] sm:$0xff] }
 0x5cc   :  { %v1972_v23 = vld [vmem:[#allocation5 + $0xd] sm:$0x3]  ;;  %v5707_v17 = vld [vmem:[%s8199_s4 + $0x3d8] sm:$0xff] }
 0x5cd   :  { %v1973_v33 = vsel %vm1971_vm5, %v1965_v57, %v1972_v23  ;;  %vm7493_vm5 = vmand %vm8383_vm14, %vm8382_vm11  ;;  %v5666_v23 = vld [vmem:[%s8199_s4 + $0x290] sm:$0xff]  ;;  %v2057_v28 = vpop.permute.xlu2 %2056 }
 0x5ce   :  { %1974 = vst [vmem:[#allocation5 + $0xd] sm:$0x3] %v1973_v33  ;;  %vm2518_vm13 = vmor %vm7493_vm5, %vm7475_vm8  ;;  %vm8388_vm8 = vcmask 261120   ;;  %vm2001_vm5 = vcmask 801792   ;;  %v5674_v57 = vld [vmem:[%s8199_s4 + $0x2d0] sm:$0xff]  ;;  %4400 = vmatpush.bf16.msra.mxu3 %v5666_v23 }
 0x5cf   :  { %v2514_v4 = vsel %vm8388_vm8, %v2513_v56, %v2512_v8  ;;  %vm7530_vm11 = vmand %vm8232_vm3, %vm1610_vm12  ;;  %vm8394_vm8 = vcmask 369665   ;;  %v2002_v36 = vsel %vm2001_vm5, %v2000_v29, %v1999_v19  ;;  %4413 = vmatpush.bf16.msrb.mxu0 %v5674_v57  ;;  %v2566_v56 = vrot.slane %v2565_v13, 1  ;;  %v5687_v19 = vld [vmem:[%s8199_s4 + $0x338] sm:$0xff] }
 0x5d0   :  { %v2501_v5 = vld [vmem:[#allocation5 + $0xb] sm:$0x1]  ;;  %vm7536_vm14 = vmand %vm1944_vm0, %vm2225_vm9 }
 0x5d1   :  { %v2502_v18 = vsel %vm2500_vm4, %v2498_v53, %v2501_v5  ;;  %vm8233_vm4 = vcmask 1041168   ;;  %v5649_v5 = vld [vmem:[%s8199_s4 + $0x208] sm:$0xff]  ;;  %v2567_v44 = vsel %vm1964_vm6, %v2565_v13, %v2566_v56  ;;  %vm8237_vm6 = vcmask 916480   ;;  %v5706_v13 = vld [vmem:[%s8199_s4 + $0x3d0] sm:$0xff] }
 0x5d2   :  { %2503 = vst [vmem:[#allocation5 + $0xb] sm:$0x1] %v2502_v18  ;;  %v5657_v18 = vld [vmem:[%s8199_s4 + $0x248] sm:$0xff]  ;;  %4375 = vmatpush.bf16.msra.mxu1 %v5649_v5  ;;  %4401 = vmatpush.bf16.msra.mxu3 %v5665_v14  ;;  %v5682_v5 = vld [vmem:[%s8199_s4 + $0x310] sm:$0xff] }
 0x5d3   :  { %4388 = vmatpush.bf16.msra.mxu2 %v5657_v18  ;;  %4414 = vmatpush.bf16.msrb.mxu0 %v5673_v42  ;;  %v5690_v18 = vld [vmem:[%s8199_s4 + $0x350] sm:$0xff]  ;;  %v5697_v56 = vld [vmem:[%s8199_s4 + $0x388] sm:$0xff] }
 0x5d5   :  { %v1986_v12 = vld [vmem:[#allocation5 + $0xe] sm:$0x1]  ;;  %v2616_v15 = vpop.permute.xlu1 %2615 }
 0x5d6   :  { %v1987_v16 = vsel %vm7481_vm15, %v1982_v20, %v1986_v12  ;;  %vm7517_vm15 = vmand %vm8233_vm4, %vm1585_vm1  ;;  %vm2024_vm4 = vcmask 1040864   ;;  %v2042_v20 = vpop.permute.xlu0 %2041  ;;  %4376 = vmatpush.bf16.msra.mxu1 %v5648_v63  ;;  %4402 = vmatpush.bf16.msra.mxu3 %v5664_v50  ;;  %v5689_v50 = vld [vmem:[%s8199_s4 + $0x348] sm:$0xff] }
 0x5d7   :  { %1988 = vst [vmem:[#allocation5 + $0xe] sm:$0x1] %v1987_v16  ;;  %vm2008_vm0 = vmor %vm7530_vm11, %vm7517_vm15  ;;  %vm2026_vm15 = vcmask 173057   ;;  %v5672_v16 = vld [vmem:[%s8199_s4 + $0x2c0] sm:$0xff]  ;;  %4389 = vmatpush.bf16.msra.mxu2 %v5656_v49  ;;  %v5681_v49 = vld [vmem:[%s8199_s4 + $0x308] sm:$0xff] }
 0x5d8   :  { %4415 = vmatpush.bf16.msrb.mxu0 %v5672_v16 }
 0x5d9   :  { %v2519_v32 = vld [vmem:[#allocation5 + $0xb] sm:$0x3] }
 0x5da   :  { %v2520_v1 = vsel %vm2518_vm13, %v2514_v4, %v2519_v32  ;;  %vm8393_vm13 = vsmask.f32 7942  ;;  %4421 = vmatpush.bf16.msrb.mxu1 %v5687_v19  ;;  %4447 = vmatpush.bf16.msrb.mxu3 %v5703_v54  ;;  %v5696_v4 = vld [vmem:[%s8199_s4 + $0x380] sm:$0xff] }
 0x5db   :  { %2521 = vst [vmem:[#allocation5 + $0xb] sm:$0x3] %v2520_v1  ;;  %vm7558_vm3 = vmand %vm8394_vm8, %vm8393_vm13  ;;  %vm8399_vm13 = vcmask 998400   ;;  %vm8236_vm8 = vcmask 490496   ;;  %4434 = vmatpush.bf16.msrb.mxu2 %v5695_v48  ;;  %v2617_v48 = vrot.slane %v2616_v15, 1  ;;  %v5724_v1 = vld [vmem:[%s8199_s4 + $0x460] sm:$0xff] }
 0x5dc   :  { %vm2536_vm11 = vmor %vm7558_vm3, %vm7536_vm14  ;;  %v2532_v45 = vsel %vm8399_vm13, %v2530_v31, %v2531_v9  ;;  %v2022_v55 = vsel %vm8236_vm8, %v2020_v47, %v2019_v27  ;;  %v2058_v31 = vrot.slane %v2057_v28, 7  ;;  %4460 = vmatpush.bf16.msra.mxu0 %v5711_v22  ;;  %v5685_v9 = vld [vmem:[%s8199_s4 + $0x328] sm:$0xff]  ;;  %v5680_v22 = vld [vmem:[%s8199_s4 + $0x300] sm:$0xff] }
 0x5dd   :  { %vm7588_vm3 = vmand %vm2026_vm15, %vm1610_vm12  ;;  %v5701_v27 = vld [vmem:[%s8199_s4 + $0x3a8] sm:$0xff]  ;;  %v2633_v62 = vpop.permute.xlu1 %2632 }
 0x5de   :  { %v2009_v61 = vld [vmem:[#allocation5 + $0xe] sm:$0x3]  ;;  %vm7600_vm14 = vmand %vm1967_vm2, %vm2225_vm9  ;;  %vm8404_vm2 = vsmask.f32 7942  ;;  %4422 = vmatpush.bf16.msrb.mxu1 %v5686_v46  ;;  %4448 = vmatpush.bf16.msrb.mxu3 %v5702_v34  ;;  %v2060_v7 = vsel %vm8237_vm6, %v2058_v31, %v2057_v28  ;;  %v5688_v28 = vld [vmem:[%s8199_s4 + $0x340] sm:$0xff] }
 0x5df   :  { %v2010_v60 = vsel %vm2008_vm0, %v2002_v36, %v2009_v61  ;;  %vm7581_vm0 = vmand %vm2024_vm4, %vm1585_vm1  ;;  %v5710_v36 = vld [vmem:[%s8199_s4 + $0x3f0] sm:$0xff]  ;;  %4435 = vmatpush.bf16.msrb.mxu2 %v5694_v59 }
 0x5e0   :  { %2011 = vst [vmem:[#allocation5 + $0xe] sm:$0x3] %v2010_v60  ;;  %vm7616_vm13 = vmand %vm1969_vm10, %vm8404_vm2  ;;  %vm8234_vm2 = vcmask 599041   ;;  %v5693_v60 = vld [vmem:[%s8199_s4 + $0x368] sm:$0xff]  ;;  %4461 = vmatpush.bf16.msra.mxu0 %v5710_v36 }
 0x5e1   :  { %vm2553_vm10 = vmor %vm7616_vm13, %vm7600_vm14 }
 0x5e2   :  { %v2537_v2 = vld [vmem:[#allocation5 + $0xc] sm:$0x3]  ;;  %vm7684_vm13 = vmand %vm1984_vm7, %vm2225_vm9  ;;  %4423 = vmatpush.bf16.msrb.mxu1 %v5685_v9  ;;  %4449 = vmatpush.bf16.msrb.mxu3 %v5701_v27 }
 0x5e3   :  { %v2538_v11 = vsel %vm2536_vm11, %v2532_v45, %v2537_v2  ;;  %vm2028_vm11 = vmor %vm7588_vm3, %vm7581_vm0  ;;  %vm8407_vm0 = vcmask 687104   ;;  %vm2044_vm3 = vcmask 909488   ;;  %v2081_v45 = vpop.permute.xlu0 %2080  ;;  %4436 = vmatpush.bf16.msrb.mxu2 %v5693_v60  ;;  %v2634_v60 = vrot.slane %v2633_v62, 7 }
 0x5e4   :  { %2539 = vst [vmem:[#allocation5 + $0xc] sm:$0x3] %v2538_v11  ;;  %v2549_v33 = vsel %vm8407_vm0, %v2547_v21, %v2548_v24  ;;  %vm7652_vm14 = vmand %vm2044_vm3, %vm1585_vm1  ;;  %vm8416_vm0 = vcmask 1041168   ;;  %v5692_v11 = vld [vmem:[%s8199_s4 + $0x360] sm:$0xff]  ;;  %4462 = vmatpush.bf16.msra.mxu0 %v5709_v41  ;;  %v2082_v25 = vrot.slane %v2081_v45, 7 }
 0x5e5   :  { %vm7697_vm7 = vmand %vm8234_vm2, %vm1610_vm12  ;;  %vm8419_vm2 = vsmask.f32 7942  ;;  %v5700_v21 = vld [vmem:[%s8199_s4 + $0x3a0] sm:$0xff]  ;;  %v2161_v24 = vpop.permute.xlu1 %2160 }
 0x5e6   :  { %vm7771_vm6 = vmand %vm2024_vm4, %vm2225_vm9  ;;  %vm8244_vm4 = vcmask 605184   ;;  %4424 = vmatpush.bf16.msrb.mxu1 %v5684_v10  ;;  %4450 = vmatpush.bf16.msrb.mxu3 %v5700_v21 }
 0x5e7   :  { %v2029_v52 = vld [vmem:[#allocation5 + $0xf] sm:$0x3]  ;;  %4437 = vmatpush.bf16.msrb.mxu2 %v5692_v11  ;;  %v2084_v57 = vsel %vm8244_vm4, %v2082_v25, %v2081_v45 }
 0x5e8   :  { %v2030_v0 = vsel %vm2028_vm11, %v2022_v55, %v2029_v52  ;;  %vm8235_vm11 = vcmask 1041280   ;;  %v2599_v52 = vpop.permute.xlu2 %2598  ;;  %v5683_v55 = vld [vmem:[%s8199_s4 + $0x318] sm:$0xff]  ;;  %4463 = vmatpush.bf16.msra.mxu0 %v5708_v51  ;;  %v5742_v45 = vld [vmem:[%s8199_s4 + $0x4f0] sm:$0xff] }
 0x5e9   :  { %2031 = vst [vmem:[#allocation5 + $0xf] sm:$0x3] %v2030_v0  ;;  %v5699_v0 = vld [vmem:[%s8199_s4 + $0x398] sm:$0xff]  ;;  %v2600_v23 = vrot.slane %v2599_v52, 1 }
 0x5ea   :  { %4425 = vmatpush.bf16.msrb.mxu1 %v5683_v55  ;;  %4451 = vmatpush.bf16.msrb.mxu3 %v5699_v0 }
 0x5eb   :  { %v2554_v53 = vld [vmem:[#allocation5 + $0xd] sm:$0x3]  ;;  %4438 = vmatpush.bf16.msrb.mxu2 %v5691_v3  ;;  %v2601_v14 = vsel %vm2001_vm5, %v2599_v52, %v2600_v23  ;;  %v2101_v19 = vpop.permute.xlu0 %2100  ;;  %v2162_v23 = vrot.slane %v2161_v24, 7  ;;  %v5741_v52 = vld [vmem:[%s8199_s4 + $0x4e8] sm:$0xff] }
 0x5ec   :  { %v2555_v8 = vsel %vm2553_vm10, %v2549_v33, %v2554_v53  ;;  %vm7690_vm10 = vmand %vm8235_vm11, %vm1585_vm1  ;;  %vm8420_vm11 = vcmask 484353   ;;  %4464 = vmatpush.bf16.msra.mxu0 %v5707_v17 }
 0x5ed   :  { %2556 = vst [vmem:[#allocation5 + $0xd] sm:$0x3] %v2555_v8  ;;  %vm7727_vm8 = vmand %vm8420_vm11, %vm8419_vm2  ;;  %vm2582_vm11 = vcmask 64512   ;;  %vm8238_vm2 = vcmask 287745   ;;  %v5698_v8 = vld [vmem:[%s8199_s4 + $0x390] sm:$0xff] }
 0x5ee   :  { %v2583_v47 = vsel %vm2582_vm11, %v2581_v35, %v2580_v58  ;;  %vm8429_vm11 = vsmask.f32 7942  ;;  %4426 = vmatpush.bf16.msrb.mxu1 %v5682_v5  ;;  %4452 = vmatpush.bf16.msrb.mxu3 %v5698_v8 }
 0x5ef   :  { %4439 = vmatpush.bf16.msrb.mxu2 %v5690_v18 }
 0x5f0   :  { %v2046_v12 = vld [vmem:[#allocation5 + $0x10] sm:$0x1]  ;;  %4465 = vmatpush.bf16.msra.mxu0 %v5706_v13  ;;  %v2118_v32 = vpop.permute.xlu2 %2117 }
 0x5f1   :  { %v2047_v26 = vsel %vm7652_vm14, %v2042_v20, %v2046_v12  ;;  %vm7714_vm14 = vmand %vm8416_vm0, %vm2225_vm9  ;;  %v5705_v20 = vld [vmem:[%s8199_s4 + $0x3c8] sm:$0xff]  ;;  %v2119_v59 = vrot.slane %v2118_v32, 7 }
 0x5f2   :  { %2048 = vst [vmem:[#allocation5 + $0x10] sm:$0x1] %v2047_v26  ;;  %4427 = vmatpush.bf16.msrb.mxu1 %v5681_v49  ;;  %4453 = vmatpush.bf16.msrb.mxu3 %v5697_v56  ;;  %v5726_v56 = vld [vmem:[%s8199_s4 + $0x470] sm:$0xff] }
 0x5f3   :  { %4440 = vmatpush.bf16.msrb.mxu2 %v5689_v50  ;;  %v5718_v50 = vld [vmem:[%s8199_s4 + $0x430] sm:$0xff] }
 0x5f4   :  { %v2570_v29 = vld [vmem:[#allocation5 + $0xe] sm:$0x1]  ;;  %4466 = vmatpush.bf16.msra.mxu0 %v5705_v20 }
 0x5f5   :  { %v2571_v6 = vsel %vm7684_vm13, %v2567_v44, %v2570_v29  ;;  %vm2066_vm13 = vmor %vm7697_vm7, %vm7690_vm10  ;;  %vm2086_vm10 = vcmask 1040976   ;;  %v5704_v29 = vld [vmem:[%s8199_s4 + $0x3c0] sm:$0xff] }
 0x5f6   :  { %2572 = vst [vmem:[#allocation5 + $0xe] sm:$0x1] %v2571_v6  ;;  %vm2587_vm7 = vmor %vm7727_vm8, %vm7714_vm14  ;;  %vm8240_vm14 = vcmask 1041392   ;;  %4428 = vmatpush.bf16.msrb.mxu1 %v5680_v22  ;;  %4454 = vmatpush.bf16.msrb.mxu3 %v5696_v4  ;;  %v2181_v4 = vpop.permute.xlu1 %2180  ;;  %v5738_v22 = vld [vmem:[%s8199_s4 + $0x4d0] sm:$0xff] }
 0x5f7   :  { %vm7750_vm0 = vmand %vm2086_vm10, %vm1585_vm1  ;;  %4441 = vmatpush.bf16.msrb.mxu2 %v5688_v28 }
 0x5f8   :  { %4467 = vmatpush.bf16.msra.mxu0 %v5704_v29  ;;  %v2652_v21 = vpop.permute.xlu2 %2651  ;;  %v5716_v29 = vld [vmem:[%s8199_s4 + $0x420] sm:$0xff] }
 0x5f9   :  { %v2067_v38 = vld [vmem:[#allocation5 + $0x10] sm:$0x3]  ;;  %v2653_v43 = vrot.slane %v2652_v21, 1 }
 0x5fa   :  { %v2068_v39 = vsel %vm2066_vm13, %v2060_v7, %v2067_v38  ;;  %vm7762_vm13 = vmand %vm8238_vm2, %vm1610_vm12  ;;  %v2138_v38 = vpop.permute.xlu0 %2137 }
 0x5fb   :  { %2069 = vst [vmem:[#allocation5 + $0x10] sm:$0x3] %v2068_v39  ;;  %vm7785_vm2 = vmand %vm2026_vm15, %vm8429_vm11  ;;  %vm8241_vm11 = vcmask 1031168  }
 0x5fc   :  { %vm2090_vm8 = vmor %vm7762_vm13, %vm7750_vm0  ;;  %vm8440_vm13 = vcmask 490496   ;;  %v2121_v61 = vsel %vm8241_vm11, %v2119_v59, %v2118_v32  ;;  %vm8455_vm11 = vcmask 287745  }
 0x5fd   :  { %v2588_v30 = vld [vmem:[#allocation5 + $0xe] sm:$0x3]  ;;  %vm2605_vm15 = vmor %vm7785_vm2, %vm7771_vm6  ;;  %vm2103_vm6 = vcmask 1024288   ;;  %v2618_v46 = vsel %vm8440_vm13, %v2616_v15, %v2617_v48  ;;  %v5717_v48 = vld [vmem:[%s8199_s4 + $0x428] sm:$0xff] }
 0x5fe   :  { %v2589_v40 = vsel %vm2587_vm7, %v2583_v47, %v2588_v30  ;;  %vm7834_vm5 = vmand %vm2103_vm6, %vm1585_vm1  ;;  %vm8239_vm7 = vcmask 713729   ;;  %v2139_v47 = vrot.slane %v2138_v38, 7 }
 0x5ff   :  { %2590 = vst [vmem:[#allocation5 + $0xe] sm:$0x3] %v2589_v40  ;;  %vm7843_vm2 = vmand %vm2044_vm3, %vm2225_vm9 }
 0x600   :  { %vm7860_vm3 = vmand %vm8240_vm14, %vm1585_vm1  ;;  %v2685_v16 = vpop.permute.xlu2 %2684 }
 0x601   :  { %vm7869_vm0 = vmand %vm8239_vm7, %vm1610_vm12  ;;  %vm8445_vm7 = vcmask 599041   ;;  %v2686_v28 = vrot.slane %v2685_v16, 7 }
 0x602   :  { %v2091_v33 = vld [vmem:[#allocation5 + $0x11] sm:$0x3] }
 0x603   :  { %v2092_v53 = vsel %vm2090_vm8, %v2084_v57, %v2091_v33  ;;  %vm2127_vm8 = vmor %vm7869_vm0, %vm7860_vm3  ;;  %vm8242_vm0 = vcmask 402433   ;;  %v2670_v57 = vpop.permute.xlu0 %2669  ;;  %v5719_v33 = vld [vmem:[%s8199_s4 + $0x438] sm:$0xff] }
 0x604   :  { %2093 = vst [vmem:[#allocation5 + $0x11] sm:$0x3] %v2092_v53  ;;  %v5727_v53 = vld [vmem:[%s8199_s4 + $0x478] sm:$0xff]  ;;  %v2671_v18 = vrot.slane %v2670_v57, 1 }
 0x606   :  { %v2606_v42 = vld [vmem:[#allocation5 + $0xf] sm:$0x3] }
 0x607   :  { %v2607_v63 = vsel %vm2605_vm15, %v2601_v14, %v2606_v42  ;;  %vm8243_vm15 = vcmask 1041088  }
 0x608   :  { %2608 = vst [vmem:[#allocation5 + $0xf] sm:$0x3] %v2607_v63  ;;  %vm7895_vm3 = vmand %vm8243_vm15, %vm1585_vm1 }
 0x60b   :  { %v2105_v26 = vld [vmem:[#allocation5 + $0x12] sm:$0x1] }
 0x60c   :  { %v2106_v54 = vsel %vm7834_vm5, %v2101_v19, %v2105_v26  ;;  %vm8441_vm5 = vcmask 1041280   ;;  %v5759_v26 = vld [vmem:[%s8199_s4 + $0x578] sm:$0xff] }
 0x60d   :  { %2107 = vst [vmem:[#allocation5 + $0x12] sm:$0x1] %v2106_v54  ;;  %vm7882_vm13 = vmand %vm8441_vm5, %vm2225_vm9  ;;  %vm2635_vm5 = vcmask 179200   ;;  %v5725_v54 = vld [vmem:[%s8199_s4 + $0x468] sm:$0xff] }
 0x60e   :  { %v2636_v2 = vsel %vm2635_vm5, %v2634_v60, %v2633_v62  ;;  %vm8454_vm5 = vsmask.f32 7942 }
 0x60f   :  { %v2621_v31 = vld [vmem:[#allocation5 + $0x10] sm:$0x1]  ;;  %v2766_v6 = vld [vmem:[#allocation5 + $0x8] sm:$0xff] }
 0x610   :  { %v2622_v34 = vsel %vm7843_vm2, %v2618_v46, %v2621_v31  ;;  %3143 = vst [vmem:[#allocation1] ss:$9 sm:$0xff] %v2766_v6  ;;  %vm8444_vm2 = vsmask.f32 7942  ;;  %v2198_v46 = vpop.permute.xlu0 %2197  ;;  %v5735_v31 = vld [vmem:[%s8199_s4 + $0x4b8] sm:$0xff] }
 0x611   :  { %2623 = vst [vmem:[#allocation5 + $0x10] sm:$0x1] %v2622_v34  ;;  %vm7888_vm14 = vmand %vm8445_vm7, %vm8444_vm2  ;;  %v5743_v6 = vld [vmem:[%s8199_s4 + $0x4f8] sm:$0xff]  ;;  %v2199_v60 = vrot.slane %v2198_v46, 7 }
 0x612   :  { %vm2640_vm7 = vmor %vm7888_vm14, %vm7882_vm13 }
 0x613   :  { %vm7905_vm2 = vmand %vm8242_vm0, %vm1610_vm12 }
 0x614   :  { %v2128_v9 = vld [vmem:[#allocation5 + $0x12] sm:$0x3]  ;;  %vm7911_vm14 = vmand %vm2086_vm10, %vm2225_vm9  ;;  %vm2168_vm10 = vcmask 91137  }
 0x615   :  { %v2129_v35 = vsel %vm2127_vm8, %v2121_v61, %v2128_v9  ;;  %vm2140_vm8 = vcmask 719872   ;;  %vm2147_vm13 = vmor %vm7905_vm2, %vm7895_vm3  ;;  %vm8458_vm3 = vcmask 916480   ;;  %v5824_v61 = vld [vmem:[%s8200_s5] ss:$0 sm:$0xff] }
 0x616   :  { %2130 = vst [vmem:[#allocation5 + $0x12] sm:$0x3] %v2129_v35  ;;  %vm2657_vm0 = vmand %vm8455_vm11, %vm8454_vm5  ;;  %v2141_v40 = vsel %vm2140_vm8, %v2139_v47, %v2138_v38  ;;  %v2654_v55 = vsel %vm8458_vm3, %v2652_v21, %v2653_v43  ;;  %vm8467_vm3 = vsmask.f32 7942  ;;  %v5715_v35 = vld [vmem:[%s8199_s4 + $0x418] sm:$0xff]  ;;  %v5714_v21 = vld [vmem:[%s8199_s4 + $0x410] sm:$0xff] }
 0x617   :  { %v3144_v27 = vld [vmem:[#allocation1] sm:$0xff]  ;;  %v3145_v39 = vld [vmem:[#allocation1 + $0x9] sm:$0xff]  ;;  %v3146_v41 = vld [vmem:[#allocation1 + $0x12] sm:$0xff] }
 0x618   :  { %v2641_v10 = vld [vmem:[#allocation5 + $0x10] sm:$0x3]  ;;  %4377 = vmatmul.bf16.vlgmr.msra.gmra.mxu1 %v3144_v27  ;;  %4390 = vmatmul.bf16.vlgmr.msra.gmra.mxu2 %v3145_v39  ;;  %v3147_v11 = vld [vmem:[#allocation1 + $0x1b] sm:$0xff]  ;;  %vm2658_vm15 = vmor %vm2657_vm0, %vm7911_vm14  ;;  %vm2163_vm0 = vcmask 408576   ;;  %vm8464_vm14 = vcmask 1041392   ;;  %v2704_v39 = vpop.permute.xlu2 %2703 }
 0x619   :  { %v2642_v30 = vsel %vm2640_vm7, %v2636_v2, %v2641_v10  ;;  %4403 = vmatmul.bf16.vlgmr.msra.gmra.mxu3 %v3146_v41  ;;  %4416 = vmatmul.bf16.vlgmr.msrb.gmra.mxu0 %v3147_v11  ;;  %vm2166_vm7 = vcmask 1040784   ;;  %vm7933_vm11 = vmand %vm2168_vm10, %vm1610_vm12  ;;  %v2164_v8 = vsel %vm2163_vm0, %v2162_v23, %v2161_v24  ;;  %v3148_v42 = vld [vmem:[#allocation1 + $0x24] sm:$0xff]  ;;  %v3149_v15 = vld [vmem:[#allocation1 + $0x2d] sm:$0xff]  ;;  %v2705_v11 = vrot.slane %v2704_v39, 1 }
 0x61a   :  { %2643 = vst [vmem:[#allocation5 + $0x10] sm:$0x3] %v2642_v30  ;;  %vm7926_vm4 = vmand %vm2166_vm7, %vm1585_vm1  ;;  %4473 = vmatpush.bf16.msra.mxu1 %v5719_v33  ;;  %4486 = vmatpush.bf16.msra.mxu2 %v5727_v53  ;;  %v3150_v63 = vld [vmem:[#allocation1 + $0x36] sm:$0xff]  ;;  %v3151_v49 = vld [vmem:[#allocation1 + $0x3f] sm:$0xff] }
 0x61b   :  { %vm2170_vm2 = vmor %vm7933_vm11, %vm7926_vm4  ;;  %vm8463_vm4 = vcmask 605184   ;;  %vm8468_vm11 = vcmask 713729   ;;  %4499 = vmatpush.bf16.msra.mxu3 %v5735_v31  ;;  %4512 = vmatpush.bf16.msrb.mxu0 %v5743_v6  ;;  %v5723_v38 = vld [vmem:[%s8199_s4 + $0x458] sm:$0xff]  ;;  %v5734_v41 = vld [vmem:[%s8199_s4 + $0x4b0] sm:$0xff] }
 0x61c   :  { %v2672_v12 = vsel %vm8463_vm4, %v2670_v57, %v2671_v18  ;;  %vm2687_vm4 = vcmask 293888   ;;  %v5722_v43 = vld [vmem:[%s8199_s4 + $0x450] sm:$0xff]  ;;  %v5733_v24 = vld [vmem:[%s8199_s4 + $0x4a8] sm:$0xff]  ;;  %v5732_v18 = vld [vmem:[%s8199_s4 + $0x4a0] sm:$0xff] }
 0x61d   :  { %v2148_v25 = vld [vmem:[#allocation5 + $0x13] sm:$0x3]  ;;  %v2688_v62 = vsel %vm2687_vm4, %v2686_v28, %v2685_v16  ;;  %vm8478_vm4 = vsmask.f32 7942  ;;  %v5713_v57 = vld [vmem:[%s8199_s4 + $0x408] sm:$0xff]  ;;  %v5748_v27 = vld [vmem:[%s8199_s4 + $0x520] sm:$0xff] }
 0x61e   :  { %v2149_v51 = vsel %vm2147_vm13, %v2141_v40, %v2148_v25  ;;  %4474 = vmatpush.bf16.msra.mxu1 %v5718_v50  ;;  %4487 = vmatpush.bf16.msra.mxu2 %v5726_v56  ;;  %vm7965_vm13 = vmand %vm8464_vm14, %vm2225_vm9  ;;  %vm2205_vm14 = vcmask 517121   ;;  %v5721_v33 = vld [vmem:[%s8199_s4 + $0x448] sm:$0xff]  ;;  %v5751_v16 = vld [vmem:[%s8199_s4 + $0x538] sm:$0xff] }
 0x61f   :  { %2150 = vst [vmem:[#allocation5 + $0x13] sm:$0x3] %v2149_v51  ;;  %4500 = vmatpush.bf16.msra.mxu3 %v5734_v41  ;;  %4513 = vmatpush.bf16.msrb.mxu0 %v5742_v45  ;;  %v5729_v31 = vld [vmem:[%s8199_s4 + $0x488] sm:$0xff]  ;;  %v5763_v41 = vld [vmem:[%s8199_s4 + $0x598] sm:$0xff] }
 0x620   :  { %v5737_v6 = vld [vmem:[%s8199_s4 + $0x4c8] sm:$0xff] }
 0x621   :  { %v2659_v3 = vld [vmem:[#allocation5 + $0x11] sm:$0x3] }
 0x622   :  { %v2660_v17 = vsel %vm2658_vm15, %v2654_v55, %v2659_v3  ;;  %vm7949_vm15 = vmand %vm2103_vm6, %vm2225_vm9  ;;  %vm2183_vm6 = vcmask 827488   ;;  %4475 = vmatpush.bf16.msra.mxu1 %v5717_v48  ;;  %4488 = vmatpush.bf16.msra.mxu2 %v5725_v54  ;;  %v5730_v54 = vld [vmem:[%s8199_s4 + $0x490] sm:$0xff] }
 0x623   :  { %2661 = vst [vmem:[#allocation5 + $0x11] sm:$0x3] %v2660_v17  ;;  %vm2184_vm5 = vmand %vm2183_vm6, %vm1585_vm1  ;;  %4501 = vmatpush.bf16.msra.mxu3 %v5733_v24  ;;  %4514 = vmatpush.bf16.msrb.mxu0 %v5741_v52  ;;  %v5746_v24 = vld [vmem:[%s8199_s4 + $0x510] sm:$0xff] }
 0x624   :  { %v5754_v52 = vld [vmem:[%s8199_s4 + $0x550] sm:$0xff] }
 0x626   :  { %v2171_v13 = vld [vmem:[#allocation5 + $0x14] sm:$0x3]  ;;  %4476 = vmatpush.bf16.msra.mxu1 %v5716_v29  ;;  %4489 = vmatpush.bf16.msra.mxu2 %v5724_v1 }
 0x627   :  { %v2172_v14 = vsel %vm2170_vm2, %v2164_v8, %v2171_v13  ;;  %vm7979_vm2 = vmand %vm8468_vm11, %vm8467_vm3  ;;  %vm2200_vm11 = vcmask 834560   ;;  %v5740_v8 = vld [vmem:[%s8199_s4 + $0x4e0] sm:$0xff]  ;;  %v2721_v13 = vpop.permute.xlu1 %2720  ;;  %4502 = vmatpush.bf16.msra.mxu3 %v5732_v18 }
 0x628   :  { %2173 = vst [vmem:[#allocation5 + $0x14] sm:$0x3] %v2172_v14  ;;  %4429 = vmatmul.bf16.vlgmr.msrb.gmra.mxu1 %v3148_v42  ;;  %4442 = vmatmul.bf16.vlgmr.msrb.gmra.mxu2 %v3149_v15  ;;  %vm2692_vm3 = vmor %vm7979_vm2, %vm7965_vm13  ;;  %v2201_v47 = vsel %vm2200_vm11, %v2199_v60, %v2198_v46  ;;  %v2722_v50 = vrot.slane %v2721_v13, 1  ;;  %v2739_v46 = vpop.permute.xlu0 %2738 }
 0x629   :  { %4455 = vmatmul.bf16.vlgmr.msrb.gmra.mxu3 %v3150_v63  ;;  %4468 = vmatmul.bf16.vlgmr.msra.gmra.mxu0 %v3151_v49  ;;  %vm8007_vm13 = vmand %vm2205_vm14, %vm1610_vm12  ;;  %v5712_v63 = vld [vmem:[%s8199_s4 + $0x400] sm:$0xff] }
 0x62a   :  { %v2675_v20 = vld [vmem:[#allocation5 + $0x12] sm:$0x1]  ;;  %4477 = vmatpush.bf16.msra.mxu1 %v5715_v35  ;;  %4490 = vmatpush.bf16.msra.mxu2 %v5723_v38  ;;  %vm8485_vm11 = vmmov %vm8478_vm4  ;;  %v5720_v49 = vld [vmem:[%s8199_s4 + $0x440] sm:$0xff] }
 0x62b   :  { %v2676_v19 = vsel %vm7949_vm15, %v2672_v12, %v2675_v20  ;;  %vm2203_vm15 = vcmask 1041200   ;;  %4515 = vmatpush.bf16.msrb.mxu0 %v5740_v8  ;;  %v5731_v12 = vld [vmem:[%s8199_s4 + $0x498] sm:$0xff]  ;;  %v5736_v35 = vld [vmem:[%s8199_s4 + $0x4c0] sm:$0xff] }
 0x62c   :  { %2677 = vst [vmem:[#allocation5 + $0x12] sm:$0x1] %v2676_v19  ;;  %v5739_v20 = vld [vmem:[%s8199_s4 + $0x4d8] sm:$0xff]  ;;  %4503 = vmatpush.bf16.msra.mxu3 %v5731_v12 }
 0x62e   :  { %4478 = vmatpush.bf16.msra.mxu1 %v5714_v21  ;;  %4491 = vmatpush.bf16.msra.mxu2 %v5722_v43  ;;  %v5755_v21 = vld [vmem:[%s8199_s4 + $0x558] sm:$0xff] }
 0x62f   :  { %v2185_v32 = vld [vmem:[#allocation5 + $0x15] sm:$0x1]  ;;  %4516 = vmatpush.bf16.msrb.mxu0 %v5739_v20 }
 0x630   :  { %v2186_v44 = vsel %vm2184_vm5, %v2181_v4, %v2185_v32  ;;  %vm8001_vm5 = vmand %vm2203_vm15, %vm1585_vm1  ;;  %vm8475_vm1 = vcmask 1041088   ;;  %v5750_v4 = vld [vmem:[%s8199_s4 + $0x530] sm:$0xff]  ;;  %4504 = vmatpush.bf16.msra.mxu3 %v5730_v54 }
 0x631   :  { %2187 = vst [vmem:[#allocation5 + $0x15] sm:$0x1] %v2186_v44  ;;  %vm8022_vm12 = vmand %vm8475_vm1, %vm2225_vm9  ;;  %v5758_v32 = vld [vmem:[%s8199_s4 + $0x570] sm:$0xff]  ;;  %v2723_v44 = vsel %vm2140_vm8, %v2721_v13, %v2722_v50 }
 0x632   :  { %v4274_v34 = vpop.f32.mrf.mxu1  ;;  %vm2207_vm2 = vmor %vm8007_vm13, %vm8001_vm5  ;;  %vm8482_vm13 = vcmask 1031168   ;;  %4479 = vmatpush.bf16.msra.mxu1 %v5713_v57  ;;  %4492 = vmatpush.bf16.msra.mxu2 %v5721_v33  ;;  %v5753_v57 = vld [vmem:[%s8199_s4 + $0x548] sm:$0xff]  ;;  %v5760_v33 = vld [vmem:[%s8199_s4 + $0x580] sm:$0xff] }
 0x633   :  { %v2693_v58 = vld [vmem:[#allocation5 + $0x12] sm:$0x3]  ;;  %v4313_v7 = vpop.f32.mrf.mxu0  ;;  %v4275_v10 = vadd.f32 %v5824_v61, %v4274_v34  ;;  %v2706_v0 = vsel %vm8482_vm13, %v2704_v39, %v2705_v11  ;;  %4517 = vmatpush.bf16.msrb.mxu0 %v5738_v22  ;;  %v5749_v34 = vld [vmem:[%s8199_s4 + $0x528] sm:$0xff]  ;;  %v2740_v61 = vrot.slane %v2739_v46, 1  ;;  %vm2743_vm8 = vmand %vm2183_vm6, %vm2225_vm9 }
 0x634   :  { %v2694_v9 = vsel %vm2692_vm3, %v2688_v62, %v2693_v58  ;;  %vm8479_vm3 = vcmask 402433   ;;  %v5757_v62 = vld [vmem:[%s8199_s4 + $0x568] sm:$0xff]  ;;  %4505 = vmatpush.bf16.msra.mxu3 %v5729_v31  ;;  %v5756_v39 = vld [vmem:[%s8199_s4 + $0x560] sm:$0xff] }
 0x635   :  { %2695 = vst [vmem:[#allocation5 + $0x12] sm:$0x3] %v2694_v9  ;;  %vm8038_vm1 = vmand %vm8479_vm3, %vm8478_vm4  ;;  %v2741_v2 = vsel %vm2163_vm0, %v2739_v46, %v2740_v61 }
 0x636   :  { %vm2710_vm5 = vmor %vm8038_vm1, %vm8022_vm12  ;;  %4480 = vmatpush.bf16.msra.mxu1 %v5712_v63  ;;  %4493 = vmatpush.bf16.msra.mxu2 %v5720_v49 }
 0x637   :  { %vm8073_vm12 = vmand %vm2166_vm7, %vm2225_vm9  ;;  %4518 = vmatpush.bf16.msrb.mxu0 %v5737_v6 }
 0x638   :  { %v2208_v30 = vld [vmem:[#allocation5 + $0x15] sm:$0x3]  ;;  %v4287_v37 = vpop.f32.mrf.mxu2  ;;  %vm8490_vm0 = vmmov %vm8478_vm4  ;;  %vm2756_vm4 = vcmask 97280  }
 0x639   :  { %v2209_v40 = vsel %vm2207_vm2, %v2201_v47, %v2208_v30  ;;  %v4288_v25 = vadd.f32 %v4287_v37, %v4275_v10  ;;  %v4300_v51 = vpop.f32.mrf.mxu3  ;;  %vm8079_vm2 = vmand %vm2168_vm10, %vm8485_vm11  ;;  %v2754_v47 = vpop.permute.xlu2 %2753  ;;  %v5747_v37 = vld [vmem:[%s8199_s4 + $0x518] sm:$0xff] }
 0x63a   :  { %2210 = vst [vmem:[#allocation5 + $0x15] sm:$0x3] %v2209_v40  ;;  %v4276_v55 = vpop.f32.mrf.mxu1  ;;  %vm2727_vm7 = vmor %vm8079_vm2, %vm8073_vm12  ;;  %4525 = vmatpush.bf16.msrb.mxu1 %v5751_v16  ;;  %4538 = vmatpush.bf16.msrb.mxu2 %v5759_v26 }
 0x63b   :  { %v4301_v3 = vadd.f32 %v4300_v51, %v4288_v25  ;;  %v4315_v23 = vpop.f32.mrf.mxu0  ;;  %4519 = vmatpush.bf16.msrb.mxu0 %v5736_v35  ;;  %vm8156_vm10 = vmand %vm2203_vm15, %vm2225_vm9  ;;  %v5762_v25 = vld [vmem:[%s8199_s4 + $0x590] sm:$0xff]  ;;  %v2755_v51 = vrot.slane %v2754_v47, 7  ;;  %v5761_v55 = vld [vmem:[%s8199_s4 + $0x588] sm:$0xff]  ;;  %vm8491_vm15 = vcmask 523264  }
 0x63c   :  { %v2711_v17 = vld [vmem:[#allocation5 + $0x13] sm:$0x3]  ;;  %vm2760_vm6 = vmand %vm2205_vm14, %vm8490_vm0  ;;  %v5745_v23 = vld [vmem:[%s8199_s4 + $0x508] sm:$0xff]  ;;  %vm4564_vm14 = vcmask 123904  }
 0x63d   :  { %v2712_v53 = vsel %vm2710_vm5, %v2706_v0, %v2711_v17  ;;  %v4314_v5 = vadd.f32 %v4313_v7, %v4301_v3  ;;  %v5728_v7 = vld [vmem:[%s8199_s4 + $0x480] sm:$0xff]  ;;  %vm2761_vm9 = vmor %vm2760_vm6, %vm8156_vm10  ;;  %v2757_v3 = vsel %vm2756_vm4, %v2755_v51, %v2754_v47 }
 0x63e   :  { %2713 = vst [vmem:[#allocation5 + $0x13] sm:$0x3] %v2712_v53  ;;  %4526 = vmatpush.bf16.msrb.mxu1 %v5750_v4  ;;  %4539 = vmatpush.bf16.msrb.mxu2 %v5758_v32  ;;  %v5744_v53 = vld [vmem:[%s8199_s4 + $0x500] sm:$0xff] }
 0x63f   :  { %4506 = vmatpush.bf16.msra.mxu3 %v5728_v7 }
 0x640   :  { %v4289_v15 = vpop.f32.mrf.mxu2 }
 0x641   :  { %v4302_v56 = vpop.f32.mrf.mxu3 }
 0x642   :  { %v4326_v19 = vpop.f32.mrf.mxu1  ;;  %4527 = vmatpush.bf16.msrb.mxu1 %v5749_v34  ;;  %4540 = vmatpush.bf16.msrb.mxu2 %v5757_v62 }
 0x643   :  { %v4327_v48 = vadd.f32 %v4326_v19, %v4314_v5  ;;  %v4365_v28 = vpop.f32.mrf.mxu0  ;;  %4555 = vmatpush.bf16.msrb.mxu3 %v5763_v41  ;;  %v5752_v5 = vld [vmem:[%s8199_s4 + $0x540] sm:$0xff]  ;;  %s5951_s4 = smov [#allocation6]  }
 0x644   :  { %s4571_s15 = sshll.u32 %s5951_s4, 4  ;;  %s4572_s15 = int_to_ptr.vmem [resolvable:$true] %s4571_s15 }
 0x645   :  { %v2728_v29 = vld [vmem:[#allocation5 + $0x14] sm:$0x3] }
 0x646   :  { %v2729_v1 = vsel %vm2727_vm7, %v2723_v44, %v2728_v29  ;;  %4528 = vmatpush.bf16.msrb.mxu1 %v5748_v27  ;;  %4541 = vmatpush.bf16.msrb.mxu2 %v5756_v39 }
 0x647   :  { %2730 = vst [vmem:[#allocation5 + $0x14] sm:$0x3] %v2729_v1  ;;  %4556 = vmatpush.bf16.msrb.mxu3 %v5762_v25 }
 0x648   :  { %v4339_v59 = vpop.f32.mrf.mxu2 }
 0x649   :  { %v4340_v58 = vadd.f32 %v4339_v59, %v4327_v48  ;;  %v4352_v36 = vpop.f32.mrf.mxu3 }
 0x64a   :  { %v4328_v9 = vpop.f32.mrf.mxu1  ;;  %4529 = vmatpush.bf16.msrb.mxu1 %v5747_v37  ;;  %4542 = vmatpush.bf16.msrb.mxu2 %v5755_v21 }
 0x64b   :  { %v4353_v60 = vadd.f32 %v4352_v36, %v4340_v58  ;;  %v4367_v38 = vpop.f32.mrf.mxu0  ;;  %4557 = vmatpush.bf16.msrb.mxu3 %v5761_v55 }
 0x64d   :  { %v4366_v45 = vadd.f32 %v4365_v28, %v4353_v60 }
 0x64e   :  { %v2744_v10 = vld [vmem:[#allocation5 + $0x15] sm:$0x1]  ;;  %4530 = vmatpush.bf16.msrb.mxu1 %v5746_v24  ;;  %4543 = vmatpush.bf16.msrb.mxu2 %v5754_v52 }
 0x64f   :  { %v2745_v11 = vsel %vm2743_vm8, %v2741_v2, %v2744_v10  ;;  %4558 = vmatpush.bf16.msrb.mxu3 %v5760_v33 }
 0x650   :  { %2746 = vst [vmem:[#allocation5 + $0x15] sm:$0x1] %v2745_v11  ;;  %v4341_v30 = vpop.f32.mrf.mxu2 }
 0x651   :  { %v4354_v40 = vpop.f32.mrf.mxu3 }
 0x652   :  { %4531 = vmatpush.bf16.msrb.mxu1 %v5745_v23  ;;  %4544 = vmatpush.bf16.msrb.mxu2 %v5753_v57 }
 0x656   :  { %4532 = vmatpush.bf16.msrb.mxu1 %v5744_v53  ;;  %4545 = vmatpush.bf16.msrb.mxu2 %v5752_v5 }
 0x657   :  { %v2762_v0 = vld [vmem:[#allocation5 + $0x15] sm:$0x3] }
 0x658   :  { %v2763_v17 = vsel %vm2761_vm9, %v2757_v3, %v2762_v0 }
 0x659   :  { %2764 = vst [vmem:[#allocation5 + $0x15] sm:$0x3] %v2763_v17 }
 0x660   :  { %v2767_v18 = vld [vmem:[#allocation5 + $0x10] sm:$0x7f] }
 0x661   :  { %3153 = vst [vmem:[#allocation1] ss:$9 sm:$0xff] %v2767_v18 }
 0x668   :  { %v3154_v8 = vld [vmem:[#allocation1] sm:$0xff]  ;;  %v3155_v13 = vld [vmem:[#allocation1 + $0x9] sm:$0xff]  ;;  %v3156_v14 = vld [vmem:[#allocation1 + $0x12] sm:$0xff] }
 0x669   :  { %4481 = vmatmul.bf16.vlgmr.msra.gmra.mxu1 %v3154_v8  ;;  %4494 = vmatmul.bf16.vlgmr.msra.gmra.mxu2 %v3155_v13  ;;  %v3157_v42 = vld [vmem:[#allocation1 + $0x1b] sm:$0xff]  ;;  %v3158_v15 = vld [vmem:[#allocation1 + $0x24] sm:$0xff]  ;;  %v3159_v63 = vld [vmem:[#allocation1 + $0x2d] sm:$0xff] }
 0x66a   :  { %4507 = vmatmul.bf16.vlgmr.msra.gmra.mxu3 %v3156_v14  ;;  %4520 = vmatmul.bf16.vlgmr.msrb.gmra.mxu0 %v3157_v42  ;;  %v3160_v49 = vld [vmem:[#allocation1 + $0x36] sm:$0xff] }
 0x679   :  { %4533 = vmatmul.bf16.vlgmr.msrb.gmra.mxu1 %v3158_v15  ;;  %4546 = vmatmul.bf16.vlgmr.msrb.gmra.mxu2 %v3159_v63 }
 0x67a   :  { %5532 = vmatmul.msk.bf16.vlgmr.msrb.gmra.mxu3 %vm8491_vm15, %v3160_v49 }
 0x695   :  { %v4378_v50 = vpop.f32.mrf.mxu1 }
 0x696   :  { %v4379_v56 = vadd.f32 %v4378_v50, %v4366_v45  ;;  %v4417_v12 = vpop.f32.mrf.mxu0 }
 0x69b   :  { %v4391_v20 = vpop.f32.mrf.mxu2 }
 0x69c   :  { %v4392_v16 = vadd.f32 %v4391_v20, %v4379_v56  ;;  %v4404_v19 = vpop.f32.mrf.mxu3 }
 0x69d   :  { %v4380_v26 = vpop.f32.mrf.mxu1 }
 0x69e   :  { %v4405_v48 = vadd.f32 %v4404_v19, %v4392_v16  ;;  %v4419_v54 = vpop.f32.mrf.mxu0 }
 0x6a0   :  { %v4418_v22 = vadd.f32 %v4417_v12, %v4405_v48 }
 0x6a3   :  { %v4393_v28 = vpop.f32.mrf.mxu2 }
 0x6a4   :  { %v4406_v4 = vpop.f32.mrf.mxu3 }
 0x6a5   :  { %v4430_v32 = vpop.f32.mrf.mxu1 }
 0x6a6   :  { %v4431_v44 = vadd.f32 %v4430_v32, %v4418_v22  ;;  %v4469_v29 = vpop.f32.mrf.mxu0 }
 0x6ab   :  { %v4443_v1 = vpop.f32.mrf.mxu2 }
 0x6ac   :  { %v4444_v46 = vadd.f32 %v4443_v1, %v4431_v44  ;;  %v4456_v31 = vpop.f32.mrf.mxu3 }
 0x6ad   :  { %v4432_v6 = vpop.f32.mrf.mxu1 }
 0x6ae   :  { %v4457_v59 = vadd.f32 %v4456_v31, %v4444_v46  ;;  %v4471_v34 = vpop.f32.mrf.mxu0 }
 0x6b0   :  { %v4470_v62 = vadd.f32 %v4469_v29, %v4457_v59 }
 0x6b3   :  { %v4445_v58 = vpop.f32.mrf.mxu2 }
 0x6b4   :  { %v4458_v36 = vpop.f32.mrf.mxu3 }
 0x6e6   :  { %v4482_v61 = vpop.f32.mrf.mxu1 }
 0x6e7   :  { %v4521_v9 = vpop.f32.mrf.mxu0  ;;  %v4483_v38 = vadd.f32 %v4482_v61, %v4470_v62 }
 0x6ec   :  { %v4495_v60 = vpop.f32.mrf.mxu2 }
 0x6ed   :  { %v4508_v7 = vpop.f32.mrf.mxu3  ;;  %v4496_v39 = vadd.f32 %v4495_v60, %v4483_v38 }
 0x6ee   :  { %v4484_v35 = vpop.f32.mrf.mxu1 }
 0x6ef   :  { %v4523_v27 = vpop.f32.mrf.mxu0  ;;  %v4509_v45 = vadd.f32 %v4508_v7, %v4496_v39 }
 0x6f1   :  { %v4522_v11 = vadd.f32 %v4521_v9, %v4509_v45 }
 0x6f4   :  { %v4497_v41 = vpop.f32.mrf.mxu2 }
 0x6f5   :  { %v4510_v2 = vpop.f32.mrf.mxu3 }
 0x6f6   :  { %v4534_v10 = vpop.f32.mrf.mxu1 }
 0x6f7   :  { %v4535_v47 = vadd.f32 %v4534_v10, %v4522_v11 }
 0x6fc   :  { %v4547_v30 = vpop.f32.mrf.mxu2 }
 0x6fd   :  { %v4548_v37 = vadd.f32 %v4547_v30, %v4535_v47  ;;  %v4560_v21 = vpop.f32.mrf.mxu3 }
 0x6fe   :  { %v4536_v43 = vpop.f32.mrf.mxu1 }
 0x6ff   :  { %v4561_v40 = vadd.f32 %v4560_v21, %v4548_v37 }
 0x701   :  { %4565 = vst.msk [vmem:[#allocation6] sm:$0x3] %vm4564_vm14, %v4561_v40 }
 0x702   :  { %4576 = dma.vmem_to_hbm [thread:$0]  %s4572_s15, 32, %s4574_s18, [#allocation7]  }
 0x704   :  { %v4549_v25 = vpop.f32.mrf.mxu2 }
 0x705   :  { %v4562_v51 = vpop.f32.mrf.mxu3 }
 0x706   :  { %5905 = dma.done.wait [#allocation7], 32  }
 0x707   :  { %5906 = vsyncadd [#allocation7], 4294967264 }
 0x708   :  { %4581 = vsyncpa [#allocation7], 1 }

</bundles_post_ra>
